<compile_context>
chip_gen: v5e
topology: v5e:2x2
jax: 0.10.0
libtpu: 0.0.40
codegen_flags: <defaults>
</compile_context>

<pallas_src>
import math

import jax
import jax.numpy as jnp
from jax.experimental import pallas as pl
from jax.experimental.pallas import tpu as pltpu
from jax.scipy.linalg import block_diag

LS = (0, 1, 2)                       # irreps_T = F x 0e + F x 1o + F x 2e
NUM_IRREPS = len(LS)
DIMS = tuple(2 * l + 1 for l in LS)  # (1, 3, 5)
TOT = sum(DIMS)                      # 9


def _tpa_kernel(T_ref, S_ref,
                Wq_ref, Wk_ref, Wv_ref, R_ref, E_ref,
                Wlsu_ref, Wlsd_ref, blsu_ref, blsd_ref,
                Wlvs_ref, blvs_ref,
                tu_ref, gate_ref):
    f32 = jnp.float32
    T = T_ref[...].astype(jnp.bfloat16)                               # (tn, 9F)

    # ---- lq / lk / lv : one wide MXU matmul each (bf16 in, f32 accumulate) ----------
    q = jnp.dot(T, Wq_ref[...], preferred_element_type=f32)           # (tn, 9F)
    k = jnp.dot(T, Wk_ref[...], preferred_element_type=f32)           # (tn, 9F)
    # Stage lv(T) in the output buffer so it is not live across the softmax (no spills).
    tu_ref[...] = jnp.dot(T, Wv_ref[...], preferred_element_type=f32)

    # ---- tp1(lq, lk) : per-channel contraction over m via selection/scale matrix R --
    s = jnp.dot(q * k, R_ref[...], preferred_element_type=f32)        # (tn, F)

    # ---- ls: F -> 2F, joint softmax kept as two lane-aligned (tn, F) halves ----------
    zu = jnp.dot(s, Wlsu_ref[...], preferred_element_type=f32) + blsu_ref[...]
    zd = jnp.dot(s, Wlsd_ref[...], preferred_element_type=f32) + blsd_ref[...]
    zmax = jnp.maximum(jnp.max(zu, axis=-1, keepdims=True),
                       jnp.max(zd, axis=-1, keepdims=True))
    eu = jnp.exp(zu - zmax)
    ed = jnp.exp(zd - zmax)
    inv = pl.reciprocal(jnp.sum(eu, axis=-1, keepdims=True)
                        + jnp.sum(ed, axis=-1, keepdims=True), approx=True)
    su = eu * inv
    sd = ed * inv

    # ---- tp2(sd, lv(T)) : expand gate to flat irreps layout (incl. tp2 weights) ------
    g = jnp.dot(sd, E_ref[...], preferred_element_type=f32)           # (tn, 9F)
    tu_ref[...] = (g * tu_ref[...]).astype(tu_ref.dtype)

    # ---- su * act(lvs(S)) ------------------------------------------------------------
    y = jnp.dot(S_ref[...], Wlvs_ref[...], preferred_element_type=f32) + blvs_ref[...]
    act = y * jax.nn.sigmoid(y)    # TODO(synk): `activations(act, ...)` assumed to be SiLU
    gate_ref[...] = (su * act).astype(gate_ref.dtype)


def init_params(key, F):
    ks = jax.random.split(key, 6)
    Wq = jax.random.normal(ks[0], (3, F, F), jnp.float32)          # e3nn Linear weights ~ N(0,1)
    Wk = jax.random.normal(ks[1], (3, F, F), jnp.float32)
    Wv = jax.random.normal(ks[2], (3, F, F), jnp.float32)
    b_ls = math.sqrt(6.0 / (F + 2 * F))                            # xavier_uniform (ls)
    Wls = jax.random.uniform(ks[3], (F, 2 * F), jnp.float32, -b_ls, b_ls)   # stored for x @ W
    bls = jnp.zeros((1, 2 * F), jnp.float32)
    b_lvs = math.sqrt(6.0 / (F + F))                               # xavier_uniform (lvs)
    Wlvs = jax.random.uniform(ks[4], (F, F), jnp.float32, -b_lvs, b_lvs)
    blvs = jnp.zeros((1, F), jnp.float32)
    wtp2 = jax.random.normal(ks[5], (3, 1, F), jnp.float32)        # tp2 'uuu' internal weights
    return dict(Wq=Wq, Wk=Wk, Wv=Wv, Wls=Wls, bls=bls, Wlvs=Wlvs, blvs=blvs, wtp2=wtp2)


def _pack_params(params, F):
    """Build the kernel-facing weights (tiny device ops; hoist out of hot loops in prod)."""
    inv_sqrt_f = 1.0 / math.sqrt(F)
    eyeF = jnp.eye(F, dtype=jnp.float32)

    def expand_linear(W):  # (3, F, F) -> block-diag of kron(W_l, I_{2l+1}) / sqrt(F), bf16
        blocks = [jnp.kron(W[i], jnp.eye(d, dtype=jnp.float32)) for i, d in enumerate(DIMS)]
        return (block_diag(*blocks) * inv_sqrt_f).astype(jnp.bfloat16)

    # tp1 reduction matrix R: sums q*k over m per channel, with w3j + path normalization.
    path_w = 1.0 / math.sqrt(NUM_IRREPS)
    R = jnp.concatenate(
        [(path_w / math.sqrt(d)) * jnp.kron(eyeF, jnp.ones((d, 1), jnp.float32)) for d in DIMS],
        axis=0)                                                     # (9F, F)

    # tp2 gate expansion E: carries the trainable 'uuu' weights (sqrt(2l+1) cancels w3j).
    wtp2 = params["wtp2"]                                           # (3, 1, F)
    E = jnp.concatenate(
        [jnp.kron(eyeF, jnp.ones((1, d), jnp.float32)) * wtp2[i].reshape(F, 1)
         for i, d in enumerate(DIMS)],
        axis=1)                                                     # (F, 9F)

    Wls, bls = params["Wls"], params["bls"]
    return dict(
        Wq=expand_linear(params["Wq"]),
        Wk=expand_linear(params["Wk"]),
        Wv=expand_linear(params["Wv"]),
        R=R, E=E,
        Wlsu=Wls[:, :F], Wlsd=Wls[:, F:],
        blsu=bls[:, :F], blsd=bls[:, F:],
        Wlvs=params["Wlvs"], blvs=params["blvs"])


def tensorproduct_attention(T, S, params, *, tile_n=256):
    N, dimT = T.shape
    F = S.shape[-1]
    assert dimT == TOT * F

    p = _pack_params(params, F)

    # Row-tile size: main tuning knob.  Pad N so any tile size is legal (rows tiles are
    # (8,128)-aligned because tn is a multiple of 8 and the last dim is the full array dim).
    tn = max(8, min(int(tile_n), -(-N // 8) * 8))
    tn = -(-tn // 8) * 8
    Np = -(-N // tn) * tn
    if Np != N:
        T = jnp.pad(T, ((0, Np - N), (0, 0)))
        S = jnp.pad(S, ((0, Np - N), (0, 0)))

    row = lambda i: (i, 0)
    whole = lambda i: (0, 0)

    out_shapes = (jax.ShapeDtypeStruct((Np, TOT * F), jnp.float32),   # tu (flat e3nn layout)
                  jax.ShapeDtypeStruct((Np, F), jnp.float32))         # su * act(lvs(S))
    in_specs = [
        pl.BlockSpec((tn, TOT * F), row),         # T   (flat e3nn layout, consumed directly)
        pl.BlockSpec((tn, F), row),               # S
        pl.BlockSpec((TOT * F, TOT * F), whole),  # Wq (expanded, bf16)
        pl.BlockSpec((TOT * F, TOT * F), whole),  # Wk
        pl.BlockSpec((TOT * F, TOT * F), whole),  # Wv
        pl.BlockSpec((TOT * F, F), whole),        # R
        pl.BlockSpec((F, TOT * F), whole),        # E
        pl.BlockSpec((F, F), whole),              # Wls upper half
        pl.BlockSpec((F, F), whole),              # Wls lower half
        pl.BlockSpec((1, F), whole),              # bls upper half
        pl.BlockSpec((1, F), whole),              # bls lower half
        pl.BlockSpec((F, F), whole),              # Wlvs
        pl.BlockSpec((1, F), whole),              # blvs
    ]
    out_specs = (pl.BlockSpec((tn, TOT * F), row),
                 pl.BlockSpec((tn, F), row))

    tu, gated = pl.pallas_call(
        _tpa_kernel,
        out_shape=out_shapes,
        grid=(Np // tn,),
        in_specs=in_specs,
        out_specs=out_specs,
        compiler_params=pltpu.CompilerParams(
            dimension_semantics=("parallel",),
            vmem_limit_bytes=64 << 20),
    )(T, S, p["Wq"], p["Wk"], p["Wv"], p["R"], p["E"],
      p["Wlsu"], p["Wlsd"], p["blsu"], p["blsd"], p["Wlvs"], p["blvs"])

    if Np != N:
        tu, gated = tu[:N], gated[:N]
    return tu, gated


if __name__ == "__main__":
    N, F = 256, 32                      # nodes, num_features  (small demo shapes)
    dim_T = F * TOT

    key = jax.random.PRNGKey(0)
    kT, kS, kW = jax.random.split(key, 3)
    T = jax.random.normal(kT, (N, dim_T), jnp.float32)
    S = jax.random.normal(kS, (N, F), jnp.float32)
    params = init_params(kW, F)

    tu, gated = tensorproduct_attention(T, S, params, tile_n=128)   # 2 grid steps (v7x 2-TC)
    jax.block_until_ready((tu, gated))
    assert tu.shape == (N, dim_T) and gated.shape == (N, F)
    assert bool(jnp.all(jnp.isfinite(tu))) and bool(jnp.all(jnp.isfinite(gated)))
    print("KERNEL_OK")
</pallas_src>

<mosaic_0001>
module attributes {stable_mosaic.version = 11 : i64} {
  func.func @_tpa_kernel(%arg0: i32, %arg1: memref<128x288xf32, #tpu.memory_space<vmem>>, %arg2: memref<128x32xf32, #tpu.memory_space<vmem>>, %arg3: memref<288x288xbf16, #tpu.memory_space<vmem>>, %arg4: memref<288x288xbf16, #tpu.memory_space<vmem>>, %arg5: memref<288x288xbf16, #tpu.memory_space<vmem>>, %arg6: memref<288x32xf32, #tpu.memory_space<vmem>>, %arg7: memref<32x288xf32, #tpu.memory_space<vmem>>, %arg8: memref<32x32xf32, #tpu.memory_space<vmem>>, %arg9: memref<32x32xf32, #tpu.memory_space<vmem>>, %arg10: memref<1x32xf32, #tpu.memory_space<vmem>>, %arg11: memref<1x32xf32, #tpu.memory_space<vmem>>, %arg12: memref<32x32xf32, #tpu.memory_space<vmem>>, %arg13: memref<1x32xf32, #tpu.memory_space<vmem>>, %arg14: memref<128x288xf32, #tpu.memory_space<vmem>>, %arg15: memref<128x32xf32, #tpu.memory_space<vmem>>) attributes {dimension_semantics = [#tpu.dimension_semantics<parallel>], iteration_bounds = array<i64: 2>, scalar_prefetch = 0 : i64, scratch_operands = 0 : i64, tpu.core_type = #tpu.core_type<tc>, window_params = [{transform_indices = @transform_0, window_bounds = array<i64: 128, 288>}, {transform_indices = @transform_1, window_bounds = array<i64: 128, 32>}, {pipeline_mode = #tpu.pipeline_mode<synchronous>, transform_indices = @transform_2, window_bounds = array<i64: 288, 288>}, {pipeline_mode = #tpu.pipeline_mode<synchronous>, transform_indices = @transform_3, window_bounds = array<i64: 288, 288>}, {pipeline_mode = #tpu.pipeline_mode<synchronous>, transform_indices = @transform_4, window_bounds = array<i64: 288, 288>}, {pipeline_mode = #tpu.pipeline_mode<synchronous>, transform_indices = @transform_5, window_bounds = array<i64: 288, 32>}, {pipeline_mode = #tpu.pipeline_mode<synchronous>, transform_indices = @transform_6, window_bounds = array<i64: 32, 288>}, {pipeline_mode = #tpu.pipeline_mode<synchronous>, transform_indices = @transform_7, window_bounds = array<i64: 32, 32>}, {pipeline_mode = #tpu.pipeline_mode<synchronous>, transform_indices = @transform_8, window_bounds = array<i64: 32, 32>}, {pipeline_mode = #tpu.pipeline_mode<synchronous>, transform_indices = @transform_9, window_bounds = array<i64: 1, 32>}, {pipeline_mode = #tpu.pipeline_mode<synchronous>, transform_indices = @transform_10, window_bounds = array<i64: 1, 32>}, {pipeline_mode = #tpu.pipeline_mode<synchronous>, transform_indices = @transform_11, window_bounds = array<i64: 32, 32>}, {pipeline_mode = #tpu.pipeline_mode<synchronous>, transform_indices = @transform_12, window_bounds = array<i64: 1, 32>}, {transform_indices = @transform_13, window_bounds = array<i64: 128, 288>}, {transform_indices = @transform_14, window_bounds = array<i64: 128, 32>}]} {
    %c0 = arith.constant 0 : index
    %c0_0 = arith.constant 0 : index
    %0 = vector.load %arg1[%c0, %c0_0] : memref<128x288xf32, #tpu.memory_space<vmem>>, vector<128x288xf32>
    %1 = arith.truncf %0 : vector<128x288xf32> to vector<128x288xbf16>
    %c0_1 = arith.constant 0 : index
    %c0_2 = arith.constant 0 : index
    %2 = vector.load %arg3[%c0_1, %c0_2] : memref<288x288xbf16, #tpu.memory_space<vmem>>, vector<288x288xbf16>
    %cst = arith.constant dense<0.000000e+00> : vector<128x288xf32>
    %3 = tpu.matmul %1, %2, %cst {dimension_numbers = #tpu.dot_dimension_numbers<[1], [0], [0], [1], [0, 0, 1, 1], [], []>} : vector<128x288xbf16>, vector<288x288xbf16>, vector<128x288xf32> -> vector<128x288xf32>
    %c0_3 = arith.constant 0 : index
    %c0_4 = arith.constant 0 : index
    %4 = vector.load %arg4[%c0_3, %c0_4] : memref<288x288xbf16, #tpu.memory_space<vmem>>, vector<288x288xbf16>
    %cst_5 = arith.constant dense<0.000000e+00> : vector<128x288xf32>
    %5 = tpu.matmul %1, %4, %cst_5 {dimension_numbers = #tpu.dot_dimension_numbers<[1], [0], [0], [1], [0, 0, 1, 1], [], []>} : vector<128x288xbf16>, vector<288x288xbf16>, vector<128x288xf32> -> vector<128x288xf32>
    %c0_6 = arith.constant 0 : index
    %c0_7 = arith.constant 0 : index
    %6 = vector.load %arg5[%c0_6, %c0_7] : memref<288x288xbf16, #tpu.memory_space<vmem>>, vector<288x288xbf16>
    %cst_8 = arith.constant dense<0.000000e+00> : vector<128x288xf32>
    %7 = tpu.matmul %1, %6, %cst_8 {dimension_numbers = #tpu.dot_dimension_numbers<[1], [0], [0], [1], [0, 0, 1, 1], [], []>} : vector<128x288xbf16>, vector<288x288xbf16>, vector<128x288xf32> -> vector<128x288xf32>
    %c0_9 = arith.constant 0 : index
    %c0_10 = arith.constant 0 : index
    %8 = vector.load %arg14[%c0_9, %c0_10] : memref<128x288xf32, #tpu.memory_space<vmem>>, vector<128x288xf32>
    tpu.vector_store %arg14[%c0_9, %c0_10], %7 {strides = array<i32>} : memref<128x288xf32, #tpu.memory_space<vmem>>, vector<128x288xf32>,
    %9 = arith.mulf %3, %5 : vector<128x288xf32>
    %c0_11 = arith.constant 0 : index
    %c0_12 = arith.constant 0 : index
    %10 = vector.load %arg6[%c0_11, %c0_12] : memref<288x32xf32, #tpu.memory_space<vmem>>, vector<288x32xf32>
    %cst_13 = arith.constant dense<0.000000e+00> : vector<128x32xf32>
    %11 = tpu.matmul %9, %10, %cst_13 {dimension_numbers = #tpu.dot_dimension_numbers<[1], [0], [0], [1], [0, 0, 1, 1], [], []>} : vector<128x288xf32>, vector<288x32xf32>, vector<128x32xf32> -> vector<128x32xf32>
    %c0_14 = arith.constant 0 : index
    %c0_15 = arith.constant 0 : index
    %12 = vector.load %arg8[%c0_14, %c0_15] : memref<32x32xf32, #tpu.memory_space<vmem>>, vector<32x32xf32>
    %cst_16 = arith.constant dense<0.000000e+00> : vector<128x32xf32>
    %13 = tpu.matmul %11, %12, %cst_16 {dimension_numbers = #tpu.dot_dimension_numbers<[1], [0], [0], [1], [0, 0, 1, 1], [], []>} : vector<128x32xf32>, vector<32x32xf32>, vector<128x32xf32> -> vector<128x32xf32>
    %c0_17 = arith.constant 0 : index
    %c0_18 = arith.constant 0 : index
    %14 = vector.load %arg10[%c0_17, %c0_18] : memref<1x32xf32, #tpu.memory_space<vmem>>, vector<1x32xf32>
    %15 = vector.broadcast %14 : vector<1x32xf32> to vector<128x32xf32>
    %16 = arith.addf %13, %15 : vector<128x32xf32>
    %c0_19 = arith.constant 0 : index
    %c0_20 = arith.constant 0 : index
    %17 = vector.load %arg9[%c0_19, %c0_20] : memref<32x32xf32, #tpu.memory_space<vmem>>, vector<32x32xf32>
    %cst_21 = arith.constant dense<0.000000e+00> : vector<128x32xf32>
    %18 = tpu.matmul %11, %17, %cst_21 {dimension_numbers = #tpu.dot_dimension_numbers<[1], [0], [0], [1], [0, 0, 1, 1], [], []>} : vector<128x32xf32>, vector<32x32xf32>, vector<128x32xf32> -> vector<128x32xf32>
    %c0_22 = arith.constant 0 : index
    %c0_23 = arith.constant 0 : index
    %19 = vector.load %arg11[%c0_22, %c0_23] : memref<1x32xf32, #tpu.memory_space<vmem>>, vector<1x32xf32>
    %20 = vector.broadcast %19 : vector<1x32xf32> to vector<128x32xf32>
    %21 = arith.addf %18, %20 : vector<128x32xf32>
    %cst_24 = arith.constant dense<0xFF800000> : vector<128xf32>
    %22 = vector.multi_reduction <maximumf>, %16, %cst_24 [1] : vector<128x32xf32> to vector<128xf32>
    %23 = vector.shape_cast %22 : vector<128xf32> to vector<128x1xf32>
    %cst_25 = arith.constant dense<0xFF800000> : vector<128xf32>
    %24 = vector.multi_reduction <maximumf>, %21, %cst_25 [1] : vector<128x32xf32> to vector<128xf32>
    %25 = vector.shape_cast %24 : vector<128xf32> to vector<128x1xf32>
    %26 = arith.maximumf %23, %25 : vector<128x1xf32>
    %27 = vector.broadcast %26 : vector<128x1xf32> to vector<128x32xf32>
    %28 = arith.subf %16, %27 : vector<128x32xf32>
    %29 = math.exp %28 : vector<128x32xf32>
    %30 = vector.broadcast %26 : vector<128x1xf32> to vector<128x32xf32>
    %31 = arith.subf %21, %30 : vector<128x32xf32>
    %32 = math.exp %31 : vector<128x32xf32>
    %cst_26 = arith.constant dense<0.000000e+00> : vector<128xf32>
    %33 = vector.multi_reduction <add>, %29, %cst_26 [1] : vector<128x32xf32> to vector<128xf32>
    %34 = vector.shape_cast %33 : vector<128xf32> to vector<128x1xf32>
    %cst_27 = arith.constant dense<0.000000e+00> : vector<128xf32>
    %35 = vector.multi_reduction <add>, %32, %cst_27 [1] : vector<128x32xf32> to vector<128xf32>
    %36 = vector.shape_cast %35 : vector<128xf32> to vector<128x1xf32>
    %37 = arith.addf %34, %36 : vector<128x1xf32>
    %38 = tpu.reciprocal %37 {approx = true} : vector<128x1xf32> -> vector<128x1xf32>
    %39 = vector.broadcast %38 : vector<128x1xf32> to vector<128x32xf32>
    %40 = arith.mulf %29, %39 : vector<128x32xf32>
    %41 = vector.broadcast %38 : vector<128x1xf32> to vector<128x32xf32>
    %42 = arith.mulf %32, %41 : vector<128x32xf32>
    %c0_28 = arith.constant 0 : index
    %c0_29 = arith.constant 0 : index
    %43 = vector.load %arg7[%c0_28, %c0_29] : memref<32x288xf32, #tpu.memory_space<vmem>>, vector<32x288xf32>
    %cst_30 = arith.constant dense<0.000000e+00> : vector<128x288xf32>
    %44 = tpu.matmul %42, %43, %cst_30 {dimension_numbers = #tpu.dot_dimension_numbers<[1], [0], [0], [1], [0, 0, 1, 1], [], []>} : vector<128x32xf32>, vector<32x288xf32>, vector<128x288xf32> -> vector<128x288xf32>
    %c0_31 = arith.constant 0 : index
    %c0_32 = arith.constant 0 : index
    %45 = vector.load %arg14[%c0_31, %c0_32] : memref<128x288xf32, #tpu.memory_space<vmem>>, vector<128x288xf32>
    %46 = arith.mulf %44, %45 : vector<128x288xf32>
    %c0_33 = arith.constant 0 : index
    %c0_34 = arith.constant 0 : index
    %47 = vector.load %arg14[%c0_33, %c0_34] : memref<128x288xf32, #tpu.memory_space<vmem>>, vector<128x288xf32>
    tpu.vector_store %arg14[%c0_33, %c0_34], %46 {strides = array<i32>} : memref<128x288xf32, #tpu.memory_space<vmem>>, vector<128x288xf32>,
    %c0_35 = arith.constant 0 : index
    %c0_36 = arith.constant 0 : index
    %48 = vector.load %arg2[%c0_35, %c0_36] : memref<128x32xf32, #tpu.memory_space<vmem>>, vector<128x32xf32>
    %c0_37 = arith.constant 0 : index
    %c0_38 = arith.constant 0 : index
    %49 = vector.load %arg12[%c0_37, %c0_38] : memref<32x32xf32, #tpu.memory_space<vmem>>, vector<32x32xf32>
    %cst_39 = arith.constant dense<0.000000e+00> : vector<128x32xf32>
    %50 = tpu.matmul %48, %49, %cst_39 {dimension_numbers = #tpu.dot_dimension_numbers<[1], [0], [0], [1], [0, 0, 1, 1], [], []>} : vector<128x32xf32>, vector<32x32xf32>, vector<128x32xf32> -> vector<128x32xf32>
    %c0_40 = arith.constant 0 : index
    %c0_41 = arith.constant 0 : index
    %51 = vector.load %arg13[%c0_40, %c0_41] : memref<1x32xf32, #tpu.memory_space<vmem>>, vector<1x32xf32>
    %52 = vector.broadcast %51 : vector<1x32xf32> to vector<128x32xf32>
    %53 = arith.addf %50, %52 : vector<128x32xf32>
    %54 = arith.negf %53 : vector<128x32xf32>
    %55 = math.exp %54 : vector<128x32xf32>
    %cst_42 = arith.constant 1.000000e+00 : f32
    %56 = vector.broadcast %cst_42 : f32 to vector<128x32xf32>
    %57 = arith.addf %56, %55 : vector<128x32xf32>
    %58 = arith.divf %56, %57 : vector<128x32xf32>
    %59 = arith.mulf %53, %58 : vector<128x32xf32>
    %60 = arith.mulf %40, %59 : vector<128x32xf32>
    %c0_43 = arith.constant 0 : index
    %c0_44 = arith.constant 0 : index
    %61 = vector.load %arg15[%c0_43, %c0_44] : memref<128x32xf32, #tpu.memory_space<vmem>>, vector<128x32xf32>
    tpu.vector_store %arg15[%c0_43, %c0_44], %60 {strides = array<i32>} : memref<128x32xf32, #tpu.memory_space<vmem>>, vector<128x32xf32>,
    return
  }
  func.func @transform_0(%arg0: i32) -> (i32, i32) {
    %c0_i32 = arith.constant 0 : i32
    %c0_i32_0 = arith.constant 0 : i32
    return %arg0, %c0_i32 : i32, i32
  }
  func.func @transform_1(%arg0: i32) -> (i32, i32) {
    %c0_i32 = arith.constant 0 : i32
    %c0_i32_0 = arith.constant 0 : i32
    return %arg0, %c0_i32 : i32, i32
  }
  func.func @transform_2(%arg0: i32) -> (i32, i32) {
    %c0_i32 = arith.constant 0 : i32
    %c0_i32_0 = arith.constant 0 : i32
    %c0_i32_1 = arith.constant 0 : i32
    return %c0_i32, %c0_i32_0 : i32, i32
  }
  func.func @transform_3(%arg0: i32) -> (i32, i32) {
    %c0_i32 = arith.constant 0 : i32
    %c0_i32_0 = arith.constant 0 : i32
    %c0_i32_1 = arith.constant 0 : i32
    return %c0_i32, %c0_i32_0 : i32, i32
  }
  func.func @transform_4(%arg0: i32) -> (i32, i32) {
    %c0_i32 = arith.constant 0 : i32
    %c0_i32_0 = arith.constant 0 : i32
    %c0_i32_1 = arith.constant 0 : i32
    return %c0_i32, %c0_i32_0 : i32, i32
  }
  func.func @transform_5(%arg0: i32) -> (i32, i32) {
    %c0_i32 = arith.constant 0 : i32
    %c0_i32_0 = arith.constant 0 : i32
    %c0_i32_1 = arith.constant 0 : i32
    return %c0_i32, %c0_i32_0 : i32, i32
  }
  func.func @transform_6(%arg0: i32) -> (i32, i32) {
    %c0_i32 = arith.constant 0 : i32
    %c0_i32_0 = arith.constant 0 : i32
    %c0_i32_1 = arith.constant 0 : i32
    return %c0_i32, %c0_i32_0 : i32, i32
  }
  func.func @transform_7(%arg0: i32) -> (i32, i32) {
    %c0_i32 = arith.constant 0 : i32
    %c0_i32_0 = arith.constant 0 : i32
    %c0_i32_1 = arith.constant 0 : i32
    return %c0_i32, %c0_i32_0 : i32, i32
  }
  func.func @transform_8(%arg0: i32) -> (i32, i32) {
    %c0_i32 = arith.constant 0 : i32
    %c0_i32_0 = arith.constant 0 : i32
    %c0_i32_1 = arith.constant 0 : i32
    return %c0_i32, %c0_i32_0 : i32, i32
  }
  func.func @transform_9(%arg0: i32) -> (i32, i32) {
    %c0_i32 = arith.constant 0 : i32
    %c0_i32_0 = arith.constant 0 : i32
    %c0_i32_1 = arith.constant 0 : i32
    return %c0_i32, %c0_i32_0 : i32, i32
  }
  func.func @transform_10(%arg0: i32) -> (i32, i32) {
    %c0_i32 = arith.constant 0 : i32
    %c0_i32_0 = arith.constant 0 : i32
    %c0_i32_1 = arith.constant 0 : i32
    return %c0_i32, %c0_i32_0 : i32, i32
  }
  func.func @transform_11(%arg0: i32) -> (i32, i32) {
    %c0_i32 = arith.constant 0 : i32
    %c0_i32_0 = arith.constant 0 : i32
    %c0_i32_1 = arith.constant 0 : i32
    return %c0_i32, %c0_i32_0 : i32, i32
  }
  func.func @transform_12(%arg0: i32) -> (i32, i32) {
    %c0_i32 = arith.constant 0 : i32
    %c0_i32_0 = arith.constant 0 : i32
    %c0_i32_1 = arith.constant 0 : i32
    return %c0_i32, %c0_i32_0 : i32, i32
  }
  func.func @transform_13(%arg0: i32) -> (i32, i32) {
    %c0_i32 = arith.constant 0 : i32
    %c0_i32_0 = arith.constant 0 : i32
    return %arg0, %c0_i32 : i32, i32
  }
  func.func @transform_14(%arg0: i32) -> (i32, i32) {
    %c0_i32 = arith.constant 0 : i32
    %c0_i32_0 = arith.constant 0 : i32
    return %arg0, %c0_i32 : i32, i32
  }
}

</mosaic_0001>

<bundles_post_ra>
// kernel: tpu_custom_call.1
= control target key start
LH: loop header
LB: loop body
LE: loop exit
PB: predicated region body
PF: predicated region fallthrough
CT: control target
= control target key end

     0   :  { %20 = vsyncpa [#allocation3], 0  ;;  %s9562_s0 = inlined_call_operand.vmem [shape: f32[256,288], index: 0, kind: input, shape index: {}]   ;;  %s9563_s1 = inlined_call_operand.vmem [shape: f32[256,32], index: 1, kind: input, shape index: {}]   ;;  %s9564_s2 = inlined_call_operand.vmem [shape: bf16[288,288], index: 2, kind: input, shape index: {}]   ;;  %s9565_s3 = inlined_call_operand.vmem [shape: bf16[288,288], index: 3, kind: input, shape index: {}]   ;;  %s9566_s4 = inlined_call_operand.vmem [shape: bf16[288,288], index: 4, kind: input, shape index: {}]   ;;  %s9567_s5 = inlined_call_operand.vmem [shape: f32[288,32], index: 5, kind: input, shape index: {}]   ;;  %s9568_s6 = inlined_call_operand.hbm [shape: f32[32,288], index: 6, kind: input, shape index: {}]   ;;  %s9569_s7 = inlined_call_operand.vmem [shape: f32[32,32], index: 7, kind: input, shape index: {}]   ;;  %s9570_s8 = inlined_call_operand.vmem [shape: f32[32,32], index: 8, kind: input, shape index: {}]   ;;  %s9571_s9 = inlined_call_operand.vmem [shape: f32[1,32], index: 9, kind: input, shape index: {}]   ;;  %s9572_s10 = inlined_call_operand.vmem [shape: f32[1,32], index: 10, kind: input, shape index: {}]   ;;  %s9573_s11 = inlined_call_operand.hbm [shape: f32[32,32], index: 11, kind: input, shape index: {}]   ;;  %s9574_s12 = inlined_call_operand.vmem [shape: f32[1,32], index: 12, kind: input, shape index: {}]   ;;  %s9575_s13 = inlined_call_operand.vmem [shape: f32[256,288], index: 13, kind: output, shape index: {0}]   ;;  %s9576_s14 = inlined_call_operand.vmem [shape: f32[256,32], index: 14, kind: output, shape index: {1}]  }
   0x1   :  { %21 = vsyncpa [#allocation5], 0  ;;  %s6382_s29 = smov 0  }
   0x2 LB: > { %s390_s16 = sshll.u32 %s9568_s6, 4  ;;  %s4998_s17 = sadd.s32 4294967295, %s6299_s29   ;;  %s6299_s29 = sphi %s6382_s29, %s27_s29   ;;  %s391_s16 = int_to_ptr.hbm [resolvable:$true] %s390_s16 }
   0x3   : > { %p5000_p0 = scmp.ge.s32.totalorder %s6299_s29, 1  ;;  %p367_p1 = scmp.lt.s32.totalorder %s6299_s29, 3 }
   0x4   : > { %p6393_p2 = scmp.eq.s32.totalorder %s4998_s17, 0  ;;  %s6301_s20 = smov [#allocation2]  }
   0x5   : > { %p6397_p3 = pnand %p5000_p0, %p367_p1  ;;  %s392_s21 = sshll.u32 %s6301_s20, 4  ;;  %s393_s21 = int_to_ptr.vmem [resolvable:$true] %s392_s21 }
   0x6   : > { %s416_s24 = sshll.u32 %s9573_s11, 4  ;;  %s6302_s25 = smov [#allocation4]   ;;  %s417_s24 = int_to_ptr.hbm [resolvable:$true] %s416_s24 }
   0x7   : > { %p6036_p4 = pneg %p6397_p3  ;;  %s418_s26 = sshll.u32 %s6302_s25, 4  ;;  %s419_s26 = int_to_ptr.vmem [resolvable:$true] %s418_s26 }
   0x8   : > { %s6303_s27 = smov 384   ;;  %s6304_s28 = smov 24  }
   0x9   : > { %p6037_p5 = pnand %p6393_p2, %p6036_p4  ;;  %s6305_s30 = smov 128  }
   0xa   : > { %s6306_s15 = smov 8   ;;  %456 = sbr.rel (%p6397_p3) target bundleno = 1810 (0x712), region = 72 }
   0xb   : > { %6039 = dma.hbm_to_vmem [thread:$0]  (!%p6037_p5), %s391_s16, 1536, %s393_s21, [#allocation3], %s6303_s27, %s6303_s27, %s6304_s28  }
   0xc   : > { %6042 = dma.hbm_to_vmem [thread:$0]  (!%p6037_p5), %s417_s24, 512, %s419_s26, [#allocation5], %s6305_s30, %s6305_s30, %s6306_s15  }
   0xf   : > { %6290 = dma.done.wait (%p6393_p2), [#allocation3], 1536  }
  0x10   : > { %6292 = vsyncadd (%p6393_p2), [#allocation3], 4294965760 }
  0x11   : > { %6294 = dma.done.wait (%p6393_p2), [#allocation5], 512  }
  0x12   : > { %6296 = vsyncadd (%p6393_p2), [#allocation5], 4294966784  ;;  %s5007_s20 = sshll.u32 %s4998_s17, 4  ;;  %v5101_v0 = vld [vmem:[%s9564_s2 + $0xa8] sm:$0xf]  ;;  %vm979_vm0 = vcmask 261120  }
  0x13   : > { %p521_p6 = scmp.lt.s32.totalorder %s5007_s20, 31  ;;  %v5887_v1 = vld [vmem:[%s9564_s2 + $0xb0] sm:$0xf0]  ;;  %v5197_v2 = vld [vmem:[%s9564_s2 + $0x168] sm:$0xf] }
  0x14   : > { %v5102_v3 = vor.u32 %v5887_v1, %v5101_v0  ;;  %v5911_v4 = vld [vmem:[%s9564_s2 + $0x170] sm:$0xf0]  ;;  %v5221_v5 = vld [vmem:[%s9564_s2 + $0x198] sm:$0xf]  ;;  %v5917_v6 = vld [vmem:[%s9564_s2 + $0x1a0] sm:$0xf0] }
  0x15   : > { %s9747_s20 = smov (!%p521_p6, %s5007_s20), 31  ;;  %v5198_v7 = vor.u32 %v5911_v4, %v5197_v2  ;;  %v5222_v8 = vor.u32 %v5917_v6, %v5221_v5  ;;  %v5886_v9 = vld [vmem:[%s9564_s2 + $0xac] sm:$0xf]  ;;  %v5103_v10 = vld [vmem:[%s9564_s2 + $0xb4] sm:$0xf0] }
  0x16   : > { %s6027_s16 = smul.u32 24, %s9747_s20  ;;  %v5089_v11 = vld [vmem:[%s9564_s2 + $0x90] sm:$0xf]  ;;  %1004 = vmatpush.bf16.msra.mxu0 %v5102_v3  ;;  %v5106_v12 = vor.u32 %v5886_v9, %v5103_v10  ;;  %v5884_v13 = vld [vmem:[%s9564_s2 + $0x98] sm:$0xf0] }
  0x17   : > { %v5185_v14 = vld [vmem:[%s9564_s2 + $0x150] sm:$0xf]  ;;  %v5908_v15 = vld [vmem:[%s9564_s2 + $0x158] sm:$0xf0]  ;;  %1053 = vmatpush.bf16.msra.mxu1 %v5198_v7  ;;  %1108 = vmatpush.bf16.msra.mxu2 %v5222_v8  ;;  %v5090_v16 = vor.u32 %v5884_v13, %v5089_v11  ;;  %v5209_v18 = vld [vmem:[%s9564_s2 + $0x180] sm:$0xf] }
  0x18   : > { %s6453_s18 = scalar_lea.vmem %s9562_s0, %s6027_s16  ;;  %v5186_v17 = vor.u32 %v5908_v15, %v5185_v14  ;;  %v5914_v19 = vld [vmem:[%s9564_s2 + $0x188] sm:$0xf0]  ;;  %v5883_v20 = vld [vmem:[%s9564_s2 + $0x94] sm:$0xf]  ;;  %1151 = vmatpush.bf16.msra.mxu3 %v5106_v12  ;;  %v5091_v22 = vld [vmem:[%s9564_s2 + $0x9c] sm:$0xf0]  ;;  %s8217_s17 = scalar_lea.vmem %s9575_s13, %s6027_s16 }
  0x19   : > { %v5210_v21 = vor.u32 %v5914_v19, %v5209_v18  ;;  %v549_v23 = vld [vmem:[%s6453_s18 + $0x10] sm:$0xff]  ;;  %v552_v24 = vld [vmem:[%s6453_s18 + $0x28] sm:$0xff]  ;;  %v5094_v25 = vor.u32 %v5883_v20, %v5091_v22  ;;  %v5077_v26 = vld [vmem:[%s9564_s2 + $0x78] sm:$0xf]  ;;  %s5010_s16 = sshll.u32 %s9747_s20, 3 }
  0x1a   : > { %v5881_v27 = vld [vmem:[%s9564_s2 + $0x80] sm:$0xf0]  ;;  %v5173_v28 = vld [vmem:[%s9564_s2 + $0x138] sm:$0xf]  ;;  %1005 = vmatpush.bf16.msra.mxu0 %v5090_v16  ;;  %v6487_v29 = vpack.c.bf16 %v552_v24, %v549_v23  ;;  %v5880_v32 = vld [vmem:[%s9564_s2 + $0x7c] sm:$0xf]  ;;  %s8614_s28 = scalar_lea.vmem %s9563_s1, %s5010_s16  ;;  %s8933_s22 = scalar_lea.vmem %s9576_s14, %s5010_s16 }
  0x1b   : > { %v5078_v30 = vor.u32 %v5881_v27, %v5077_v26  ;;  %v5905_v31 = vld [vmem:[%s9564_s2 + $0x140] sm:$0xf0]  ;;  %v5079_v33 = vld [vmem:[%s9564_s2 + $0x84] sm:$0xf0]  ;;  %1054 = vmatpush.bf16.msra.mxu1 %v5186_v17  ;;  %1109 = vmatpush.bf16.msra.mxu2 %v5210_v21  ;;  %v5065_v35 = vld [vmem:[%s9564_s2 + $0x60] sm:$0xf] }
  0x1c   : > { %v5174_v34 = vor.u32 %v5905_v31, %v5173_v28  ;;  %v5878_v36 = vld [vmem:[%s9564_s2 + $0x68] sm:$0xf0]  ;;  %1152 = vmatpush.bf16.msra.mxu3 %v5094_v25  ;;  %v5082_v37 = vor.u32 %v5880_v32, %v5079_v33  ;;  %v5161_v38 = vld [vmem:[%s9564_s2 + $0x120] sm:$0xf]  ;;  %v5877_v40 = vld [vmem:[%s9564_s2 + $0x64] sm:$0xf] }
  0x1d   : > { %v5902_v39 = vld [vmem:[%s9564_s2 + $0x128] sm:$0xf0]  ;;  %v5067_v41 = vld [vmem:[%s9564_s2 + $0x6c] sm:$0xf0]  ;;  %v5066_v42 = vor.u32 %v5878_v36, %v5065_v35  ;;  %v5053_v44 = vld [vmem:[%s9564_s2 + $0x48] sm:$0xf] }
  0x1e   : > { %5231 = vmatmul.msk.bf16.vlgmr.msra.gmra.mxu2 %vm979_vm0, %v6487_v29  ;;  %1006 = vmatpush.bf16.msra.mxu0 %v5078_v30  ;;  %v5162_v43 = vor.u32 %v5902_v39, %v5161_v38  ;;  %v5875_v45 = vld [vmem:[%s9564_s2 + $0x50] sm:$0xf0]  ;;  %v5070_v46 = vor.u32 %v5877_v40, %v5067_v41  ;;  %v5149_v47 = vld [vmem:[%s9564_s2 + $0x108] sm:$0xf]  ;;  %v5874_v49 = vld [vmem:[%s9564_s2 + $0x4c] sm:$0xf] }
  0x1f   : > { %1055 = vmatpush.bf16.msra.mxu1 %v5174_v34  ;;  %v5899_v48 = vld [vmem:[%s9564_s2 + $0x110] sm:$0xf0]  ;;  %v5055_v50 = vld [vmem:[%s9564_s2 + $0x54] sm:$0xf0]  ;;  %v5910_v51 = vld [vmem:[%s9564_s2 + $0x16c] sm:$0xf]  ;;  %v5054_v52 = vor.u32 %v5875_v45, %v5053_v44 }
  0x20   : > { %1153 = vmatpush.bf16.msra.mxu3 %v5082_v37  ;;  %v5199_v53 = vld [vmem:[%s9564_s2 + $0x174] sm:$0xf0]  ;;  %v5150_v54 = vor.u32 %v5899_v48, %v5149_v47  ;;  %v5041_v55 = vld [vmem:[%s9564_s2 + $0x30] sm:$0xf]  ;;  %v5872_v56 = vld [vmem:[%s9564_s2 + $0x38] sm:$0xf0]  ;;  %v5058_v58 = vor.u32 %v5874_v49, %v5055_v50 }
  0x21   : > { %v5202_v57 = vor.u32 %v5910_v51, %v5199_v53  ;;  %v5137_v59 = vld [vmem:[%s9564_s2 + $0xf0] sm:$0xf]  ;;  %v5896_v60 = vld [vmem:[%s9564_s2 + $0xf8] sm:$0xf0]  ;;  %v5871_v61 = vld [vmem:[%s9564_s2 + $0x34] sm:$0xf]  ;;  %v5042_v63 = vor.u32 %v5872_v56, %v5041_v55 }
  0x22   : > { %1007 = vmatpush.bf16.msra.mxu0 %v5066_v42  ;;  %v5043_v62 = vld [vmem:[%s9564_s2 + $0x3c] sm:$0xf0]  ;;  %v5138_v1 = vor.u32 %v5896_v60, %v5137_v59  ;;  %v558_v2 = vld [vmem:[%s6453_s18 + $0x58] sm:$0xff]  ;;  %v5869_v4 = vld [vmem:[%s9564_s2 + $0x20] sm:$0xf0] }
  0x23   : > { %1056 = vmatpush.bf16.msra.mxu1 %v5162_v43  ;;  %1200 = vmatpush.bf16.msrb.mxu2 %v5202_v57  ;;  %v555_v0 = vld [vmem:[%s6453_s18 + $0x40] sm:$0xff]  ;;  %v5029_v3 = vld [vmem:[%s9564_s2 + $0x18] sm:$0xf]  ;;  %v5046_v5 = vor.u32 %v5871_v61, %v5043_v62  ;;  %v5868_v8 = vld [vmem:[%s9564_s2 + $0x1c] sm:$0xf] }
  0x24   : > { %1154 = vmatpush.bf16.msra.mxu3 %v5070_v46  ;;  %v5125_v6 = vld [vmem:[%s9564_s2 + $0xd8] sm:$0xf]  ;;  %v5893_v7 = vld [vmem:[%s9564_s2 + $0xe0] sm:$0xf0]  ;;  %v5031_v9 = vld [vmem:[%s9564_s2 + $0x24] sm:$0xf0]  ;;  %v6586_v12 = vpack.c.bf16 %v558_v2, %v555_v0  ;;  %v5030_v13 = vor.u32 %v5869_v4, %v5029_v3 }
  0x25   : > { %v5907_v10 = vld [vmem:[%s9564_s2 + $0x154] sm:$0xf]  ;;  %v5187_v11 = vld [vmem:[%s9564_s2 + $0x15c] sm:$0xf0]  ;;  %v5866_v15 = vld [vmem:[%s9564_s2 + $0x8] sm:$0xf0]  ;;  %v5126_v18 = vor.u32 %v5893_v7, %v5125_v6  ;;  %v5034_v21 = vor.u32 %v5868_v8, %v5031_v9 }
  0x26   : > { %1008 = vmatpush.bf16.msra.mxu0 %v5054_v52  ;;  %v5017_v14 = vld [vmem:[%s9564_s2] sm:$0xf]  ;;  %v5190_v17 = vor.u32 %v5907_v10, %v5187_v11  ;;  %v5890_v19 = vld [vmem:[%s9564_s2 + $0xc8] sm:$0xf0]  ;;  %v5916_v20 = vld [vmem:[%s9564_s2 + $0x19c] sm:$0xf] }
  0x27   : > { %1057 = vmatpush.bf16.msra.mxu1 %v5150_v54  ;;  %v5113_v16 = vld [vmem:[%s9564_s2 + $0xc0] sm:$0xf]  ;;  %v5223_v22 = vld [vmem:[%s9564_s2 + $0x1a4] sm:$0xf0]  ;;  %v5865_v23 = vld [vmem:[%s9564_s2 + $0x4] sm:$0xf]  ;;  %v5018_v26 = vor.u32 %v5866_v15, %v5017_v14 }
  0x28   : > { %1155 = vmatpush.bf16.msra.mxu3 %v5058_v58  ;;  %1201 = vmatpush.bf16.msrb.mxu2 %v5190_v17  ;;  %v5019_v24 = vld [vmem:[%s9564_s2 + $0xc] sm:$0xf0]  ;;  %v547_v25 = vld [vmem:[%s6453_s18] sm:$0xff]  ;;  %v550_v27 = vld [vmem:[%s6453_s18 + $0x18] sm:$0xff]  ;;  %v5114_v31 = vor.u32 %v5890_v19, %v5113_v16  ;;  %v5226_v34 = vor.u32 %v5916_v20, %v5223_v22 }
  0x29   : > { %v5904_v28 = vld [vmem:[%s9564_s2 + $0x13c] sm:$0xf]  ;;  %v5175_v30 = vld [vmem:[%s9564_s2 + $0x144] sm:$0xf0]  ;;  %v551_v33 = vld [vmem:[%s6453_s18 + $0x20] sm:$0xff]  ;;  %v5022_v36 = vor.u32 %v5865_v23, %v5019_v24  ;;  %v6624_v37 = vpack.c.bf16 %v550_v27, %v547_v25 }
  0x2a   : > { %1009 = vmatpush.bf16.msra.mxu0 %v5042_v63  ;;  %v548_v32 = vld [vmem:[%s6453_s18 + $0x8] sm:$0xff]  ;;  %v5178_v35 = vor.u32 %v5904_v28, %v5175_v30  ;;  %v561_v39 = vld [vmem:[%s6453_s18 + $0x70] sm:$0xff]  ;;  %v5901_v44 = vld [vmem:[%s9564_s2 + $0x124] sm:$0xf] }
  0x2b   : > { %1058 = vmatpush.bf16.msra.mxu1 %v5138_v1  ;;  %v6626_v38 = vpack.c.bf16 %v551_v33, %v548_v32  ;;  %v564_v40 = vld [vmem:[%s6453_s18 + $0x88] sm:$0xff]  ;;  %v553_v42 = vld [vmem:[%s6453_s18 + $0x30] sm:$0xff]  ;;  %v554_v46 = vld [vmem:[%s6453_s18 + $0x38] sm:$0xff] }
  0x2c   : > { %1156 = vmatpush.bf16.msra.mxu3 %v5046_v5  ;;  %1202 = vmatpush.bf16.msrb.mxu2 %v5178_v35  ;;  %v6633_v41 = vpack.c.bf16 %v564_v40, %v561_v39  ;;  %v556_v43 = vld [vmem:[%s6453_s18 + $0x48] sm:$0xff]  ;;  %v5163_v45 = vld [vmem:[%s9564_s2 + $0x12c] sm:$0xf0]  ;;  %v567_v51 = vld [vmem:[%s6453_s18 + $0xa0] sm:$0xff] }
  0x2d   : > { %v557_v47 = vld [vmem:[%s6453_s18 + $0x50] sm:$0xff]  ;;  %v5166_v48 = vor.u32 %v5901_v44, %v5163_v45  ;;  %v6647_v49 = vpack.c.bf16 %v556_v43, %v553_v42  ;;  %v570_v52 = vld [vmem:[%s6453_s18 + $0xb8] sm:$0xff]  ;;  %v559_v54 = vld [vmem:[%s6453_s18 + $0x60] sm:$0xff] }
  0x2e   : > { %5232 = vmatmul.msk.bf16.gmra.mxu2 %vm979_vm0, %v6586_v12  ;;  %1010 = vmatpush.bf16.msra.mxu0 %v5030_v13  ;;  %v6649_v50 = vpack.c.bf16 %v557_v47, %v554_v46  ;;  %v6656_v53 = vpack.c.bf16 %v570_v52, %v567_v51  ;;  %v562_v55 = vld [vmem:[%s6453_s18 + $0x78] sm:$0xff]  ;;  %v5898_v56 = vld [vmem:[%s9564_s2 + $0x10c] sm:$0xf]  ;;  %v563_v59 = vld [vmem:[%s6453_s18 + $0x80] sm:$0xff] }
  0x2f   : > { %1059 = vmatpush.bf16.msra.mxu1 %v5126_v18  ;;  %v5151_v57 = vld [vmem:[%s9564_s2 + $0x114] sm:$0xf0]  ;;  %v560_v58 = vld [vmem:[%s6453_s18 + $0x68] sm:$0xff]  ;;  %v6670_v61 = vpack.c.bf16 %v562_v55, %v559_v54  ;;  %v573_v63 = vld [vmem:[%s6453_s18 + $0xd0] sm:$0xff] }
  0x30   : > { %1157 = vmatpush.bf16.msra.mxu3 %v5034_v21  ;;  %1203 = vmatpush.bf16.msrb.mxu2 %v5166_v48  ;;  %v5154_v60 = vor.u32 %v5898_v56, %v5151_v57  ;;  %v6672_v62 = vpack.c.bf16 %v563_v59, %v560_v58  ;;  %v576_v0 = vld [vmem:[%s6453_s18 + $0xe8] sm:$0xff]  ;;  %v5913_v1 = vld [vmem:[%s9564_s2 + $0x184] sm:$0xf]  ;;  %v5211_v2 = vld [vmem:[%s9564_s2 + $0x18c] sm:$0xf0] }
  0x31   : > { %v5214_v3 = vor.u32 %v5913_v1, %v5211_v2  ;;  %v6685_v4 = vpack.c.bf16 %v576_v0, %v573_v63  ;;  %v565_v5 = vld [vmem:[%s6453_s18 + $0x90] sm:$0xff]  ;;  %v568_v6 = vld [vmem:[%s6453_s18 + $0xa8] sm:$0xff]  ;;  %v5139_v8 = vld [vmem:[%s9564_s2 + $0xfc] sm:$0xf0] }
  0x32   : > { %1011 = vmatpush.bf16.msra.mxu0 %v5018_v26  ;;  %v5895_v7 = vld [vmem:[%s9564_s2 + $0xf4] sm:$0xf]  ;;  %v566_v9 = vld [vmem:[%s6453_s18 + $0x98] sm:$0xff]  ;;  %v6699_v13 = vpack.c.bf16 %v568_v6, %v565_v5  ;;  %v579_v15 = vld [vmem:[%s6453_s18 + $0x100] sm:$0xff] }
  0x33   : > { %1060 = vmatpush.bf16.msra.mxu1 %v5114_v31  ;;  %v569_v10 = vld [vmem:[%s6453_s18 + $0xb0] sm:$0xff]  ;;  %v5142_v11 = vor.u32 %v5895_v7, %v5139_v8  ;;  %v582_v16 = vld [vmem:[%s6453_s18 + $0x118] sm:$0xff]  ;;  %v571_v18 = vld [vmem:[%s6453_s18 + $0xc0] sm:$0xff] }
  0x34   : > { %1158 = vmatpush.bf16.msra.mxu3 %v5022_v36  ;;  %1204 = vmatpush.bf16.msrb.mxu2 %v5154_v60  ;;  %v6701_v14 = vpack.c.bf16 %v569_v10, %v566_v9  ;;  %v6708_v17 = vpack.c.bf16 %v582_v16, %v579_v15  ;;  %v574_v19 = vld [vmem:[%s6453_s18 + $0xd8] sm:$0xff]  ;;  %v5127_v21 = vld [vmem:[%s9564_s2 + $0xe4] sm:$0xf0]  ;;  %v575_v23 = vld [vmem:[%s6453_s18 + $0xe0] sm:$0xff] }
  0x35   : > { %1012 = vmatmul.bf16.vlgmr.msra.gmra.mxu0 %v6624_v37  ;;  %v5892_v20 = vld [vmem:[%s9564_s2 + $0xdc] sm:$0xf]  ;;  %v572_v22 = vld [vmem:[%s6453_s18 + $0xc8] sm:$0xff]  ;;  %v6722_v25 = vpack.c.bf16 %v574_v19, %v571_v18  ;;  %v5109_v27 = vld [vmem:[%s9564_s2 + $0xb0] sm:$0xf] }
  0x36   : > { %1255 = vmatpush.bf16.msrb.mxu0 %v5226_v34  ;;  %1061 = vmatmul.bf16.vlgmr.msra.gmra.mxu1 %v6626_v38  ;;  %v5130_v24 = vor.u32 %v5892_v20, %v5127_v21  ;;  %v6724_v26 = vpack.c.bf16 %v575_v23, %v572_v22  ;;  %v5888_v28 = vld [vmem:[%s9564_s2 + $0xb8] sm:$0xf0]  ;;  %v5205_v30 = vld [vmem:[%s9564_s2 + $0x170] sm:$0xf]  ;;  %v588_v32 = vld [vmem:[%s6453_s18 + $0x148] sm:$0xff] }
  0x37   : > { %1159 = vmatmul.bf16.vlgmr.msra.gmra.mxu3 %v6624_v37  ;;  %v585_v31 = vld [vmem:[%s6453_s18 + $0x130] sm:$0xff]  ;;  %v5110_v33 = vor.u32 %v5888_v28, %v5109_v27  ;;  %v5912_v34 = vld [vmem:[%s9564_s2 + $0x178] sm:$0xf0]  ;;  %v5889_v36 = vld [vmem:[%s9564_s2 + $0xc4] sm:$0xf] }
  0x38   : > { %1205 = vmatpush.bf16.msrb.mxu2 %v5142_v11  ;;  %v5206_v35 = vor.u32 %v5912_v34, %v5205_v30  ;;  %v5115_v39 = vld [vmem:[%s9564_s2 + $0xcc] sm:$0xf0]  ;;  %v5097_v40 = vld [vmem:[%s9564_s2 + $0x98] sm:$0xf]  ;;  %v5885_v43 = vld [vmem:[%s9564_s2 + $0xa0] sm:$0xf0]  ;;  %v6761_v48 = vpack.c.bf16 %v588_v32, %v585_v31 }
  0x39   : > { %1298 = vmatpush.bf16.msrb.mxu1 %v5110_v33  ;;  %v5118_v42 = vor.u32 %v5889_v36, %v5115_v39  ;;  %v5193_v44 = vld [vmem:[%s9564_s2 + $0x158] sm:$0xf]  ;;  %v5909_v45 = vld [vmem:[%s9564_s2 + $0x160] sm:$0xf0]  ;;  %v5098_v46 = vor.u32 %v5885_v43, %v5097_v40  ;;  %v5085_v51 = vld [vmem:[%s9564_s2 + $0x80] sm:$0xf] }
  0x3a   : > { %1256 = vmatpush.bf16.msrb.mxu0 %v5214_v3  ;;  %1347 = vmatpush.bf16.msrb.mxu3 %v5206_v35  ;;  %v5194_v47 = vor.u32 %v5909_v45, %v5193_v44  ;;  %v5882_v52 = vld [vmem:[%s9564_s2 + $0x88] sm:$0xf0]  ;;  %v5181_v54 = vld [vmem:[%s9564_s2 + $0x140] sm:$0xf]  ;;  %v577_v55 = vld [vmem:[%s6453_s18 + $0xf0] sm:$0xff] }
  0x3b   : > { %v580_v56 = vld [vmem:[%s6453_s18 + $0x108] sm:$0xff]  ;;  %v5086_v57 = vor.u32 %v5882_v52, %v5085_v51  ;;  %v578_v59 = vld [vmem:[%s6453_s18 + $0xf8] sm:$0xff]  ;;  %v581_v60 = vld [vmem:[%s6453_s18 + $0x110] sm:$0xff] }
  0x3c   : > { %1206 = vmatpush.bf16.msrb.mxu2 %v5130_v24  ;;  %v5906_v58 = vld [vmem:[%s9564_s2 + $0x148] sm:$0xf0]  ;;  %v6781_v0 = vpack.c.bf16 %v580_v56, %v577_v55  ;;  %v5073_v1 = vld [vmem:[%s9564_s2 + $0x68] sm:$0xf]  ;;  %v5879_v2 = vld [vmem:[%s9564_s2 + $0x70] sm:$0xf0]  ;;  %v6792_v5 = vpack.c.bf16 %v581_v60, %v578_v59 }
  0x3d   : > { %1299 = vmatpush.bf16.msrb.mxu1 %v5098_v46  ;;  %v5182_v63 = vor.u32 %v5906_v58, %v5181_v54  ;;  %v5169_v3 = vld [vmem:[%s9564_s2 + $0x128] sm:$0xf]  ;;  %v5074_v6 = vor.u32 %v5879_v2, %v5073_v1  ;;  %v5903_v7 = vld [vmem:[%s9564_s2 + $0x130] sm:$0xf0]  ;;  %v5061_v9 = vld [vmem:[%s9564_s2 + $0x50] sm:$0xf] }
  0x3e   : > { %5233 = vmatmul.msk.bf16.gmra.mxu2 %vm979_vm0, %v6633_v41  ;;  %1348 = vmatpush.bf16.msrb.mxu3 %v5194_v47  ;;  %v5170_v8 = vor.u32 %v5903_v7, %v5169_v3  ;;  %v5876_v10 = vld [vmem:[%s9564_s2 + $0x58] sm:$0xf0]  ;;  %v5157_v11 = vld [vmem:[%s9564_s2 + $0x110] sm:$0xf]  ;;  %v591_v18 = vld [vmem:[%s6453_s18 + $0x160] sm:$0xff] }
  0x3f   : > { %v5062_v15 = vor.u32 %v5876_v10, %v5061_v9  ;;  %v5900_v16 = vld [vmem:[%s9564_s2 + $0x118] sm:$0xf0]  ;;  %v5049_v21 = vld [vmem:[%s9564_s2 + $0x38] sm:$0xf]  ;;  %v5873_v22 = vld [vmem:[%s9564_s2 + $0x40] sm:$0xf0] }
  0x40   : > { %1207 = vmatpush.bf16.msrb.mxu2 %v5118_v42  ;;  %v594_v19 = vld [vmem:[%s6453_s18 + $0x178] sm:$0xff]  ;;  %v5158_v20 = vor.u32 %v5900_v16, %v5157_v11  ;;  %v5050_v27 = vor.u32 %v5873_v22, %v5049_v21  ;;  %v5897_v28 = vld [vmem:[%s9564_s2 + $0x100] sm:$0xf0]  ;;  %v5037_v33 = vld [vmem:[%s9564_s2 + $0x20] sm:$0xf] }
  0x41   : > { %1300 = vmatpush.bf16.msrb.mxu1 %v5086_v57  ;;  %v5145_v23 = vld [vmem:[%s9564_s2 + $0xf8] sm:$0xf]  ;;  %v6823_v24 = vpack.c.bf16 %v594_v19, %v591_v18  ;;  %v583_v31 = vld [vmem:[%s6453_s18 + $0x120] sm:$0xff]  ;;  %v5870_v34 = vld [vmem:[%s9564_s2 + $0x28] sm:$0xf0] }
  0x42   : > { %1349 = vmatpush.bf16.msrb.mxu3 %v5182_v63  ;;  %v5146_v30 = vor.u32 %v5897_v28, %v5145_v23  ;;  %v586_v32 = vld [vmem:[%s6453_s18 + $0x138] sm:$0xff]  ;;  %v5133_v35 = vld [vmem:[%s9564_s2 + $0xe0] sm:$0xf]  ;;  %v5918_v39 = vld [vmem:[%s9564_s2 + $0x1a8] sm:$0xf0]  ;;  %v5038_v40 = vor.u32 %v5870_v34, %v5037_v33 }
  0x43   : > { %v5229_v36 = vld [vmem:[%s9564_s2 + $0x1a0] sm:$0xf]  ;;  %v5894_v42 = vld [vmem:[%s9564_s2 + $0xe8] sm:$0xf0]  ;;  %v6852_v47 = vpack.c.bf16 %v586_v32, %v583_v31  ;;  %v5025_v51 = vld [vmem:[%s9564_s2 + $0x8] sm:$0xf] }
  0x44   : > { %v584_v43 = vld [vmem:[%s6453_s18 + $0x128] sm:$0xff]  ;;  %v587_v44 = vld [vmem:[%s6453_s18 + $0x140] sm:$0xff]  ;;  %v5230_v45 = vor.u32 %v5918_v39, %v5229_v36  ;;  %v5134_v46 = vor.u32 %v5894_v42, %v5133_v35  ;;  %v5867_v52 = vld [vmem:[%s9564_s2 + $0x10] sm:$0xf0] }
  0x45   : > { %1017 = vmatmul.bf16.gmra.mxu0 %v6647_v49  ;;  %1301 = vmatpush.bf16.msrb.mxu1 %v5074_v6  ;;  %v5121_v54 = vld [vmem:[%s9564_s2 + $0xc8] sm:$0xf]  ;;  %v6863_v55 = vpack.c.bf16 %v587_v44, %v584_v43  ;;  %v5026_v56 = vor.u32 %v5867_v52, %v5025_v51  ;;  %v5891_v57 = vld [vmem:[%s9564_s2 + $0xd0] sm:$0xf0]  ;;  %v590_v3 = vld [vmem:[%s6453_s18 + $0x158] sm:$0xff] }
  0x46   : > { %1066 = vmatmul.bf16.gmra.mxu1 %v6649_v50  ;;  %1350 = vmatpush.bf16.msrb.mxu3 %v5170_v8  ;;  %v5122_v58 = vor.u32 %v5891_v57, %v5121_v54  ;;  %v5341_v59 = vld [vmem:[%s9565_s3 + $0xa8] sm:$0xf]  ;;  %v5941_v60 = vld [vmem:[%s9565_s3 + $0xb0] sm:$0xf0]  ;;  %v5329_v10 = vld [vmem:[%s9565_s3 + $0x90] sm:$0xf] }
  0x47   : > { %1164 = vmatmul.bf16.gmra.mxu3 %v6647_v49  ;;  %1402 = vmatpush.bf16.msra.mxu2 %v5230_v45  ;;  %v5342_v63 = vor.u32 %v5941_v60, %v5341_v59  ;;  %v589_v1 = vld [vmem:[%s6453_s18 + $0x150] sm:$0xff]  ;;  %v592_v2 = vld [vmem:[%s6453_s18 + $0x168] sm:$0xff]  ;;  %v5938_v11 = vld [vmem:[%s9565_s3 + $0x98] sm:$0xf0] }
  0x48   : > { %v593_v6 = vld [vmem:[%s6453_s18 + $0x170] sm:$0xff]  ;;  %v6882_v8 = vpack.c.bf16 %v592_v2, %v589_v1  ;;  %v5317_v23 = vld [vmem:[%s9565_s3 + $0x78] sm:$0xf]  ;;  %v5305_v45 = vld [vmem:[%s9565_s3 + $0x60] sm:$0xf] }
  0x49   : > { %1302 = vmatpush.bf16.msrb.mxu1 %v5062_v15  ;;  %1805 = vmatpush.bf16.msra.mxu0 %v5342_v63  ;;  %v6884_v9 = vpack.c.bf16 %v593_v6, %v590_v3  ;;  %v5330_v15 = vor.u32 %v5938_v11, %v5329_v10  ;;  %v5217_v60 = vld [vmem:[%s9564_s2 + $0x188] sm:$0xf]  ;;  %v5915_v63 = vld [vmem:[%s9564_s2 + $0x190] sm:$0xf0] }
  0x4a   : > { %1351 = vmatpush.bf16.msrb.mxu3 %v5158_v20  ;;  %v5218_v1 = vor.u32 %v5915_v63, %v5217_v60 }
  0x4c   : > { %1403 = vmatpush.bf16.msra.mxu2 %v5218_v1 }
  0x4d   : > { %1303 = vmatpush.bf16.msrb.mxu1 %v5050_v27  ;;  %1806 = vmatpush.bf16.msra.mxu0 %v5330_v15  ;;  %v5935_v27 = vld [vmem:[%s9565_s3 + $0x80] sm:$0xf0]  ;;  %v5293_v15 = vld [vmem:[%s9565_s3 + $0x48] sm:$0xf] }
  0x4e   : > { %5234 = vmatmul.msk.bf16.gmra.mxu2 %vm979_vm0, %v6656_v53  ;;  %1352 = vmatpush.bf16.msrb.mxu3 %v5146_v30  ;;  %v5318_v28 = vor.u32 %v5935_v27, %v5317_v23 }
  0x51   : > { %1304 = vmatpush.bf16.msrb.mxu1 %v5038_v40  ;;  %1807 = vmatpush.bf16.msra.mxu0 %v5318_v28 }
  0x52   : > { %1353 = vmatpush.bf16.msrb.mxu3 %v5134_v46  ;;  %v5932_v46 = vld [vmem:[%s9565_s3 + $0x68] sm:$0xf0] }
  0x53   : > { %v5306_v51 = vor.u32 %v5932_v46, %v5305_v45 }
  0x55   : > { %1022 = vmatmul.bf16.gmra.mxu0 %v6670_v61  ;;  %1305 = vmatpush.bf16.msrb.mxu1 %v5026_v56 }
  0x56   : > { %1071 = vmatmul.bf16.gmra.mxu1 %v6672_v62  ;;  %1354 = vmatpush.bf16.msrb.mxu3 %v5122_v58 }
  0x57   : > { %1169 = vmatmul.bf16.gmra.mxu3 %v6670_v61  ;;  %1808 = vmatpush.bf16.msra.mxu0 %v5306_v51 }
  0x5e   : > { %5235 = vmatmul.msk.bf16.gmra.mxu2 %vm979_vm0, %v6685_v4 }
  0x65   : > { %1027 = vmatmul.bf16.gmra.mxu0 %v6699_v13 }
  0x66   : > { %1076 = vmatmul.bf16.gmra.mxu1 %v6701_v14 }
  0x67   : > { %1174 = vmatmul.bf16.gmra.mxu3 %v6699_v13 }
  0x6e   : > { %5236 = vmatmul.msk.bf16.gmra.mxu2 %vm979_vm0, %v6708_v17 }
  0x75   : > { %1032 = vmatmul.bf16.gmra.mxu0 %v6722_v25 }
  0x76   : > { %1081 = vmatmul.bf16.gmra.mxu1 %v6724_v26 }
  0x77   : > { %1179 = vmatmul.bf16.gmra.mxu3 %v6722_v25 }
  0x7e   : > { %5237 = vmatmul.msk.bf16.gmra.mxu2 %vm979_vm0, %v6761_v48 }
  0x85   : > { %1037 = vmatmul.bf16.gmra.mxu0 %v6781_v0 }
  0x86   : > { %1086 = vmatmul.bf16.gmra.mxu1 %v6792_v5 }
  0x87   : > { %1184 = vmatmul.bf16.gmra.mxu3 %v6781_v0 }
  0x8e   : > { %5238 = vmatmul.msk.bf16.gmra.mxu2 %vm979_vm0, %v6823_v24 }
  0x95   : > { %1042 = vmatmul.bf16.gmra.mxu0 %v6852_v47 }
  0x96   : > { %1091 = vmatmul.bf16.gmra.mxu1 %v6863_v55 }
  0x97   : > { %1189 = vmatmul.bf16.gmra.mxu3 %v6852_v47 }
  0x9e   : > { %1208 = vmatmul.bf16.vlgmr.msrb.gmra.mxu2 %v6626_v38 }
  0xa1   : > { %v1111_v7 = vpop.f32.mrf.mxu2 }
  0xa5   : > { %1047 = vmatmul.bf16.gmra.mxu0 %v6882_v8 }
  0xa6   : > { %1096 = vmatmul.bf16.gmra.mxu1 %v6884_v9 }
  0xa7   : > { %1194 = vmatmul.bf16.gmra.mxu3 %v6882_v8 }
  0xa9   : > { %v1113_v16 = vpop.f32.mrf.mxu2 }
  0xae   : > { %1213 = vmatmul.bf16.gmra.mxu2 %v6649_v50 }
  0xb1   : > { %v1116_v18 = vpop.f32.mrf.mxu2 }
  0xb2   : > { %v1013_v19 = vpop.f32.mrf.mxu0 }
  0xb3   : > { %v1062_v20 = vpop.f32.mrf.mxu1 }
  0xb4   : > { %v1063_v21 = vadd.f32 %v1062_v20, %v1013_v19 }
  0xb5   : > { %5239 = vmatmul.msk.bf16.vlgmr.msrb.gmra.mxu0 %vm979_vm0, %v6487_v29 }
  0xb6   : > { %v6898_v22 = vadd.f32 %v1111_v7, %v1063_v21  ;;  %1306 = vmatmul.bf16.vlgmr.msrb.gmra.mxu1 %v6624_v37 }
  0xb7   : > { %1355 = vmatmul.bf16.vlgmr.msrb.gmra.mxu3 %v6626_v38 }
  0xb9   : > { %v1118_v30 = vpop.f32.mrf.mxu2 }
  0xba   : > { %v6908_v31 = vpop.f32.mrf.mxu3  ;;  %v1015_v32 = vpop.f32.mrf.mxu0 }
  0xbb   : > { %v1064_v33 = vpop.f32.mrf.mxu1 }
  0xbc   : > { %v1065_v34 = vadd.f32 %v1064_v33, %v1015_v32 }
  0xbe   : > { %v6910_v35 = vadd.f32 %v1113_v16, %v1065_v34  ;;  %1218 = vmatmul.bf16.gmra.mxu2 %v6672_v62  ;;  %v5929_v16 = vld [vmem:[%s9565_s3 + $0x50] sm:$0xf0] }
  0xc1   : > { %v1121_v36 = vpop.f32.mrf.mxu2 }
  0xc2   : > { %v6913_v39 = vpop.f32.mrf.mxu3  ;;  %v1018_v40 = vpop.f32.mrf.mxu0 }
  0xc3   : > { %v1067_v42 = vpop.f32.mrf.mxu1 }
  0xc4   : > { %v1068_v43 = vadd.f32 %v1067_v42, %v1018_v40  ;;  %v5281_v42 = vld [vmem:[%s9565_s3 + $0x30] sm:$0xf] }
  0xc5   : > { %5240 = vmatmul.msk.bf16.gmra.mxu0 %vm979_vm0, %v6586_v12 }
  0xc6   : > { %v6917_v44 = vadd.f32 %v1116_v18, %v1068_v43  ;;  %1311 = vmatmul.bf16.gmra.mxu1 %v6647_v49  ;;  %v5294_v18 = vor.u32 %v5929_v16, %v5293_v15  ;;  %v5926_v43 = vld [vmem:[%s9565_s3 + $0x38] sm:$0xf0] }
  0xc7   : > { %1360 = vmatmul.bf16.gmra.mxu3 %v6649_v50  ;;  %v5282_v45 = vor.u32 %v5926_v43, %v5281_v42 }
  0xc8   : > { %1809 = vmatpush.bf16.msra.mxu0 %v5294_v18  ;;  %v5269_v18 = vld [vmem:[%s9565_s3 + $0x18] sm:$0xf] }
  0xc9   : > { %v1123_v52 = vpop.f32.mrf.mxu2 }
  0xca   : > { %v6927_v54 = vpop.f32.mrf.mxu3  ;;  %v1020_v56 = vpop.f32.mrf.mxu0 }
  0xcb   : > { %v1069_v57 = vpop.f32.mrf.mxu1 }
  0xcc   : > { %v1070_v58 = vadd.f32 %v1069_v57, %v1020_v56  ;;  %1810 = vmatpush.bf16.msra.mxu0 %v5282_v45  ;;  %v5413_v45 = vld [vmem:[%s9565_s3 + $0x138] sm:$0xf] }
  0xce   : > { %v6929_v59 = vadd.f32 %v1118_v30, %v1070_v58  ;;  %1223 = vmatmul.bf16.gmra.mxu2 %v6701_v14 }
  0xd1   : > { %v1126_v2 = vpop.f32.mrf.mxu2 }
  0xd2   : > { %v6938_v3 = vpop.f32.mrf.mxu3  ;;  %v1023_v6 = vpop.f32.mrf.mxu0 }
  0xd3   : > { %v1072_v7 = vpop.f32.mrf.mxu1 }
  0xd4   : > { %v1073_v10 = vadd.f32 %v1072_v7, %v1023_v6  ;;  %v5437_v7 = vld [vmem:[%s9565_s3 + $0x168] sm:$0xf] }
  0xd5   : > { %5241 = vmatmul.msk.bf16.gmra.mxu0 %vm979_vm0, %v6633_v41 }
  0xd6   : > { %v6942_v11 = vadd.f32 %v1121_v36, %v1073_v10  ;;  %1316 = vmatmul.bf16.gmra.mxu1 %v6670_v61  ;;  %v5965_v10 = vld [vmem:[%s9565_s3 + $0x170] sm:$0xf0] }
  0xd7   : > { %1365 = vmatmul.bf16.gmra.mxu3 %v6672_v62  ;;  %v5438_v16 = vor.u32 %v5965_v10, %v5437_v7 }
  0xd9   : > { %v1128_v19 = vpop.f32.mrf.mxu2  ;;  %1854 = vmatpush.bf16.msra.mxu1 %v5438_v16 }
  0xda   : > { %v6952_v20 = vpop.f32.mrf.mxu3  ;;  %v1025_v21 = vpop.f32.mrf.mxu0 }
  0xdb   : > { %v1074_v23 = vpop.f32.mrf.mxu1 }
  0xdc   : > { %v1075_v27 = vadd.f32 %v1074_v23, %v1025_v21 }
  0xde   : > { %v6954_v28 = vadd.f32 %v1123_v52, %v1075_v27  ;;  %1228 = vmatmul.bf16.gmra.mxu2 %v6724_v26  ;;  %v5425_v27 = vld [vmem:[%s9565_s3 + $0x150] sm:$0xf] }
  0xe1   : > { %v1131_v30 = vpop.f32.mrf.mxu2 }
  0xe2   : > { %v6957_v32 = vpop.f32.mrf.mxu3  ;;  %v1028_v33 = vpop.f32.mrf.mxu0 }
  0xe3   : > { %v1077_v34 = vpop.f32.mrf.mxu1 }
  0xe4   : > { %v1078_v36 = vadd.f32 %v1077_v34, %v1028_v33 }
  0xe5   : > { %5242 = vmatmul.msk.bf16.gmra.mxu0 %vm979_vm0, %v6656_v53 }
  0xe6   : > { %v6961_v40 = vadd.f32 %v1126_v2, %v1078_v36  ;;  %1321 = vmatmul.bf16.gmra.mxu1 %v6699_v13 }
  0xe7   : > { %1370 = vmatmul.bf16.gmra.mxu3 %v6701_v14 }
  0xe9   : > { %v1133_v46 = vpop.f32.mrf.mxu2 }
  0xea   : > { %v6971_v51 = vpop.f32.mrf.mxu3  ;;  %v1030_v52 = vpop.f32.mrf.mxu0 }
  0xeb   : > { %v1079_v56 = vpop.f32.mrf.mxu1 }
  0xec   : > { %v1080_v57 = vadd.f32 %v1079_v56, %v1030_v52  ;;  %v5959_v52 = vld [vmem:[%s9565_s3 + $0x140] sm:$0xf0] }
  0xee   : > { %v6973_v58 = vadd.f32 %v1128_v19, %v1080_v57  ;;  %1233 = vmatmul.bf16.gmra.mxu2 %v6792_v5  ;;  %v5923_v19 = vld [vmem:[%s9565_s3 + $0x20] sm:$0xf0]  ;;  %v5414_v57 = vor.u32 %v5959_v52, %v5413_v45  ;;  %v5950_v45 = vld [vmem:[%s9565_s3 + $0xf8] sm:$0xf0] }
  0xef   : > { %v5270_v21 = vor.u32 %v5923_v19, %v5269_v18  ;;  %v5389_v19 = vld [vmem:[%s9565_s3 + $0x108] sm:$0xf] }
  0xf1   : > { %v1136_v60 = vpop.f32.mrf.mxu2  ;;  %1811 = vmatpush.bf16.msra.mxu0 %v5270_v21  ;;  %v5953_v21 = vld [vmem:[%s9565_s3 + $0x110] sm:$0xf0] }
  0xf2   : > { %v6976_v63 = vpop.f32.mrf.mxu3  ;;  %v1033_v1 = vpop.f32.mrf.mxu0 }
  0xf3   : > { %v1082_v2 = vpop.f32.mrf.mxu1 }
  0xf4   : > { %v1083_v6 = vadd.f32 %v1082_v2, %v1033_v1  ;;  %v5401_v2 = vld [vmem:[%s9565_s3 + $0x120] sm:$0xf] }
  0xf5   : > { %5243 = vmatmul.msk.bf16.gmra.mxu0 %vm979_vm0, %v6685_v4 }
  0xf6   : > { %v6986_v15 = vadd.f32 %v1131_v30, %v1083_v6  ;;  %1326 = vmatmul.bf16.gmra.mxu1 %v6722_v25  ;;  %v5962_v30 = vld [vmem:[%s9565_s3 + $0x158] sm:$0xf0]  ;;  %v5956_v6 = vld [vmem:[%s9565_s3 + $0x128] sm:$0xf0] }
  0xf7   : > { %1375 = vmatmul.bf16.gmra.mxu3 %v6724_v26  ;;  %v5426_v36 = vor.u32 %v5962_v30, %v5425_v27  ;;  %v5402_v16 = vor.u32 %v5956_v6, %v5401_v2  ;;  %v5390_v30 = vor.u32 %v5953_v21, %v5389_v19 }
  0xf9   : > { %v1138_v23 = vpop.f32.mrf.mxu2  ;;  %1855 = vmatpush.bf16.msra.mxu1 %v5426_v36  ;;  %v5920_v36 = vld [vmem:[%s9565_s3 + $0x8] sm:$0xf0] }
  0xfa   : > { %v7002_v33 = vpop.f32.mrf.mxu3  ;;  %v1035_v34 = vpop.f32.mrf.mxu0 }
  0xfb   : > { %v1084_v42 = vpop.f32.mrf.mxu1 }
  0xfc   : > { %v1085_v43 = vadd.f32 %v1084_v42, %v1035_v34  ;;  %v5257_v34 = vld [vmem:[%s9565_s3] sm:$0xf] }
  0xfd   : > { %1856 = vmatpush.bf16.msra.mxu1 %v5414_v57  ;;  %v5258_v42 = vor.u32 %v5920_v36, %v5257_v34  ;;  %v5343_v34 = vld [vmem:[%s9565_s3 + $0xb4] sm:$0xf0]  ;;  %v5947_v36 = vld [vmem:[%s9565_s3 + $0xe0] sm:$0xf0] }
  0xfe   : > { %v7010_v56 = vadd.f32 %v1133_v46, %v1085_v43  ;;  %1238 = vmatmul.bf16.gmra.mxu2 %v6863_v55 }
  0xff   : > { %1812 = vmatpush.bf16.msra.mxu0 %v5258_v42 }
 0x100   : > { %9580 = vst [vmem:[#allocation8_spill] sm:$0xff] %v7010_v56  ;;  %v5325_v56 = vld [vmem:[%s9565_s3 + $0x80] sm:$0xf] }
 0x101   : > { %v1141_v1 = vpop.f32.mrf.mxu2  ;;  %1857 = vmatpush.bf16.msra.mxu1 %v5402_v16  ;;  %v5461_v16 = vld [vmem:[%s9565_s3 + $0x198] sm:$0xf] }
 0x102   : > { %v7019_v7 = vpop.f32.mrf.mxu3  ;;  %v1038_v10 = vpop.f32.mrf.mxu0 }
 0x103   : > { %v1087_v18 = vpop.f32.mrf.mxu1 }
 0x104   : > { %v1088_v46 = vadd.f32 %v1087_v18, %v1038_v10  ;;  %v5971_v18 = vld [vmem:[%s9565_s3 + $0x1a0] sm:$0xf0] }
 0x105   : > { %5244 = vmatmul.msk.bf16.gmra.mxu0 %vm979_vm0, %v6708_v17  ;;  %1858 = vmatpush.bf16.msra.mxu1 %v5390_v30  ;;  %v5462_v21 = vor.u32 %v5971_v18, %v5461_v16  ;;  %v5940_v30 = vld [vmem:[%s9565_s3 + $0xac] sm:$0xf] }
 0x106   : > { %v7029_v27 = vadd.f32 %v1136_v60, %v1088_v46  ;;  %1331 = vmatmul.bf16.gmra.mxu1 %v6781_v0  ;;  %v5377_v60 = vld [vmem:[%s9565_s3 + $0xf0] sm:$0xf]  ;;  %v5365_v46 = vld [vmem:[%s9565_s3 + $0xd8] sm:$0xf]  ;;  %v5346_v42 = vor.u32 %v5940_v30, %v5343_v34  ;;  %v5968_v18 = vld [vmem:[%s9565_s3 + $0x188] sm:$0xf0] }
 0x107   : > { %1380 = vmatmul.bf16.gmra.mxu3 %v6792_v5  ;;  %v5378_v2 = vor.u32 %v5950_v45, %v5377_v60  ;;  %v5366_v60 = vor.u32 %v5947_v36, %v5365_v46  ;;  %v5353_v45 = vld [vmem:[%s9565_s3 + $0xc0] sm:$0xf]  ;;  %v5964_v36 = vld [vmem:[%s9565_s3 + $0x16c] sm:$0xf] }
 0x108   : > { %9581 = vst [vmem:[#allocation9_spill] sm:$0xff] %v7029_v27  ;;  %1909 = vmatpush.bf16.msra.mxu3 %v5462_v21  ;;  %1952 = vmatpush.bf16.msrb.mxu2 %v5346_v42  ;;  %v5439_v42 = vld [vmem:[%s9565_s3 + $0x174] sm:$0xf0] }
 0x109   : > { %v1143_v43 = vpop.f32.mrf.mxu2  ;;  %1859 = vmatpush.bf16.msra.mxu1 %v5378_v2  ;;  %v5449_v2 = vld [vmem:[%s9565_s3 + $0x180] sm:$0xf] }
 0x10a   : > { %v7045_v52 = vpop.f32.mrf.mxu3  ;;  %v1040_v57 = vpop.f32.mrf.mxu0  ;;  %v5450_v21 = vor.u32 %v5968_v18, %v5449_v2  ;;  %v5937_v18 = vld [vmem:[%s9565_s3 + $0x94] sm:$0xf] }
 0x10b   : > { %v1089_v6 = vpop.f32.mrf.mxu1 }
 0x10c   : > { %v1090_v10 = vadd.f32 %v1089_v6, %v1040_v57  ;;  %v5944_v57 = vld [vmem:[%s9565_s3 + $0xc8] sm:$0xf0]  ;;  %1910 = vmatpush.bf16.msra.mxu3 %v5450_v21 }
 0x10d   : > { %1860 = vmatpush.bf16.msra.mxu1 %v5366_v60  ;;  %v5354_v16 = vor.u32 %v5944_v57, %v5353_v45  ;;  %v5442_v60 = vor.u32 %v5964_v36, %v5439_v42 }
 0x10e   : > { %v7056_v19 = vadd.f32 %v1138_v23, %v1090_v10  ;;  %1243 = vmatmul.bf16.gmra.mxu2 %v6884_v9 }
 0x10f   : > { %2001 = vmatpush.bf16.msrb.mxu0 %v5442_v60 }
 0x110   : > { %9582 = vst [vmem:[#allocation10_spill] sm:$0xff] %v7056_v19  ;;  %v5931_v19 = vld [vmem:[%s9565_s3 + $0x64] sm:$0xf] }
 0x111   : > { %v1146_v23 = vpop.f32.mrf.mxu2  ;;  %1861 = vmatpush.bf16.msra.mxu1 %v5354_v16 }
 0x112   : > { %v7077_v6 = vpop.f32.mrf.mxu3  ;;  %v1043_v10 = vpop.f32.mrf.mxu0 }
 0x113   : > { %v1092_v46 = vpop.f32.mrf.mxu1 }
 0x114   : > { %v1093_v30 = vadd.f32 %v1092_v46, %v1043_v10  ;;  %v5331_v46 = vld [vmem:[%s9565_s3 + $0x9c] sm:$0xf0] }
 0x115   : > { %5245 = vmatmul.msk.bf16.gmra.mxu0 %vm979_vm0, %v6761_v48  ;;  %v5334_v21 = vor.u32 %v5937_v18, %v5331_v46 }
 0x116   : > { %v7084_v34 = vadd.f32 %v1141_v1, %v1093_v30  ;;  %1336 = vmatmul.bf16.gmra.mxu1 %v6852_v47 }
 0x117   : > { %1385 = vmatmul.bf16.gmra.mxu3 %v6863_v55  ;;  %1953 = vmatpush.bf16.msrb.mxu2 %v5334_v21 }
 0x118   : > { %9583 = vst [vmem:[#allocation11_spill] sm:$0xff] %v7084_v34 }
 0x119   : > { %v1148_v45 = vpop.f32.mrf.mxu2 }
 0x11a   : > { %v7094_v57 = vpop.f32.mrf.mxu3  ;;  %v1045_v2 = vpop.f32.mrf.mxu0 }
 0x11b   : > { %v1094_v1 = vpop.f32.mrf.mxu1 }
 0x11c   : > { %v1095_v10 = vadd.f32 %v1094_v1, %v1045_v2  ;;  %v5961_v1 = vld [vmem:[%s9565_s3 + $0x154] sm:$0xf] }
 0x11e   : > { %v7096_v16 = vadd.f32 %v1143_v43, %v1095_v10  ;;  %5247 = vmatmul.msk.bf16.vlgmr.msra.gmra.mxu2 %vm979_vm0, %v6487_v29  ;;  %v5427_v10 = vld [vmem:[%s9565_s3 + $0x15c] sm:$0xf0] }
 0x11f   : > { %v5430_v18 = vor.u32 %v5961_v1, %v5427_v10  ;;  %v5319_v1 = vld [vmem:[%s9565_s3 + $0x84] sm:$0xf0] }
 0x120   : > { %9584 = vst [vmem:[#allocation12_spill] sm:$0xff] %v7096_v16 }
 0x121   : > { %v1209_v30 = vpop.f32.mrf.mxu2  ;;  %2002 = vmatpush.bf16.msrb.mxu0 %v5430_v18 }
 0x122   : > { %v7106_v36 = vpop.f32.mrf.mxu3  ;;  %v1048_v42 = vpop.f32.mrf.mxu0  ;;  %v1210_v10 = vadd.f32 %v1209_v30, %v6908_v31  ;;  %v5958_v31 = vld [vmem:[%s9565_s3 + $0x13c] sm:$0xf] }
 0x123   : > { %v1097_v60 = vpop.f32.mrf.mxu1 }
 0x124   : > { %v1098_v43 = vadd.f32 %v1097_v60, %v1048_v42 }
 0x125   : > { %5246 = vmatmul.msk.bf16.gmra.mxu0 %vm979_vm0, %v6823_v24 }
 0x126   : > { %v7110_v2 = vadd.f32 %v1146_v23, %v1098_v43  ;;  %1341 = vmatmul.bf16.gmra.mxu1 %v6882_v8 }
 0x127   : > { %1390 = vmatmul.bf16.gmra.mxu3 %v6884_v9 }
 0x128   : > { %9585 = vst [vmem:[#allocation13_spill] sm:$0xff] %v7110_v2  ;;  %v5934_v2 = vld [vmem:[%s9565_s3 + $0x7c] sm:$0xf] }
 0x129   : > { %v1211_v46 = vpop.f32.mrf.mxu2  ;;  %v5322_v16 = vor.u32 %v5934_v2, %v5319_v1 }
 0x12a   : > { %v7120_v21 = vpop.f32.mrf.mxu3  ;;  %v1050_v42 = vpop.f32.mrf.mxu0  ;;  %v1212_v2 = vadd.f32 %v1211_v46, %v6913_v39  ;;  %v5307_v39 = vld [vmem:[%s9565_s3 + $0x6c] sm:$0xf0] }
 0x12b   : > { %v1099_v23 = vpop.f32.mrf.mxu1  ;;  %1954 = vmatpush.bf16.msrb.mxu2 %v5322_v16  ;;  %v5415_v16 = vld [vmem:[%s9565_s3 + $0x144] sm:$0xf0] }
 0x12c   : > { %v1100_v60 = vadd.f32 %v1099_v23, %v1050_v42  ;;  %v5418_v30 = vor.u32 %v5958_v31, %v5415_v16  ;;  %v5310_v31 = vor.u32 %v5931_v19, %v5307_v39  ;;  %v5403_v19 = vld [vmem:[%s9565_s3 + $0x12c] sm:$0xf0] }
 0x12e   : > { %v7122_v43 = vadd.f32 %v1148_v45, %v1100_v60  ;;  %5248 = vmatmul.msk.bf16.gmra.mxu2 %vm979_vm0, %v6586_v12  ;;  %2003 = vmatpush.bf16.msrb.mxu0 %v5418_v30 }
 0x12f   : > { %1955 = vmatpush.bf16.msrb.mxu2 %v5310_v31 }
 0x130   : > { %9586 = vst [vmem:[#allocation14_spill] sm:$0xff] %v7122_v43 }
 0x131   : > { %v1214_v34 = vpop.f32.mrf.mxu2 }
 0x132   : > { %v7133_v18 = vpop.f32.mrf.mxu3  ;;  %v1258_v45 = vpop.f32.mrf.mxu0  ;;  %v1215_v46 = vadd.f32 %v1214_v34, %v6927_v54  ;;  %v5955_v54 = vld [vmem:[%s9565_s3 + $0x124] sm:$0xf] }
 0x133   : > { %v7135_v42 = vadd.f32 %v1258_v45, %v1210_v10  ;;  %v1307_v23 = vpop.f32.mrf.mxu1  ;;  %v5406_v34 = vor.u32 %v5955_v54, %v5403_v19 }
 0x135   : > { %9587 = vst [vmem:[#allocation15_spill] sm:$0xff] %v7135_v42  ;;  %1813 = vmatmul.bf16.vlgmr.msra.gmra.mxu0 %v6624_v37 }
 0x136   : > { %1862 = vmatmul.bf16.vlgmr.msra.gmra.mxu1 %v6626_v38  ;;  %2004 = vmatpush.bf16.msrb.mxu0 %v5406_v34 }
 0x137   : > { %5471 = vmatmul.msk.bf16.vlgmr.msra.gmra.mxu3 %vm979_vm0, %v6487_v29 }
 0x139   : > { %v1216_v60 = vpop.f32.mrf.mxu2 }
 0x13a   : > { %v1356_v1 = vpop.f32.mrf.mxu3  ;;  %v1260_v10 = vpop.f32.mrf.mxu0 }
 0x13b   : > { %v7148_v45 = vadd.f32 %v1356_v1, %v1307_v23  ;;  %v7150_v42 = vadd.f32 %v1260_v10, %v1212_v2  ;;  %v1309_v43 = vpop.f32.mrf.mxu1 }
 0x13d   : > { %9588 = vst [vmem:[#allocation16_spill] sm:$0xff] %v7150_v42  ;;  %v5928_v42 = vld [vmem:[%s9565_s3 + $0x4c] sm:$0xf] }
 0x13e   : > { %5249 = vmatmul.msk.bf16.gmra.mxu2 %vm979_vm0, %v6633_v41 }
 0x141   : > { %v1219_v16 = vpop.f32.mrf.mxu2 }
 0x142   : > { %v1358_v23 = vpop.f32.mrf.mxu3  ;;  %v1263_v30 = vpop.f32.mrf.mxu0 }
 0x143   : > { %v7161_v2 = vadd.f32 %v1358_v23, %v1309_v43  ;;  %v7163_v1 = vadd.f32 %v1263_v30, %v1215_v46  ;;  %v1312_v10 = vpop.f32.mrf.mxu1  ;;  %v1217_v43 = vadd.f32 %v1216_v60, %v6938_v3  ;;  %v5295_v3 = vld [vmem:[%s9565_s3 + $0x54] sm:$0xf0]  ;;  %v1220_v60 = vadd.f32 %v1219_v16, %v6952_v20  ;;  %v5952_v20 = vld [vmem:[%s9565_s3 + $0x10c] sm:$0xf] }
 0x144   : > { %v5298_v54 = vor.u32 %v5928_v42, %v5295_v3  ;;  %v5391_v42 = vld [vmem:[%s9565_s3 + $0x114] sm:$0xf0] }
 0x145   : > { %9589 = vst [vmem:[#allocation17_spill] sm:$0xff] %v7163_v1  ;;  %1818 = vmatmul.bf16.gmra.mxu0 %v6647_v49  ;;  %v5394_v16 = vor.u32 %v5952_v20, %v5391_v42 }
 0x146   : > { %1867 = vmatmul.bf16.gmra.mxu1 %v6649_v50  ;;  %1956 = vmatpush.bf16.msrb.mxu2 %v5298_v54 }
 0x147   : > { %5472 = vmatmul.msk.bf16.gmra.mxu3 %vm979_vm0, %v6586_v12  ;;  %2005 = vmatpush.bf16.msrb.mxu0 %v5394_v16 }
 0x149   : > { %v1221_v39 = vpop.f32.mrf.mxu2 }
 0x14a   : > { %v1361_v46 = vpop.f32.mrf.mxu3  ;;  %v1265_v31 = vpop.f32.mrf.mxu0 }
 0x14b   : > { %v7176_v23 = vadd.f32 %v1361_v46, %v1312_v10  ;;  %v7178_v30 = vadd.f32 %v1265_v31, %v1217_v43  ;;  %v1314_v1 = vpop.f32.mrf.mxu1 }
 0x14d   : > { %9590 = vst [vmem:[#allocation18_spill] sm:$0xff] %v7178_v30  ;;  %v5925_v30 = vld [vmem:[%s9565_s3 + $0x34] sm:$0xf] }
 0x14e   : > { %5250 = vmatmul.msk.bf16.gmra.mxu2 %vm979_vm0, %v6656_v53 }
 0x151   : > { %v1224_v19 = vpop.f32.mrf.mxu2 }
 0x152   : > { %v1363_v10 = vpop.f32.mrf.mxu3  ;;  %v1268_v34 = vpop.f32.mrf.mxu0 }
 0x153   : > { %v7189_v43 = vadd.f32 %v1363_v10, %v1314_v1  ;;  %v7191_v46 = vadd.f32 %v1268_v34, %v1220_v60  ;;  %v1317_v31 = vpop.f32.mrf.mxu1  ;;  %v1222_v1 = vadd.f32 %v1221_v39, %v6957_v32  ;;  %v5283_v32 = vld [vmem:[%s9565_s3 + $0x3c] sm:$0xf0]  ;;  %v1225_v39 = vadd.f32 %v1224_v19, %v6971_v51  ;;  %v5949_v51 = vld [vmem:[%s9565_s3 + $0xf4] sm:$0xf] }
 0x154   : > { %v5286_v20 = vor.u32 %v5925_v30, %v5283_v32  ;;  %v5379_v30 = vld [vmem:[%s9565_s3 + $0xfc] sm:$0xf0] }
 0x155   : > { %9591 = vst [vmem:[#allocation19_spill] sm:$0xff] %v7191_v46  ;;  %1823 = vmatmul.bf16.gmra.mxu0 %v6670_v61  ;;  %v5382_v19 = vor.u32 %v5949_v51, %v5379_v30 }
 0x156   : > { %1872 = vmatmul.bf16.gmra.mxu1 %v6672_v62  ;;  %1957 = vmatpush.bf16.msrb.mxu2 %v5286_v20 }
 0x157   : > { %5473 = vmatmul.msk.bf16.gmra.mxu3 %vm979_vm0, %v6633_v41  ;;  %2006 = vmatpush.bf16.msrb.mxu0 %v5382_v19 }
 0x159   : > { %v1226_v3 = vpop.f32.mrf.mxu2 }
 0x15a   : > { %v1366_v60 = vpop.f32.mrf.mxu3  ;;  %v1270_v54 = vpop.f32.mrf.mxu0 }
 0x15b   : > { %v7204_v10 = vadd.f32 %v1366_v60, %v1317_v31  ;;  %v7206_v34 = vadd.f32 %v1270_v54, %v1222_v1  ;;  %v1319_v46 = vpop.f32.mrf.mxu1 }
 0x15d   : > { %9592 = vst [vmem:[#allocation20_spill] sm:$0xff] %v7206_v34  ;;  %v5922_v34 = vld [vmem:[%s9565_s3 + $0x1c] sm:$0xf] }
 0x15e   : > { %5251 = vmatmul.msk.bf16.gmra.mxu2 %vm979_vm0, %v6685_v4 }
 0x161   : > { %v1229_v42 = vpop.f32.mrf.mxu2 }
 0x162   : > { %v1368_v31 = vpop.f32.mrf.mxu3  ;;  %v1273_v16 = vpop.f32.mrf.mxu0 }
 0x163   : > { %v7217_v1 = vadd.f32 %v1368_v31, %v1319_v46  ;;  %v7219_v60 = vadd.f32 %v1273_v16, %v1225_v39  ;;  %v1322_v54 = vpop.f32.mrf.mxu1  ;;  %v1227_v46 = vadd.f32 %v1226_v3, %v6976_v63  ;;  %v5271_v63 = vld [vmem:[%s9565_s3 + $0x24] sm:$0xf0]  ;;  %v1230_v3 = vadd.f32 %v1229_v42, %v7002_v33  ;;  %v5942_v33 = vld [vmem:[%s9565_s3 + $0xb8] sm:$0xf0] }
 0x164   : > { %v5274_v51 = vor.u32 %v5922_v34, %v5271_v63  ;;  %v5946_v42 = vld [vmem:[%s9565_s3 + $0xdc] sm:$0xf] }
 0x165   : > { %9593 = vst [vmem:[#allocation21_spill] sm:$0xff] %v7219_v60  ;;  %1828 = vmatmul.bf16.gmra.mxu0 %v6699_v13 }
 0x166   : > { %1877 = vmatmul.bf16.gmra.mxu1 %v6701_v14  ;;  %1958 = vmatpush.bf16.msrb.mxu2 %v5274_v51 }
 0x167   : > { %5474 = vmatmul.msk.bf16.gmra.mxu3 %vm979_vm0, %v6656_v53 }
 0x169   : > { %v1231_v32 = vpop.f32.mrf.mxu2 }
 0x16a   : > { %v1371_v39 = vpop.f32.mrf.mxu3  ;;  %v1275_v20 = vpop.f32.mrf.mxu0 }
 0x16b   : > { %v7232_v31 = vadd.f32 %v1371_v39, %v1322_v54  ;;  %v7234_v16 = vadd.f32 %v1275_v20, %v1227_v46  ;;  %v1324_v60 = vpop.f32.mrf.mxu1 }
 0x16d   : > { %9594 = vst [vmem:[#allocation22_spill] sm:$0xff] %v7234_v16  ;;  %v5349_v16 = vld [vmem:[%s9565_s3 + $0xb0] sm:$0xf] }
 0x16e   : > { %5252 = vmatmul.msk.bf16.gmra.mxu2 %vm979_vm0, %v6708_v17  ;;  %v5350_v34 = vor.u32 %v5942_v33, %v5349_v16  ;;  %v5919_v16 = vld [vmem:[%s9565_s3 + $0x4] sm:$0xf] }
 0x170   : > { %2099 = vmatpush.bf16.msrb.mxu3 %v5350_v34 }
 0x171   : > { %v1234_v30 = vpop.f32.mrf.mxu2 }
 0x172   : > { %v1373_v54 = vpop.f32.mrf.mxu3  ;;  %v1278_v19 = vpop.f32.mrf.mxu0 }
 0x173   : > { %v7245_v46 = vadd.f32 %v1373_v54, %v1324_v60  ;;  %v7247_v39 = vadd.f32 %v1278_v19, %v1230_v3  ;;  %v1327_v20 = vpop.f32.mrf.mxu1  ;;  %v5367_v60 = vld [vmem:[%s9565_s3 + $0xe4] sm:$0xf0]  ;;  %v1232_v3 = vadd.f32 %v1231_v32, %v7019_v7  ;;  %v5259_v54 = vld [vmem:[%s9565_s3 + $0xc] sm:$0xf0]  ;;  %v5337_v19 = vld [vmem:[%s9565_s3 + $0x98] sm:$0xf] }
 0x174   : > { %v5370_v63 = vor.u32 %v5946_v42, %v5367_v60  ;;  %v5262_v42 = vor.u32 %v5919_v16, %v5259_v54  ;;  %v5939_v7 = vld [vmem:[%s9565_s3 + $0xa0] sm:$0xf0] }
 0x175   : > { %9595 = vst [vmem:[#allocation23_spill] sm:$0xff] %v7247_v39  ;;  %1833 = vmatmul.bf16.gmra.mxu0 %v6722_v25  ;;  %v5338_v27 = vor.u32 %v5939_v7, %v5337_v19 }
 0x176   : > { %1882 = vmatmul.bf16.gmra.mxu1 %v6724_v26  ;;  %2007 = vmatpush.bf16.msrb.mxu0 %v5370_v63  ;;  %v5936_v63 = vld [vmem:[%s9565_s3 + $0x88] sm:$0xf0] }
 0x177   : > { %5475 = vmatmul.msk.bf16.gmra.mxu3 %vm979_vm0, %v6685_v4  ;;  %1959 = vmatpush.bf16.msrb.mxu2 %v5262_v42  ;;  %v5326_v16 = vor.u32 %v5936_v63, %v5325_v56 }
 0x178   : > { %2100 = vmatpush.bf16.msrb.mxu3 %v5338_v27  ;;  %v5313_v27 = vld [vmem:[%s9565_s3 + $0x68] sm:$0xf] }
 0x179   : > { %v1236_v51 = vpop.f32.mrf.mxu2 }
 0x17a   : > { %v1376_v33 = vpop.f32.mrf.mxu3  ;;  %v1280_v39 = vpop.f32.mrf.mxu0 }
 0x17b   : > { %v7278_v32 = vadd.f32 %v1376_v33, %v1327_v20  ;;  %v7280_v34 = vadd.f32 %v1280_v39, %v1232_v3  ;;  %v1329_v60 = vpop.f32.mrf.mxu1  ;;  %v1235_v20 = vadd.f32 %v1234_v30, %v7045_v52  ;;  %v5933_v3 = vld [vmem:[%s9565_s3 + $0x70] sm:$0xf0]  ;;  %v5301_v52 = vld [vmem:[%s9565_s3 + $0x50] sm:$0xf]  ;;  %v5930_v30 = vld [vmem:[%s9565_s3 + $0x58] sm:$0xf0] }
 0x17c   : > { %2101 = vmatpush.bf16.msrb.mxu3 %v5326_v16  ;;  %v5314_v33 = vor.u32 %v5933_v3, %v5313_v27  ;;  %v5302_v63 = vor.u32 %v5930_v30, %v5301_v52  ;;  %v5355_v16 = vld [vmem:[%s9565_s3 + $0xcc] sm:$0xf0]  ;;  %v1237_v27 = vadd.f32 %v1236_v51, %v7077_v6  ;;  %v5970_v6 = vld [vmem:[%s9565_s3 + $0x19c] sm:$0xf]  ;;  %v5463_v51 = vld [vmem:[%s9565_s3 + $0x1a4] sm:$0xf0] }
 0x17d   : > { %9596 = vst [vmem:[#allocation24_spill] sm:$0xff] %v7280_v34 }
 0x17e   : > { %5253 = vmatmul.msk.bf16.gmra.mxu2 %vm979_vm0, %v6761_v48 }
 0x180   : > { %2102 = vmatpush.bf16.msrb.mxu3 %v5314_v33 }
 0x181   : > { %v1239_v39 = vpop.f32.mrf.mxu2 }
 0x182   : > { %v1378_v54 = vpop.f32.mrf.mxu3  ;;  %v1283_v19 = vpop.f32.mrf.mxu0 }
 0x183   : > { %v7297_v42 = vadd.f32 %v1378_v54, %v1329_v60  ;;  %v7299_v7 = vadd.f32 %v1283_v19, %v1235_v20  ;;  %v1332_v56 = vpop.f32.mrf.mxu1  ;;  %v5943_v60 = vld [vmem:[%s9565_s3 + $0xc4] sm:$0xf]  ;;  %v5289_v54 = vld [vmem:[%s9565_s3 + $0x38] sm:$0xf] }
 0x184   : > { %v5358_v20 = vor.u32 %v5943_v60, %v5355_v16  ;;  %2103 = vmatpush.bf16.msrb.mxu3 %v5302_v63  ;;  %v5927_v19 = vld [vmem:[%s9565_s3 + $0x40] sm:$0xf0]  ;;  %v5277_v63 = vld [vmem:[%s9565_s3 + $0x20] sm:$0xf]  ;;  %v5966_v16 = vld [vmem:[%s9565_s3 + $0x178] sm:$0xf0] }
 0x185   : > { %9597 = vst [vmem:[#allocation25_spill] sm:$0xff] %v7299_v7  ;;  %1838 = vmatmul.bf16.gmra.mxu0 %v6781_v0  ;;  %v5290_v30 = vor.u32 %v5927_v19, %v5289_v54  ;;  %v1240_v54 = vadd.f32 %v1239_v39, %v7094_v57 }
 0x186   : > { %1887 = vmatmul.bf16.gmra.mxu1 %v6792_v5  ;;  %2008 = vmatpush.bf16.msrb.mxu0 %v5358_v20  ;;  %v5466_v20 = vor.u32 %v5970_v6, %v5463_v51  ;;  %v5451_v6 = vld [vmem:[%s9565_s3 + $0x18c] sm:$0xf0]  ;;  %v5265_v51 = vld [vmem:[%s9565_s3 + $0x8] sm:$0xf] }
 0x187   : > { %5476 = vmatmul.msk.bf16.gmra.mxu3 %vm979_vm0, %v6708_v17 }
 0x188   : > { %2104 = vmatpush.bf16.msrb.mxu3 %v5290_v30  ;;  %2056 = vmatpush.bf16.msrb.mxu1 %v5466_v20  ;;  %v5967_v30 = vld [vmem:[%s9565_s3 + $0x184] sm:$0xf] }
 0x189   : > { %v1241_v3 = vpop.f32.mrf.mxu2  ;;  %v5454_v39 = vor.u32 %v5967_v30, %v5451_v6 }
 0x18a   : > { %v1381_v33 = vpop.f32.mrf.mxu3  ;;  %v1285_v52 = vpop.f32.mrf.mxu0 }
 0x18b   : > { %v7324_v7 = vadd.f32 %v1381_v33, %v1332_v56  ;;  %v7326_v34 = vadd.f32 %v1285_v52, %v1237_v27  ;;  %v1334_v60 = vpop.f32.mrf.mxu1  ;;  %v5445_v56 = vld [vmem:[%s9565_s3 + $0x170] sm:$0xf]  ;;  %v5924_v27 = vld [vmem:[%s9565_s3 + $0x28] sm:$0xf0] }
 0x18c   : > { %v5446_v19 = vor.u32 %v5966_v16, %v5445_v56  ;;  %v5278_v33 = vor.u32 %v5924_v27, %v5277_v63  ;;  %v5921_v63 = vld [vmem:[%s9565_s3 + $0x10] sm:$0xf0]  ;;  %2057 = vmatpush.bf16.msrb.mxu1 %v5454_v39 }
 0x18d   : > { %9598 = vst [vmem:[#allocation26_spill] sm:$0xff] %v7326_v34  ;;  %v5266_v27 = vor.u32 %v5921_v63, %v5265_v51  ;;  %v5433_v63 = vld [vmem:[%s9565_s3 + $0x158] sm:$0xf] }
 0x18e   : > { %5254 = vmatmul.msk.bf16.gmra.mxu2 %vm979_vm0, %v6823_v24  ;;  %2105 = vmatpush.bf16.msrb.mxu3 %v5278_v33 }
 0x18f   : > { %2148 = vmatpush.bf16.msra.mxu2 %v5446_v19  ;;  %v5469_v19 = vld [vmem:[%s9565_s3 + $0x1a0] sm:$0xf] }
 0x191   : > { %v1244_v52 = vpop.f32.mrf.mxu2 }
 0x192   : > { %v1383_v34 = vpop.f32.mrf.mxu3  ;;  %v1288_v57 = vpop.f32.mrf.mxu0  ;;  %2106 = vmatpush.bf16.msrb.mxu3 %v5266_v27  ;;  %v5963_v27 = vld [vmem:[%s9565_s3 + $0x160] sm:$0xf0] }
 0x193   : > { %v7361_v56 = vadd.f32 %v1383_v34, %v1334_v60  ;;  %v7363_v16 = vadd.f32 %v1288_v57, %v1240_v54  ;;  %v1337_v20 = vpop.f32.mrf.mxu1  ;;  %v5972_v34 = vld [vmem:[%s9565_s3 + $0x1a8] sm:$0xf0]  ;;  %v1242_v54 = vadd.f32 %v1241_v3, %v7106_v36  ;;  %v1245_v36 = vadd.f32 %v1244_v52, %v7120_v21 }
 0x194   : > { %v5470_v60 = vor.u32 %v5972_v34, %v5469_v19  ;;  %v5434_v3 = vor.u32 %v5963_v27, %v5433_v63 }
 0x195   : > { %1843 = vmatmul.bf16.gmra.mxu0 %v6852_v47 }
 0x196   : > { %1892 = vmatmul.bf16.gmra.mxu1 %v6863_v55  ;;  %2203 = vmatpush.bf16.msra.mxu0 %v5470_v60 }
 0x197   : > { %5477 = vmatmul.msk.bf16.gmra.mxu3 %vm979_vm0, %v6761_v48  ;;  %2149 = vmatpush.bf16.msra.mxu2 %v5434_v3 }
 0x199   : > { %v1246_v33 = vpop.f32.mrf.mxu2 }
 0x19a   : > { %v1386_v30 = vpop.f32.mrf.mxu3  ;;  %v1290_v6 = vpop.f32.mrf.mxu0  ;;  %v1247_v21 = vadd.f32 %v1246_v33, %v7133_v18  ;;  %v5960_v18 = vld [vmem:[%s9565_s3 + $0x148] sm:$0xf0] }
 0x19b   : > { %v7376_v51 = vadd.f32 %v1386_v30, %v1337_v20  ;;  %v7378_v57 = vadd.f32 %v1290_v6, %v1242_v54  ;;  %v1339_v39 = vpop.f32.mrf.mxu1 }
 0x19e   : > { %1960 = vmatmul.bf16.vlgmr.msrb.gmra.mxu2 %v6624_v37 }
 0x1a1   : > { %v1405_v19 = vpop.f32.mrf.mxu2 }
 0x1a2   : > { %v1388_v20 = vpop.f32.mrf.mxu3  ;;  %v7389_v34 = vadd.f32 %v1405_v19, %v7148_v45  ;;  %v1293_v60 = vpop.f32.mrf.mxu0  ;;  %v5421_v19 = vld [vmem:[%s9565_s3 + $0x140] sm:$0xf] }
 0x1a3   : > { %v7391_v54 = vadd.f32 %v1388_v20, %v1339_v39  ;;  %v7393_v30 = vadd.f32 %v1293_v60, %v1245_v36  ;;  %v1342_v6 = vpop.f32.mrf.mxu1  ;;  %v5422_v33 = vor.u32 %v5960_v18, %v5421_v19 }
 0x1a5   : > { %1848 = vmatmul.bf16.gmra.mxu0 %v6882_v8  ;;  %2150 = vmatpush.bf16.msra.mxu2 %v5422_v33 }
 0x1a6   : > { %1897 = vmatmul.bf16.gmra.mxu1 %v6884_v9 }
 0x1a7   : > { %5478 = vmatmul.msk.bf16.gmra.mxu3 %vm979_vm0, %v6823_v24 }
 0x1a9   : > { %v1407_v52 = vpop.f32.mrf.mxu2 }
 0x1aa   : > { %v1391_v63 = vpop.f32.mrf.mxu3  ;;  %v7401_v45 = vadd.f32 %v1407_v52, %v7161_v2  ;;  %v1295_v27 = vpop.f32.mrf.mxu0 }
 0x1ab   : > { %v7403_v39 = vadd.f32 %v1391_v63, %v1342_v6  ;;  %v7405_v36 = vadd.f32 %v1295_v27, %v1247_v21  ;;  %v1344_v3 = vpop.f32.mrf.mxu1 }
 0x1ae   : > { %1965 = vmatmul.bf16.gmra.mxu2 %v6647_v49 }
 0x1b1   : > { %v1410_v20 = vpop.f32.mrf.mxu2 }
 0x1b2   : > { %v1393_v2 = vpop.f32.mrf.mxu3  ;;  %v7415_v60 = vadd.f32 %v1410_v20, %v7176_v23  ;;  %v1814_v6 = vpop.f32.mrf.mxu0 }
 0x1b3   : > { %v7417_v21 = vadd.f32 %v1393_v2, %v1344_v3  ;;  %v1863_v52 = vpop.f32.mrf.mxu1  ;;  %v5409_v2 = vld [vmem:[%s9565_s3 + $0x128] sm:$0xf] }
 0x1b4   : > { %9599 = vst [vmem:[#allocation27_spill] sm:$0xff] %v7415_v60  ;;  %v1864_v63 = vadd.f32 %v1863_v52, %v1814_v6  ;;  %v5957_v6 = vld [vmem:[%s9565_s3 + $0x130] sm:$0xf0] }
 0x1b5   : > { %2009 = vmatmul.bf16.vlgmr.msrb.gmra.mxu0 %v6626_v38 }
 0x1b6   : > { %5479 = vmatmul.msk.bf16.vlgmr.msrb.gmra.mxu1 %vm979_vm0, %v6487_v29 }
 0x1b7   : > { %2107 = vmatmul.bf16.vlgmr.msrb.gmra.mxu3 %v6624_v37 }
 0x1b9   : > { %v1412_v27 = vpop.f32.mrf.mxu2 }
 0x1ba   : > { %v7424_v19 = vadd.f32 %v1412_v27, %v7189_v43  ;;  %v1912_v18 = vpop.f32.mrf.mxu3  ;;  %v1816_v33 = vpop.f32.mrf.mxu0  ;;  %v5410_v43 = vor.u32 %v5957_v6, %v5409_v2 }
 0x1bb   : > { %v1913_v23 = vadd.f32 %v1912_v18, %v1864_v63  ;;  %v1865_v20 = vpop.f32.mrf.mxu1 }
 0x1bc   : > { %v1866_v60 = vadd.f32 %v1865_v20, %v1816_v33  ;;  %2151 = vmatpush.bf16.msra.mxu2 %v5410_v43 }
 0x1bd   : > { %v7427_v3 = vmul.f32 %v1913_v23, %v6898_v22 }
 0x1be   : > { %1970 = vmatmul.bf16.gmra.mxu2 %v6670_v61 }
 0x1bf   : > { %9600 = vst [vmem:[#allocation28_spill] sm:$0xff] %v7427_v3 }
 0x1c1   : > { %v1415_v52 = vpop.f32.mrf.mxu2 }
 0x1c2   : > { %v7437_v63 = vadd.f32 %v1415_v52, %v7204_v10  ;;  %v1914_v27 = vpop.f32.mrf.mxu3  ;;  %v1819_v18 = vpop.f32.mrf.mxu0 }
 0x1c3   : > { %v1915_v22 = vadd.f32 %v1914_v27, %v1866_v60  ;;  %v1868_v33 = vpop.f32.mrf.mxu1 }
 0x1c4   : > { %v1869_v23 = vadd.f32 %v1868_v33, %v1819_v18 }
 0x1c5   : > { %v7440_v20 = vmul.f32 %v1915_v22, %v6910_v35  ;;  %2014 = vmatmul.bf16.gmra.mxu0 %v6649_v50  ;;  %v5397_v35 = vld [vmem:[%s9565_s3 + $0x110] sm:$0xf]  ;;  %v5954_v22 = vld [vmem:[%s9565_s3 + $0x118] sm:$0xf0] }
 0x1c6   : > { %5480 = vmatmul.msk.bf16.gmra.mxu1 %vm979_vm0, %v6586_v12 }
 0x1c7   : > { %9601 = vst [vmem:[#allocation29_spill] sm:$0xff] %v7440_v20  ;;  %2112 = vmatmul.bf16.gmra.mxu3 %v6647_v49  ;;  %v9626_v20 = vld [vmem:[#allocation14_spill] sm:$0xff] }
 0x1c9   : > { %v1417_v2 = vpop.f32.mrf.mxu2 }
 0x1ca   : > { %v7447_v6 = vadd.f32 %v1417_v2, %v7217_v1  ;;  %v1917_v10 = vpop.f32.mrf.mxu3  ;;  %v1821_v43 = vpop.f32.mrf.mxu0  ;;  %v5398_v1 = vor.u32 %v5954_v22, %v5397_v35 }
 0x1cb   : > { %v1918_v52 = vadd.f32 %v1917_v10, %v1869_v23  ;;  %v1870_v60 = vpop.f32.mrf.mxu1 }
 0x1cc   : > { %v1871_v27 = vadd.f32 %v1870_v60, %v1821_v43  ;;  %2152 = vmatpush.bf16.msra.mxu2 %v5398_v1 }
 0x1cd   : > { %v7450_v18 = vmul.f32 %v1918_v52, %v6917_v44 }
 0x1ce   : > { %1975 = vmatmul.bf16.gmra.mxu2 %v6699_v13 }
 0x1cf   : > { %9602 = vst [vmem:[#allocation30_spill] sm:$0xff] %v7450_v18 }
 0x1d1   : > { %v1420_v33 = vpop.f32.mrf.mxu2 }
 0x1d2   : > { %v7460_v23 = vadd.f32 %v1420_v33, %v7232_v31  ;;  %v1919_v2 = vpop.f32.mrf.mxu3  ;;  %v1824_v10 = vpop.f32.mrf.mxu0  ;;  %v5457_v31 = vld [vmem:[%s9565_s3 + $0x188] sm:$0xf] }
 0x1d3   : > { %v1920_v44 = vadd.f32 %v1919_v2, %v1871_v27  ;;  %v1873_v43 = vpop.f32.mrf.mxu1  ;;  %v5969_v27 = vld [vmem:[%s9565_s3 + $0x190] sm:$0xf0] }
 0x1d4   : > { %v1874_v52 = vadd.f32 %v1873_v43, %v1824_v10  ;;  %v5458_v35 = vor.u32 %v5969_v27, %v5457_v31 }
 0x1d5   : > { %v7463_v60 = vmul.f32 %v1920_v44, %v6929_v59  ;;  %2019 = vmatmul.bf16.gmra.mxu0 %v6672_v62 }
 0x1d6   : > { %5481 = vmatmul.msk.bf16.gmra.mxu1 %vm979_vm0, %v6633_v41  ;;  %2204 = vmatpush.bf16.msra.mxu0 %v5458_v35 }
 0x1d7   : > { %9603 = vst [vmem:[#allocation31_spill] sm:$0xff] %v7463_v60  ;;  %2117 = vmatmul.bf16.gmra.mxu3 %v6670_v61  ;;  %v5385_v60 = vld [vmem:[%s9565_s3 + $0xf8] sm:$0xf] }
 0x1d9   : > { %v1422_v22 = vpop.f32.mrf.mxu2 }
 0x1da   : > { %v7476_v59 = vadd.f32 %v1422_v22, %v7245_v46  ;;  %v1922_v1 = vpop.f32.mrf.mxu3  ;;  %v1826_v33 = vpop.f32.mrf.mxu0  ;;  %v5951_v46 = vld [vmem:[%s9565_s3 + $0x100] sm:$0xf0] }
 0x1db   : > { %v1923_v2 = vadd.f32 %v1922_v1, %v1874_v52  ;;  %v1875_v10 = vpop.f32.mrf.mxu1  ;;  %v5386_v31 = vor.u32 %v5951_v46, %v5385_v60 }
 0x1dc   : > { %v1876_v44 = vadd.f32 %v1875_v10, %v1826_v33 }
 0x1dd   : > { %v7479_v43 = vmul.f32 %v1923_v2, %v6942_v11  ;;  %2153 = vmatpush.bf16.msra.mxu2 %v5386_v31 }
 0x1de   : > { %1980 = vmatmul.bf16.gmra.mxu2 %v6722_v25 }
 0x1df   : > { %9604 = vst [vmem:[#allocation32_spill] sm:$0xff] %v7479_v43  ;;  %v9622_v43 = vld [vmem:[#allocation12_spill] sm:$0xff] }
 0x1e1   : > { %v1425_v27 = vpop.f32.mrf.mxu2 }
 0x1e2   : > { %v7489_v52 = vadd.f32 %v1425_v27, %v7278_v32  ;;  %v1924_v35 = vpop.f32.mrf.mxu3  ;;  %v1829_v22 = vpop.f32.mrf.mxu0 }
 0x1e3   : > { %v1925_v11 = vadd.f32 %v1924_v35, %v1876_v44  ;;  %v1878_v1 = vpop.f32.mrf.mxu1 }
 0x1e4   : > { %v1879_v33 = vadd.f32 %v1878_v1, %v1829_v22  ;;  %v5948_v22 = vld [vmem:[%s9565_s3 + $0xe8] sm:$0xf0] }
 0x1e5   : > { %v7492_v2 = vmul.f32 %v1925_v11, %v6954_v28  ;;  %2024 = vmatmul.bf16.gmra.mxu0 %v6701_v14  ;;  %v5373_v28 = vld [vmem:[%s9565_s3 + $0xe0] sm:$0xf] }
 0x1e6   : > { %5482 = vmatmul.msk.bf16.gmra.mxu1 %vm979_vm0, %v6656_v53 }
 0x1e7   : > { %9605 = vst [vmem:[#allocation33_spill] sm:$0xff] %v7492_v2  ;;  %2122 = vmatmul.bf16.gmra.mxu3 %v6699_v13  ;;  %v5989_v2 = vld [vmem:[%s9566_s4 + $0x80] sm:$0xf0] }
 0x1e9   : > { %v1427_v60 = vpop.f32.mrf.mxu2 }
 0x1ea   : > { %v7499_v10 = vadd.f32 %v1427_v60, %v7297_v42  ;;  %v1927_v32 = vpop.f32.mrf.mxu3  ;;  %v1831_v46 = vpop.f32.mrf.mxu0  ;;  %v5374_v42 = vor.u32 %v5948_v22, %v5373_v28  ;;  %v5995_v28 = vld [vmem:[%s9566_s4 + $0xb0] sm:$0xf0] }
 0x1eb   : > { %v1928_v31 = vadd.f32 %v1927_v32, %v1879_v33  ;;  %v1880_v44 = vpop.f32.mrf.mxu1 }
 0x1ec   : > { %v1881_v27 = vadd.f32 %v1880_v44, %v1831_v46  ;;  %2154 = vmatpush.bf16.msra.mxu2 %v5374_v42  ;;  %v5581_v44 = vld [vmem:[%s9566_s4 + $0xa8] sm:$0xf] }
 0x1ed   : > { %v7502_v35 = vmul.f32 %v1928_v31, %v6961_v40 }
 0x1ee   : > { %1985 = vmatmul.bf16.gmra.mxu2 %v6781_v0 }
 0x1ef   : > { %9606 = vst [vmem:[#allocation34_spill] sm:$0xff] %v7502_v35 }
 0x1f1   : > { %v1430_v11 = vpop.f32.mrf.mxu2 }
 0x1f2   : > { %v7512_v1 = vadd.f32 %v1430_v11, %v7324_v7  ;;  %v1929_v33 = vpop.f32.mrf.mxu3  ;;  %v1834_v60 = vpop.f32.mrf.mxu0  ;;  %v5677_v7 = vld [vmem:[%s9566_s4 + $0x168] sm:$0xf] }
 0x1f3   : > { %v1930_v40 = vadd.f32 %v1929_v33, %v1881_v27  ;;  %v1883_v32 = vpop.f32.mrf.mxu1  ;;  %v5582_v27 = vor.u32 %v5995_v28, %v5581_v44  ;;  %v5361_v11 = vld [vmem:[%s9565_s3 + $0xc8] sm:$0xf]  ;;  %v5945_v33 = vld [vmem:[%s9565_s3 + $0xd0] sm:$0xf0] }
 0x1f4   : > { %v1884_v46 = vadd.f32 %v1883_v32, %v1834_v60  ;;  %v5569_v60 = vld [vmem:[%s9566_s4 + $0x90] sm:$0xf]  ;;  %v5362_v28 = vor.u32 %v5945_v33, %v5361_v11  ;;  %v5557_v33 = vld [vmem:[%s9566_s4 + $0x78] sm:$0xf] }
 0x1f5   : > { %v7515_v31 = vmul.f32 %v1930_v40, %v6973_v58  ;;  %2029 = vmatmul.bf16.gmra.mxu0 %v6724_v26  ;;  %v6019_v58 = vld [vmem:[%s9566_s4 + $0x170] sm:$0xf0]  ;;  %2606 = vmatpush.bf16.msra.mxu1 %v5582_v27  ;;  %v5665_v27 = vld [vmem:[%s9566_s4 + $0x150] sm:$0xf] }
 0x1f6   : > { %5483 = vmatmul.msk.bf16.gmra.mxu1 %vm979_vm0, %v6685_v4  ;;  %v5678_v22 = vor.u32 %v6019_v58, %v5677_v7  ;;  %v5992_v7 = vld [vmem:[%s9566_s4 + $0x98] sm:$0xf0]  ;;  %2155 = vmatpush.bf16.msra.mxu2 %v5362_v28 }
 0x1f7   : > { %9607 = vst [vmem:[#allocation35_spill] sm:$0xff] %v7515_v31  ;;  %2127 = vmatmul.bf16.gmra.mxu3 %v6722_v25  ;;  %v6016_v58 = vld [vmem:[%s9566_s4 + $0x158] sm:$0xf0]  ;;  %v5570_v35 = vor.u32 %v5992_v7, %v5569_v60 }
 0x1f8   : > { %2655 = vmatpush.bf16.msra.mxu3 %v5678_v22 }
 0x1f9   : > { %v1432_v42 = vpop.f32.mrf.mxu2  ;;  %2607 = vmatpush.bf16.msra.mxu1 %v5570_v35 }
 0x1fa   : > { %v7543_v40 = vadd.f32 %v1432_v42, %v7361_v56  ;;  %v1932_v32 = vpop.f32.mrf.mxu3  ;;  %v1836_v44 = vpop.f32.mrf.mxu0  ;;  %v5666_v56 = vor.u32 %v6016_v58, %v5665_v27 }
 0x1fb   : > { %v1933_v22 = vadd.f32 %v1932_v32, %v1884_v46  ;;  %v1885_v31 = vpop.f32.mrf.mxu1  ;;  %v5653_v46 = vld [vmem:[%s9566_s4 + $0x138] sm:$0xf]  ;;  %v5545_v32 = vld [vmem:[%s9566_s4 + $0x60] sm:$0xf] }
 0x1fc   : > { %9608 = vst [vmem:[#allocation36_spill] sm:$0xff] %v7543_v40  ;;  %v1886_v42 = vadd.f32 %v1885_v31, %v1836_v44  ;;  %2656 = vmatpush.bf16.msra.mxu3 %v5666_v56  ;;  %v5558_v31 = vor.u32 %v5989_v2, %v5557_v33  ;;  %v5986_v44 = vld [vmem:[%s9566_s4 + $0x68] sm:$0xf0]  ;;  %v5641_v2 = vld [vmem:[%s9566_s4 + $0x120] sm:$0xf] }
 0x1fd   : > { %v7555_v11 = vmul.f32 %v1933_v22, %v6986_v15  ;;  %v6013_v15 = vld [vmem:[%s9566_s4 + $0x140] sm:$0xf0]  ;;  %v5546_v58 = vor.u32 %v5986_v44, %v5545_v32  ;;  %v6010_v22 = vld [vmem:[%s9566_s4 + $0x128] sm:$0xf0]  ;;  %v6007_v44 = vld [vmem:[%s9566_s4 + $0x110] sm:$0xf0] }
 0x1fe   : > { %1990 = vmatmul.bf16.gmra.mxu2 %v6852_v47  ;;  %v5654_v35 = vor.u32 %v6013_v15, %v5653_v46  ;;  %2608 = vmatpush.bf16.msra.mxu1 %v5558_v31  ;;  %v5642_v46 = vor.u32 %v6010_v22, %v5641_v2  ;;  %v9611_v15 = vld [vmem:[#allocation8_spill] sm:$0xff]  ;;  %v5617_v22 = vld [vmem:[%s9566_s4 + $0xf0] sm:$0xf] }
 0x1ff   : > { %9609 = vst [vmem:[#allocation37_spill] sm:$0xff] %v7555_v11 }
 0x200   : > { %2657 = vmatpush.bf16.msra.mxu3 %v5654_v35 }
 0x201   : > { %v1435_v60 = vpop.f32.mrf.mxu2 }
 0x202   : > { %v7580_v28 = vadd.f32 %v1435_v60, %v7376_v51  ;;  %v1934_v7 = vpop.f32.mrf.mxu3  ;;  %v1839_v27 = vpop.f32.mrf.mxu0  ;;  %2609 = vmatpush.bf16.msra.mxu1 %v5546_v58  ;;  %v5533_v51 = vld [vmem:[%s9566_s4 + $0x48] sm:$0xf]  ;;  %v5983_v60 = vld [vmem:[%s9566_s4 + $0x50] sm:$0xf0]  ;;  %v5980_v58 = vld [vmem:[%s9566_s4 + $0x38] sm:$0xf0] }
 0x203   : > { %v1935_v56 = vadd.f32 %v1934_v7, %v1886_v42  ;;  %v1888_v33 = vpop.f32.mrf.mxu1  ;;  %v5629_v42 = vld [vmem:[%s9566_s4 + $0x108] sm:$0xf]  ;;  %v5534_v32 = vor.u32 %v5983_v60, %v5533_v51  ;;  %v6004_v51 = vld [vmem:[%s9566_s4 + $0xf8] sm:$0xf0] }
 0x204   : > { %9610 = vst [vmem:[#allocation38_spill] sm:$0xff] %v7580_v28  ;;  %v1889_v31 = vadd.f32 %v1888_v33, %v1839_v27  ;;  %2658 = vmatpush.bf16.msra.mxu3 %v5642_v46  ;;  %v5630_v2 = vor.u32 %v6007_v44, %v5629_v42  ;;  %v5521_v27 = vld [vmem:[%s9566_s4 + $0x30] sm:$0xf] }
 0x205   : > { %v7586_v35 = vmul.f32 %v1935_v56, %v9611_v15  ;;  %2034 = vmatmul.bf16.gmra.mxu0 %v6792_v5  ;;  %v5522_v15 = vor.u32 %v5980_v58, %v5521_v27  ;;  %v6001_v58 = vld [vmem:[%s9566_s4 + $0xe0] sm:$0xf0] }
 0x206   : > { %5484 = vmatmul.msk.bf16.gmra.mxu1 %vm979_vm0, %v6708_v17 }
 0x207   : > { %9612 = vst [vmem:[#allocation8_spill] sm:$0xff] %v7586_v35  ;;  %2132 = vmatmul.bf16.gmra.mxu3 %v6781_v0  ;;  %2610 = vmatpush.bf16.msra.mxu1 %v5534_v32  ;;  %v5618_v32 = vor.u32 %v6004_v51, %v5617_v22  ;;  %v9614_v35 = vld [vmem:[#allocation9_spill] sm:$0xff] }
 0x208   : > { %2659 = vmatpush.bf16.msra.mxu3 %v5630_v2  ;;  %v5977_v2 = vld [vmem:[%s9566_s4 + $0x20] sm:$0xf0]  ;;  %v5974_v51 = vld [vmem:[%s9566_s4 + $0x8] sm:$0xf0] }
 0x209   : > { %v1437_v7 = vpop.f32.mrf.mxu2 }
 0x20a   : > { %v7614_v56 = vadd.f32 %v1437_v7, %v7391_v54  ;;  %v1937_v33 = vpop.f32.mrf.mxu3  ;;  %v1841_v46 = vpop.f32.mrf.mxu0  ;;  %v5509_v54 = vld [vmem:[%s9566_s4 + $0x18] sm:$0xf] }
 0x20b   : > { %v1938_v60 = vadd.f32 %v1937_v33, %v1889_v31  ;;  %v1890_v42 = vpop.f32.mrf.mxu1  ;;  %2611 = vmatpush.bf16.msra.mxu1 %v5522_v15  ;;  %v5605_v7 = vld [vmem:[%s9566_s4 + $0xd8] sm:$0xf]  ;;  %v5510_v27 = vor.u32 %v5977_v2, %v5509_v54  ;;  %v5497_v15 = vld [vmem:[%s9566_s4] sm:$0xf] }
 0x20c   : > { %9613 = vst [vmem:[#allocation39_spill] sm:$0xff] %v7614_v56  ;;  %v1891_v44 = vadd.f32 %v1890_v42, %v1841_v46  ;;  %2660 = vmatpush.bf16.msra.mxu3 %v5618_v32  ;;  %v5701_v31 = vld [vmem:[%s9566_s4 + $0x198] sm:$0xf]  ;;  %v5606_v33 = vor.u32 %v6001_v58, %v5605_v7  ;;  %v5498_v2 = vor.u32 %v5974_v51, %v5497_v15  ;;  %v5998_v7 = vld [vmem:[%s9566_s4 + $0xc8] sm:$0xf0] }
 0x20d   : > { %v7620_v11 = vmul.f32 %v1938_v60, %v9614_v35  ;;  %v6025_v35 = vld [vmem:[%s9566_s4 + $0x1a0] sm:$0xf0]  ;;  %v5593_v60 = vld [vmem:[%s9566_s4 + $0xc0] sm:$0xf] }
 0x20e   : > { %1995 = vmatmul.bf16.gmra.mxu2 %v6882_v8  ;;  %v5702_v22 = vor.u32 %v6025_v35, %v5701_v31 }
 0x20f   : > { %9615 = vst [vmem:[#allocation9_spill] sm:$0xff] %v7620_v11  ;;  %2612 = vmatpush.bf16.msra.mxu1 %v5510_v27  ;;  %v5594_v27 = vor.u32 %v5998_v7, %v5593_v60  ;;  %v9620_v7 = vld [vmem:[#allocation11_spill] sm:$0xff] }
 0x210   : > { %2710 = vmatpush.bf16.msrb.mxu2 %v5702_v22  ;;  %2661 = vmatpush.bf16.msra.mxu3 %v5606_v33  ;;  %v9617_v22 = vld [vmem:[#allocation10_spill] sm:$0xff] }
 0x211   : > { %v1440_v46 = vpop.f32.mrf.mxu2 }
 0x212   : > { %v7651_v42 = vadd.f32 %v1440_v46, %v7403_v39  ;;  %v1939_v32 = vpop.f32.mrf.mxu3  ;;  %v1844_v54 = vpop.f32.mrf.mxu0  ;;  %v5994_v39 = vld [vmem:[%s9566_s4 + $0xac] sm:$0xf] }
 0x213   : > { %v1940_v31 = vadd.f32 %v1939_v32, %v1891_v44  ;;  %v1893_v35 = vpop.f32.mrf.mxu1  ;;  %2613 = vmatpush.bf16.msra.mxu1 %v5498_v2  ;;  %v5583_v44 = vld [vmem:[%s9566_s4 + $0xb4] sm:$0xf0] }
 0x214   : > { %9616 = vst [vmem:[#allocation40_spill] sm:$0xff] %v7651_v42  ;;  %v1894_v58 = vadd.f32 %v1893_v35, %v1844_v54  ;;  %2662 = vmatpush.bf16.msra.mxu3 %v5594_v27  ;;  %v5586_v33 = vor.u32 %v5994_v39, %v5583_v44 }
 0x215   : > { %v7657_v11 = vmul.f32 %v1940_v31, %v9617_v22  ;;  %2039 = vmatmul.bf16.gmra.mxu0 %v6863_v55 }
 0x216   : > { %5485 = vmatmul.msk.bf16.gmra.mxu1 %vm979_vm0, %v6761_v48  ;;  %2753 = vmatpush.bf16.msrb.mxu0 %v5586_v33  ;;  %v5571_v33 = vld [vmem:[%s9566_s4 + $0x9c] sm:$0xf0] }
 0x217   : > { %9618 = vst [vmem:[#allocation10_spill] sm:$0xff] %v7657_v11  ;;  %2137 = vmatmul.bf16.gmra.mxu3 %v6852_v47 }
 0x219   : > { %v1442_v46 = vpop.f32.mrf.mxu2 }
 0x21a   : > { %v7670_v15 = vadd.f32 %v1442_v46, %v7417_v21  ;;  %v1942_v51 = vpop.f32.mrf.mxu3  ;;  %v1846_v60 = vpop.f32.mrf.mxu0 }
 0x21b   : > { %v1943_v32 = vadd.f32 %v1942_v51, %v1894_v58  ;;  %v1895_v54 = vpop.f32.mrf.mxu1  ;;  %v5991_v58 = vld [vmem:[%s9566_s4 + $0x94] sm:$0xf] }
 0x21c   : > { %9619 = vst [vmem:[#allocation41_spill] sm:$0xff] %v7670_v15  ;;  %v1896_v2 = vadd.f32 %v1895_v54, %v1846_v60  ;;  %v5574_v46 = vor.u32 %v5991_v58, %v5571_v33 }
 0x21d   : > { %v7673_v31 = vmul.f32 %v1943_v32, %v9620_v7 }
 0x21e   : > { %2156 = vmatmul.bf16.vlgmr.msra.gmra.mxu2 %v6626_v38  ;;  %2754 = vmatpush.bf16.msrb.mxu0 %v5574_v46 }
 0x21f   : > { %9621 = vst [vmem:[#allocation11_spill] sm:$0xff] %v7673_v31 }
 0x221   : > { %v1961_v35 = vpop.f32.mrf.mxu2 }
 0x222   : > { %v1944_v27 = vpop.f32.mrf.mxu3  ;;  %v1849_v22 = vpop.f32.mrf.mxu0 }
 0x223   : > { %v1945_v11 = vadd.f32 %v1944_v27, %v1896_v2  ;;  %v1898_v39 = vpop.f32.mrf.mxu1  ;;  %v9624_v2 = vld [vmem:[#allocation13_spill] sm:$0xff] }
 0x224   : > { %v1899_v44 = vadd.f32 %v1898_v39, %v1849_v22 }
 0x225   : > { %v7677_v21 = vmul.f32 %v1945_v11, %v9622_v43  ;;  %2044 = vmatmul.bf16.gmra.mxu0 %v6884_v9 }
 0x226   : > { %5486 = vmatmul.msk.bf16.gmra.mxu1 %vm979_vm0, %v6823_v24 }
 0x227   : > { %9623 = vst [vmem:[#allocation12_spill] sm:$0xff] %v7677_v21  ;;  %2142 = vmatmul.bf16.gmra.mxu3 %v6882_v8 }
 0x229   : > { %v1963_v51 = vpop.f32.mrf.mxu2 }
 0x22a   : > { %v1947_v60 = vpop.f32.mrf.mxu3  ;;  %v1851_v43 = vpop.f32.mrf.mxu0 }
 0x22b   : > { %v1948_v11 = vadd.f32 %v1947_v60, %v1899_v44  ;;  %v1900_v32 = vpop.f32.mrf.mxu1  ;;  %v9628_v44 = vld [vmem:[#allocation15_spill] sm:$0xff] }
 0x22c   : > { %v1901_v54 = vadd.f32 %v1900_v32, %v1851_v43  ;;  %v5988_v60 = vld [vmem:[%s9566_s4 + $0x7c] sm:$0xf] }
 0x22d   : > { %v7690_v7 = vmul.f32 %v1948_v11, %v9624_v2 }
 0x22e   : > { %2161 = vmatmul.bf16.gmra.mxu2 %v6649_v50 }
 0x22f   : > { %9625 = vst [vmem:[#allocation13_spill] sm:$0xff] %v7690_v7 }
 0x231   : > { %v1966_v27 = vpop.f32.mrf.mxu2 }
 0x232   : > { %v1949_v22 = vpop.f32.mrf.mxu3  ;;  %v2010_v39 = vpop.f32.mrf.mxu0 }
 0x233   : > { %v1950_v21 = vadd.f32 %v1949_v22, %v1901_v54  ;;  %v2011_v31 = vadd.f32 %v2010_v39, %v1961_v35  ;;  %v2059_v18 = vpop.f32.mrf.mxu1  ;;  %v9630_v54 = vld [vmem:[#allocation16_spill] sm:$0xff] }
 0x235   : > { %v7694_v58 = vmul.f32 %v1950_v21, %v9626_v20  ;;  %v2060_v33 = vadd.f32 %v2059_v18, %v2011_v31  ;;  %5487 = vmatmul.msk.bf16.vlgmr.msra.gmra.mxu0 %vm979_vm0, %v6487_v29  ;;  %v5559_v20 = vld [vmem:[%s9566_s4 + $0x84] sm:$0xf0] }
 0x236   : > { %2614 = vmatmul.bf16.vlgmr.msra.gmra.mxu1 %v6624_v37  ;;  %v5562_v35 = vor.u32 %v5988_v60, %v5559_v20 }
 0x237   : > { %9627 = vst [vmem:[#allocation14_spill] sm:$0xff] %v7694_v58  ;;  %v7700_v46 = vmul.f32 %v2060_v33, %v9628_v44  ;;  %2663 = vmatmul.bf16.vlgmr.msra.gmra.mxu3 %v6626_v38 }
 0x238   : > { %2755 = vmatpush.bf16.msrb.mxu0 %v5562_v35  ;;  %v5985_v35 = vld [vmem:[%s9566_s4 + $0x64] sm:$0xf] }
 0x239   : > { %9629 = vst [vmem:[#allocation15_spill] sm:$0xff] %v7700_v46  ;;  %v1968_v18 = vpop.f32.mrf.mxu2 }
 0x23a   : > { %v7709_v31 = vpop.f32.mrf.mxu3  ;;  %v2012_v21 = vpop.f32.mrf.mxu0 }
 0x23b   : > { %v2013_v43 = vadd.f32 %v2012_v21, %v1963_v51  ;;  %v2061_v11 = vpop.f32.mrf.mxu1  ;;  %v9632_v51 = vld [vmem:[#allocation17_spill] sm:$0xff] }
 0x23d   : > { %v2062_v32 = vadd.f32 %v2061_v11, %v2013_v43 }
 0x23e   : > { %2166 = vmatmul.bf16.gmra.mxu2 %v6672_v62 }
 0x23f   : > { %v7713_v2 = vmul.f32 %v2062_v32, %v9630_v54 }
 0x241   : > { %9631 = vst [vmem:[#allocation16_spill] sm:$0xff] %v7713_v2  ;;  %v1971_v22 = vpop.f32.mrf.mxu2 }
 0x242   : > { %v7715_v39 = vpop.f32.mrf.mxu3  ;;  %v2015_v33 = vpop.f32.mrf.mxu0 }
 0x243   : > { %v2016_v44 = vadd.f32 %v2015_v33, %v1966_v27  ;;  %v2064_v58 = vpop.f32.mrf.mxu1  ;;  %v5547_v27 = vld [vmem:[%s9566_s4 + $0x6c] sm:$0xf0] }
 0x244   : > { %v5550_v21 = vor.u32 %v5985_v35, %v5547_v27  ;;  %v6022_v35 = vld [vmem:[%s9566_s4 + $0x188] sm:$0xf0] }
 0x245   : > { %v2065_v60 = vadd.f32 %v2064_v58, %v2016_v44  ;;  %5488 = vmatmul.msk.bf16.gmra.mxu0 %vm979_vm0, %v6586_v12  ;;  %v9634_v44 = vld [vmem:[#allocation18_spill] sm:$0xff] }
 0x246   : > { %2619 = vmatmul.bf16.gmra.mxu1 %v6647_v49  ;;  %2756 = vmatpush.bf16.msrb.mxu0 %v5550_v21 }
 0x247   : > { %v7721_v20 = vmul.f32 %v2065_v60, %v9632_v51  ;;  %2668 = vmatmul.bf16.gmra.mxu3 %v6649_v50  ;;  %v5689_v51 = vld [vmem:[%s9566_s4 + $0x180] sm:$0xf] }
 0x248   : > { %v5690_v27 = vor.u32 %v6022_v35, %v5689_v51 }
 0x249   : > { %9633 = vst [vmem:[#allocation17_spill] sm:$0xff] %v7721_v20  ;;  %v1973_v58 = vpop.f32.mrf.mxu2 }
 0x24a   : > { %v7730_v43 = vpop.f32.mrf.mxu3  ;;  %v2017_v11 = vpop.f32.mrf.mxu0  ;;  %2711 = vmatpush.bf16.msrb.mxu2 %v5690_v27 }
 0x24b   : > { %v2018_v32 = vadd.f32 %v2017_v11, %v1968_v18  ;;  %v2066_v54 = vpop.f32.mrf.mxu1 }
 0x24d   : > { %v2067_v33 = vadd.f32 %v2066_v54, %v2018_v32  ;;  %v9636_v54 = vld [vmem:[#allocation19_spill] sm:$0xff] }
 0x24e   : > { %2171 = vmatmul.bf16.gmra.mxu2 %v6701_v14 }
 0x24f   : > { %v7734_v60 = vmul.f32 %v2067_v33, %v9634_v44  ;;  %v5982_v44 = vld [vmem:[%s9566_s4 + $0x4c] sm:$0xf] }
 0x251   : > { %9635 = vst [vmem:[#allocation18_spill] sm:$0xff] %v7734_v60  ;;  %v1976_v20 = vpop.f32.mrf.mxu2 }
 0x252   : > { %v7742_v7 = vpop.f32.mrf.mxu3  ;;  %v2020_v18 = vpop.f32.mrf.mxu0 }
 0x253   : > { %v2021_v21 = vadd.f32 %v2020_v18, %v1971_v22  ;;  %v2069_v11 = vpop.f32.mrf.mxu1  ;;  %v5535_v22 = vld [vmem:[%s9566_s4 + $0x54] sm:$0xf0] }
 0x254   : > { %v5538_v51 = vor.u32 %v5982_v44, %v5535_v22 }
 0x255   : > { %v2070_v32 = vadd.f32 %v2069_v11, %v2021_v21  ;;  %5489 = vmatmul.msk.bf16.gmra.mxu0 %vm979_vm0, %v6633_v41 }
 0x256   : > { %2624 = vmatmul.bf16.gmra.mxu1 %v6670_v61  ;;  %2757 = vmatpush.bf16.msrb.mxu0 %v5538_v51  ;;  %v5979_v51 = vld [vmem:[%s9566_s4 + $0x34] sm:$0xf] }
 0x257   : > { %v7748_v33 = vmul.f32 %v2070_v32, %v9636_v54  ;;  %2673 = vmatmul.bf16.gmra.mxu3 %v6672_v62  ;;  %v9638_v54 = vld [vmem:[#allocation20_spill] sm:$0xff] }
 0x259   : > { %9637 = vst [vmem:[#allocation19_spill] sm:$0xff] %v7748_v33  ;;  %v1978_v35 = vpop.f32.mrf.mxu2 }
 0x25a   : > { %v7757_v27 = vpop.f32.mrf.mxu3  ;;  %v2022_v18 = vpop.f32.mrf.mxu0 }
 0x25b   : > { %v2023_v21 = vadd.f32 %v2022_v18, %v1973_v58  ;;  %v2071_v11 = vpop.f32.mrf.mxu1  ;;  %v9640_v58 = vld [vmem:[#allocation21_spill] sm:$0xff] }
 0x25d   : > { %v2072_v32 = vadd.f32 %v2071_v11, %v2023_v21 }
 0x25e   : > { %2176 = vmatmul.bf16.gmra.mxu2 %v6724_v26 }
 0x25f   : > { %v7761_v33 = vmul.f32 %v2072_v32, %v9638_v54  ;;  %v9642_v54 = vld [vmem:[#allocation22_spill] sm:$0xff] }
 0x261   : > { %9639 = vst [vmem:[#allocation20_spill] sm:$0xff] %v7761_v33  ;;  %v1981_v60 = vpop.f32.mrf.mxu2 }
 0x262   : > { %v7763_v2 = vpop.f32.mrf.mxu3  ;;  %v2025_v46 = vpop.f32.mrf.mxu0 }
 0x263   : > { %v2026_v3 = vadd.f32 %v2025_v46, %v1976_v20  ;;  %v2074_v15 = vpop.f32.mrf.mxu1  ;;  %v5523_v46 = vld [vmem:[%s9566_s4 + $0x3c] sm:$0xf0] }
 0x264   : > { %v5526_v20 = vor.u32 %v5979_v51, %v5523_v46  ;;  %v5679_v46 = vld [vmem:[%s9566_s4 + $0x174] sm:$0xf0] }
 0x265   : > { %v2075_v44 = vadd.f32 %v2074_v15, %v2026_v3  ;;  %5490 = vmatmul.msk.bf16.gmra.mxu0 %vm979_vm0, %v6656_v53 }
 0x266   : > { %2629 = vmatmul.bf16.gmra.mxu1 %v6699_v13  ;;  %2758 = vmatpush.bf16.msrb.mxu0 %v5526_v20 }
 0x267   : > { %v7769_v22 = vmul.f32 %v2075_v44, %v9640_v58  ;;  %2678 = vmatmul.bf16.gmra.mxu3 %v6701_v14 }
 0x269   : > { %9641 = vst [vmem:[#allocation21_spill] sm:$0xff] %v7769_v22  ;;  %v1983_v3 = vpop.f32.mrf.mxu2 }
 0x26a   : > { %v7778_v15 = vpop.f32.mrf.mxu3  ;;  %v2027_v18 = vpop.f32.mrf.mxu0 }
 0x26b   : > { %v2028_v21 = vadd.f32 %v2027_v18, %v1978_v35  ;;  %v2076_v11 = vpop.f32.mrf.mxu1  ;;  %v6018_v35 = vld [vmem:[%s9566_s4 + $0x16c] sm:$0xf]  ;;  %v9644_v18 = vld [vmem:[#allocation23_spill] sm:$0xff] }
 0x26c   : > { %v5682_v20 = vor.u32 %v6018_v35, %v5679_v46 }
 0x26d   : > { %v2077_v32 = vadd.f32 %v2076_v11, %v2028_v21  ;;  %v6015_v11 = vld [vmem:[%s9566_s4 + $0x154] sm:$0xf] }
 0x26e   : > { %2181 = vmatmul.bf16.gmra.mxu2 %v6792_v5  ;;  %2802 = vmatpush.bf16.msrb.mxu1 %v5682_v20  ;;  %v6012_v20 = vld [vmem:[%s9566_s4 + $0x13c] sm:$0xf] }
 0x26f   : > { %v7782_v44 = vmul.f32 %v2077_v32, %v9642_v54  ;;  %v5667_v32 = vld [vmem:[%s9566_s4 + $0x15c] sm:$0xf0] }
 0x270   : > { %v5670_v35 = vor.u32 %v6015_v11, %v5667_v32  ;;  %v5643_v11 = vld [vmem:[%s9566_s4 + $0x12c] sm:$0xf0] }
 0x271   : > { %9643 = vst [vmem:[#allocation22_spill] sm:$0xff] %v7782_v44  ;;  %v1986_v58 = vpop.f32.mrf.mxu2  ;;  %v9646_v44 = vld [vmem:[#allocation24_spill] sm:$0xff] }
 0x272   : > { %v7784_v22 = vpop.f32.mrf.mxu3  ;;  %v2030_v33 = vpop.f32.mrf.mxu0  ;;  %2803 = vmatpush.bf16.msrb.mxu1 %v5670_v35 }
 0x273   : > { %v2031_v42 = vadd.f32 %v2030_v33, %v1981_v60  ;;  %v2079_v56 = vpop.f32.mrf.mxu1 }
 0x275   : > { %v2080_v51 = vadd.f32 %v2079_v56, %v2031_v42  ;;  %5491 = vmatmul.msk.bf16.gmra.mxu0 %vm979_vm0, %v6685_v4  ;;  %v5976_v56 = vld [vmem:[%s9566_s4 + $0x1c] sm:$0xf]  ;;  %v5511_v42 = vld [vmem:[%s9566_s4 + $0x24] sm:$0xf0] }
 0x276   : > { %2634 = vmatmul.bf16.gmra.mxu1 %v6722_v25  ;;  %v5514_v60 = vor.u32 %v5976_v56, %v5511_v42  ;;  %v5655_v56 = vld [vmem:[%s9566_s4 + $0x144] sm:$0xf0] }
 0x277   : > { %v7796_v21 = vmul.f32 %v2080_v51, %v9644_v18  ;;  %2683 = vmatmul.bf16.gmra.mxu3 %v6724_v26  ;;  %v5658_v42 = vor.u32 %v6012_v20, %v5655_v56 }
 0x278   : > { %2759 = vmatpush.bf16.msrb.mxu0 %v5514_v60 }
 0x279   : > { %9645 = vst [vmem:[#allocation23_spill] sm:$0xff] %v7796_v21  ;;  %v1988_v33 = vpop.f32.mrf.mxu2  ;;  %2804 = vmatpush.bf16.msrb.mxu1 %v5658_v42  ;;  %v9648_v42 = vld [vmem:[#allocation25_spill] sm:$0xff] }
 0x27a   : > { %v7811_v54 = vpop.f32.mrf.mxu3  ;;  %v2032_v51 = vpop.f32.mrf.mxu0 }
 0x27b   : > { %v2033_v46 = vadd.f32 %v2032_v51, %v1983_v3  ;;  %v2081_v18 = vpop.f32.mrf.mxu1  ;;  %v6009_v3 = vld [vmem:[%s9566_s4 + $0x124] sm:$0xf] }
 0x27c   : > { %v5646_v35 = vor.u32 %v6009_v3, %v5643_v11  ;;  %v5499_v11 = vld [vmem:[%s9566_s4 + $0xc] sm:$0xf0] }
 0x27d   : > { %v2082_v21 = vadd.f32 %v2081_v18, %v2033_v46 }
 0x27e   : > { %2186 = vmatmul.bf16.gmra.mxu2 %v6863_v55  ;;  %2805 = vmatpush.bf16.msrb.mxu1 %v5646_v35 }
 0x27f   : > { %v7821_v28 = vmul.f32 %v2082_v21, %v9646_v44  ;;  %v6006_v44 = vld [vmem:[%s9566_s4 + $0x10c] sm:$0xf]  ;;  %v5631_v21 = vld [vmem:[%s9566_s4 + $0x114] sm:$0xf0] }
 0x280   : > { %v5634_v56 = vor.u32 %v6006_v44, %v5631_v21 }
 0x281   : > { %9647 = vst [vmem:[#allocation24_spill] sm:$0xff] %v7821_v28  ;;  %v1991_v60 = vpop.f32.mrf.mxu2 }
 0x282   : > { %v7829_v32 = vpop.f32.mrf.mxu3  ;;  %v2035_v51 = vpop.f32.mrf.mxu0  ;;  %2806 = vmatpush.bf16.msrb.mxu1 %v5634_v56  ;;  %v6024_v56 = vld [vmem:[%s9566_s4 + $0x19c] sm:$0xf] }
 0x283   : > { %v2036_v46 = vadd.f32 %v2035_v51, %v1986_v58  ;;  %v2084_v18 = vpop.f32.mrf.mxu1  ;;  %v5973_v58 = vld [vmem:[%s9566_s4 + $0x4] sm:$0xf] }
 0x284   : > { %v5502_v51 = vor.u32 %v5973_v58, %v5499_v11  ;;  %v5703_v58 = vld [vmem:[%s9566_s4 + $0x1a4] sm:$0xf0]  ;;  %v6000_v11 = vld [vmem:[%s9566_s4 + $0xdc] sm:$0xf] }
 0x285   : > { %v2085_v20 = vadd.f32 %v2084_v18, %v2036_v46  ;;  %5492 = vmatmul.msk.bf16.gmra.mxu0 %vm979_vm0, %v6708_v17  ;;  %v6003_v46 = vld [vmem:[%s9566_s4 + $0xf4] sm:$0xf]  ;;  %v5619_v18 = vld [vmem:[%s9566_s4 + $0xfc] sm:$0xf0] }
 0x286   : > { %2639 = vmatmul.bf16.gmra.mxu1 %v6781_v0  ;;  %2760 = vmatpush.bf16.msrb.mxu0 %v5502_v51  ;;  %v5622_v21 = vor.u32 %v6003_v46, %v5619_v18  ;;  %v5706_v51 = vor.u32 %v6024_v56, %v5703_v58  ;;  %v5589_v18 = vld [vmem:[%s9566_s4 + $0xb0] sm:$0xf]  ;;  %v5997_v56 = vld [vmem:[%s9566_s4 + $0xc4] sm:$0xf] }
 0x287   : > { %v7841_v3 = vmul.f32 %v2085_v20, %v9648_v42  ;;  %2688 = vmatmul.bf16.gmra.mxu3 %v6792_v5  ;;  %v6021_v58 = vld [vmem:[%s9566_s4 + $0x184] sm:$0xf] }
 0x288   : > { %2807 = vmatpush.bf16.msrb.mxu1 %v5622_v21  ;;  %2857 = vmatpush.bf16.msrb.mxu3 %v5706_v51  ;;  %v5691_v51 = vld [vmem:[%s9566_s4 + $0x18c] sm:$0xf0] }
 0x289   : > { %9649 = vst [vmem:[#allocation25_spill] sm:$0xff] %v7841_v3  ;;  %v1993_v35 = vpop.f32.mrf.mxu2 }
 0x28a   : > { %v7856_v20 = vpop.f32.mrf.mxu3  ;;  %v2037_v44 = vpop.f32.mrf.mxu0 }
 0x28b   : > { %v2038_v42 = vadd.f32 %v2037_v44, %v1988_v33  ;;  %v2086_v3 = vpop.f32.mrf.mxu1  ;;  %v5607_v33 = vld [vmem:[%s9566_s4 + $0xe4] sm:$0xf0]  ;;  %v5996_v44 = vld [vmem:[%s9566_s4 + $0xb8] sm:$0xf0] }
 0x28c   : > { %v5610_v21 = vor.u32 %v6000_v11, %v5607_v33 }
 0x28d   : > { %v2087_v28 = vadd.f32 %v2086_v3, %v2038_v42  ;;  %v9650_v3 = vld [vmem:[#allocation26_spill] sm:$0xff]  ;;  %v5590_v42 = vor.u32 %v5996_v44, %v5589_v18  ;;  %v5694_v44 = vor.u32 %v6021_v58, %v5691_v51 }
 0x28e   : > { %2191 = vmatmul.bf16.gmra.mxu2 %v6884_v9  ;;  %2808 = vmatpush.bf16.msrb.mxu1 %v5610_v21 }
 0x28f   : > { %v7872_v46 = vmul.f32 %v2087_v28, %v9650_v3  ;;  %v5595_v28 = vld [vmem:[%s9566_s4 + $0xcc] sm:$0xf0]  ;;  %2900 = vmatpush.bf16.msra.mxu2 %v5590_v42  ;;  %2858 = vmatpush.bf16.msrb.mxu3 %v5694_v44 }
 0x290   : > { %v5598_v11 = vor.u32 %v5997_v56, %v5595_v28  ;;  %v5685_v42 = vld [vmem:[%s9566_s4 + $0x170] sm:$0xf] }
 0x291   : > { %9651 = vst [vmem:[#allocation26_spill] sm:$0xff] %v7872_v46  ;;  %v1996_v40 = vpop.f32.mrf.mxu2 }
 0x292   : > { %v7889_v3 = vpop.f32.mrf.mxu3  ;;  %v2040_v46 = vpop.f32.mrf.mxu0  ;;  %2809 = vmatpush.bf16.msrb.mxu1 %v5598_v11 }
 0x293   : > { %9652 = vst [vmem:[#allocation42_spill] sm:$0xff] %v7889_v3  ;;  %v2041_v33 = vadd.f32 %v2040_v46, %v1991_v60  ;;  %v2089_v18 = vpop.f32.mrf.mxu1  ;;  %v6020_v60 = vld [vmem:[%s9566_s4 + $0x178] sm:$0xf0] }
 0x294   : > { %v5686_v46 = vor.u32 %v6020_v60, %v5685_v42 }
 0x295   : > { %v2090_v21 = vadd.f32 %v2089_v18, %v2041_v33  ;;  %5493 = vmatmul.msk.bf16.gmra.mxu0 %vm979_vm0, %v6761_v48  ;;  %v5577_v33 = vld [vmem:[%s9566_s4 + $0x98] sm:$0xf]  ;;  %v5993_v18 = vld [vmem:[%s9566_s4 + $0xa0] sm:$0xf0] }
 0x296   : > { %2644 = vmatmul.bf16.gmra.mxu1 %v6852_v47  ;;  %2949 = vmatpush.bf16.msra.mxu0 %v5686_v46 }
 0x297   : > { %v7898_v3 = vmul.f32 %v2090_v21, %v7363_v16  ;;  %2693 = vmatmul.bf16.gmra.mxu3 %v6863_v55  ;;  %v5578_v21 = vor.u32 %v5993_v18, %v5577_v33 }
 0x299   : > { %9653 = vst [vmem:[#allocation43_spill] sm:$0xff] %v7898_v3  ;;  %v1998_v56 = vpop.f32.mrf.mxu2  ;;  %2901 = vmatpush.bf16.msra.mxu2 %v5578_v21 }
 0x29a   : > { %v7907_v28 = vpop.f32.mrf.mxu3  ;;  %v2042_v58 = vpop.f32.mrf.mxu0 }
 0x29b   : > { %v2043_v11 = vadd.f32 %v2042_v58, %v1993_v35  ;;  %v2091_v51 = vpop.f32.mrf.mxu1 }
 0x29d   : > { %v2092_v16 = vadd.f32 %v2091_v51, %v2043_v11 }
 0x29e   : > { %5711 = vmatmul.msk.bf16.vlgmr.msrb.gmra.mxu2 %vm979_vm0, %v6487_v29 }
 0x29f   : > { %v7918_v44 = vmul.f32 %v2092_v16, %v7378_v57  ;;  %v5673_v57 = vld [vmem:[%s9566_s4 + $0x158] sm:$0xf] }
 0x2a1   : > { %9654 = vst [vmem:[#allocation44_spill] sm:$0xff] %v7918_v44  ;;  %v2157_v42 = vpop.f32.mrf.mxu2 }
 0x2a2   : > { %v7920_v35 = vpop.f32.mrf.mxu3  ;;  %v2045_v60 = vpop.f32.mrf.mxu0 }
 0x2a3   : > { %v2046_v46 = vadd.f32 %v2045_v60, %v1996_v40  ;;  %v2094_v58 = vpop.f32.mrf.mxu1  ;;  %v6017_v40 = vld [vmem:[%s9566_s4 + $0x160] sm:$0xf0] }
 0x2a4   : > { %v5674_v16 = vor.u32 %v6017_v40, %v5673_v57  ;;  %v2158_v57 = vadd.f32 %v2157_v42, %v7709_v31  ;;  %v6014_v31 = vld [vmem:[%s9566_s4 + $0x148] sm:$0xf0] }
 0x2a5   : > { %v2095_v11 = vadd.f32 %v2094_v58, %v2046_v46  ;;  %5494 = vmatmul.msk.bf16.gmra.mxu0 %vm979_vm0, %v6823_v24  ;;  %v5565_v58 = vld [vmem:[%s9566_s4 + $0x80] sm:$0xf] }
 0x2a6   : > { %2649 = vmatmul.bf16.gmra.mxu1 %v6882_v8  ;;  %2950 = vmatpush.bf16.msra.mxu0 %v5674_v16 }
 0x2a7   : > { %v7926_v51 = vmul.f32 %v2095_v11, %v7393_v30  ;;  %2698 = vmatmul.bf16.gmra.mxu3 %v6884_v9  ;;  %v5990_v11 = vld [vmem:[%s9566_s4 + $0x88] sm:$0xf0] }
 0x2a8   : > { %v5566_v16 = vor.u32 %v5990_v11, %v5565_v58 }
 0x2a9   : > { %9655 = vst [vmem:[#allocation45_spill] sm:$0xff] %v7926_v51  ;;  %v2159_v33 = vpop.f32.mrf.mxu2 }
 0x2aa   : > { %v7935_v18 = vpop.f32.mrf.mxu3  ;;  %v2047_v21 = vpop.f32.mrf.mxu0  ;;  %2902 = vmatpush.bf16.msra.mxu2 %v5566_v16 }
 0x2ab   : > { %v2048_v60 = vadd.f32 %v2047_v21, %v1998_v56  ;;  %v2096_v46 = vpop.f32.mrf.mxu1 }
 0x2ad   : > { %v2097_v30 = vadd.f32 %v2096_v46, %v2048_v60 }
 0x2ae   : > { %5712 = vmatmul.msk.bf16.gmra.mxu2 %vm979_vm0, %v6586_v12 }
 0x2af   : > { %v7947_v40 = vmul.f32 %v2097_v30, %v7405_v36  ;;  %v5661_v36 = vld [vmem:[%s9566_s4 + $0x140] sm:$0xf]  ;;  %v2160_v30 = vadd.f32 %v2159_v33, %v7715_v39  ;;  %v5987_v39 = vld [vmem:[%s9566_s4 + $0x70] sm:$0xf0] }
 0x2b0   : > { %v5662_v42 = vor.u32 %v6014_v31, %v5661_v36  ;;  %v5553_v36 = vld [vmem:[%s9566_s4 + $0x68] sm:$0xf] }
 0x2b1   : > { %9656 = vst [vmem:[#allocation46_spill] sm:$0xff] %v7947_v40  ;;  %v2162_v56 = vpop.f32.mrf.mxu2 }
 0x2b2   : > { %v7949_v21 = vpop.f32.mrf.mxu3  ;;  %v2206_v60 = vpop.f32.mrf.mxu0  ;;  %2951 = vmatpush.bf16.msra.mxu0 %v5662_v42  ;;  %v2163_v33 = vadd.f32 %v2162_v56, %v7730_v43  ;;  %v5649_v43 = vld [vmem:[%s9566_s4 + $0x128] sm:$0xf]  ;;  %v6011_v56 = vld [vmem:[%s9566_s4 + $0x130] sm:$0xf0] }
 0x2b3   : > { %v2207_v46 = vadd.f32 %v2206_v60, %v2158_v57  ;;  %v2615_v51 = vpop.f32.mrf.mxu1 }
 0x2b5   : > { %v7952_v44 = vmul.f32 %v2207_v46, %v7389_v34  ;;  %2761 = vmatmul.bf16.vlgmr.msrb.gmra.mxu0 %v6624_v37 }
 0x2b6   : > { %2810 = vmatmul.bf16.vlgmr.msrb.gmra.mxu1 %v6626_v38 }
 0x2b7   : > { %5719 = vmatmul.msk.bf16.vlgmr.msrb.gmra.mxu3 %vm979_vm0, %v6487_v29 }
 0x2b9   : > { %v2164_v34 = vpop.f32.mrf.mxu2 }
 0x2ba   : > { %v2664_v58 = vpop.f32.mrf.mxu3  ;;  %v2208_v11 = vpop.f32.mrf.mxu0 }
 0x2bb   : > { %v7965_v57 = vadd.f32 %v2664_v58, %v2615_v51  ;;  %v2209_v16 = vadd.f32 %v2208_v11, %v2160_v30  ;;  %v2617_v60 = vpop.f32.mrf.mxu1  ;;  %v5554_v51 = vor.u32 %v5987_v39, %v5553_v36  ;;  %v2165_v36 = vadd.f32 %v2164_v34, %v7742_v7  ;;  %v5984_v7 = vld [vmem:[%s9566_s4 + $0x58] sm:$0xf0] }
 0x2bd   : > { %v7968_v46 = vmul.f32 %v2209_v16, %v7401_v45  ;;  %2903 = vmatpush.bf16.msra.mxu2 %v5554_v51  ;;  %v9657_v16 = vld [vmem:[#allocation27_spill] sm:$0xff] }
 0x2be   : > { %5713 = vmatmul.msk.bf16.gmra.mxu2 %vm979_vm0, %v6633_v41 }
 0x2c1   : > { %v2167_v31 = vpop.f32.mrf.mxu2 }
 0x2c2   : > { %v2666_v42 = vpop.f32.mrf.mxu3  ;;  %v2211_v30 = vpop.f32.mrf.mxu0  ;;  %v2168_v34 = vadd.f32 %v2167_v31, %v7757_v27  ;;  %v5637_v27 = vld [vmem:[%s9566_s4 + $0x110] sm:$0xf]  ;;  %v6008_v31 = vld [vmem:[%s9566_s4 + $0x118] sm:$0xf0] }
 0x2c3   : > { %v7979_v45 = vadd.f32 %v2666_v42, %v2617_v60  ;;  %v2212_v58 = vadd.f32 %v2211_v30, %v2163_v33  ;;  %v2620_v11 = vpop.f32.mrf.mxu1  ;;  %v5650_v60 = vor.u32 %v6011_v56, %v5649_v43  ;;  %v5541_v43 = vld [vmem:[%s9566_s4 + $0x50] sm:$0xf] }
 0x2c5   : > { %v7982_v40 = vmul.f32 %v2212_v58, %v9657_v16  ;;  %2766 = vmatmul.bf16.gmra.mxu0 %v6647_v49 }
 0x2c6   : > { %2815 = vmatmul.bf16.gmra.mxu1 %v6649_v50  ;;  %2952 = vmatpush.bf16.msra.mxu0 %v5650_v60 }
 0x2c7   : > { %5720 = vmatmul.msk.bf16.gmra.mxu3 %vm979_vm0, %v6586_v12 }
 0x2c9   : > { %v2169_v39 = vpop.f32.mrf.mxu2 }
 0x2ca   : > { %v2669_v33 = vpop.f32.mrf.mxu3  ;;  %v2213_v51 = vpop.f32.mrf.mxu0 }
 0x2cb   : > { %v7995_v42 = vadd.f32 %v2669_v33, %v2620_v11  ;;  %v2214_v30 = vadd.f32 %v2213_v51, %v2165_v36  ;;  %v2622_v58 = vpop.f32.mrf.mxu1  ;;  %v5542_v11 = vor.u32 %v5984_v7, %v5541_v43  ;;  %v2170_v43 = vadd.f32 %v2169_v39, %v7763_v2  ;;  %v5981_v2 = vld [vmem:[%s9566_s4 + $0x40] sm:$0xf0] }
 0x2cd   : > { %v7998_v16 = vmul.f32 %v2214_v30, %v7424_v19  ;;  %2904 = vmatpush.bf16.msra.mxu2 %v5542_v11 }
 0x2ce   : > { %5714 = vmatmul.msk.bf16.gmra.mxu2 %vm979_vm0, %v6656_v53 }
 0x2d1   : > { %v2172_v56 = vpop.f32.mrf.mxu2 }
 0x2d2   : > { %v2671_v60 = vpop.f32.mrf.mxu3  ;;  %v2216_v36 = vpop.f32.mrf.mxu0  ;;  %v2173_v39 = vadd.f32 %v2172_v56, %v7778_v15  ;;  %v5625_v15 = vld [vmem:[%s9566_s4 + $0xf8] sm:$0xf]  ;;  %v6005_v56 = vld [vmem:[%s9566_s4 + $0x100] sm:$0xf0] }
 0x2d3   : > { %v8009_v19 = vadd.f32 %v2671_v60, %v2622_v58  ;;  %v2217_v33 = vadd.f32 %v2216_v36, %v2168_v34  ;;  %v2625_v51 = vpop.f32.mrf.mxu1  ;;  %v5638_v58 = vor.u32 %v6008_v31, %v5637_v27  ;;  %v5529_v27 = vld [vmem:[%s9566_s4 + $0x38] sm:$0xf] }
 0x2d5   : > { %v8012_v30 = vmul.f32 %v2217_v33, %v7437_v63  ;;  %2771 = vmatmul.bf16.gmra.mxu0 %v6670_v61 }
 0x2d6   : > { %2820 = vmatmul.bf16.gmra.mxu1 %v6672_v62  ;;  %2953 = vmatpush.bf16.msra.mxu0 %v5638_v58 }
 0x2d7   : > { %5721 = vmatmul.msk.bf16.gmra.mxu3 %vm979_vm0, %v6633_v41 }
 0x2d9   : > { %v2174_v63 = vpop.f32.mrf.mxu2 }
 0x2da   : > { %v2674_v7 = vpop.f32.mrf.mxu3  ;;  %v2218_v34 = vpop.f32.mrf.mxu0 }
 0x2db   : > { %v8025_v11 = vadd.f32 %v2674_v7, %v2625_v51  ;;  %v2219_v60 = vadd.f32 %v2218_v34, %v2170_v43  ;;  %v2627_v36 = vpop.f32.mrf.mxu1  ;;  %v5530_v51 = vor.u32 %v5981_v2, %v5529_v27  ;;  %v2175_v27 = vadd.f32 %v2174_v63, %v7784_v22  ;;  %v5978_v22 = vld [vmem:[%s9566_s4 + $0x28] sm:$0xf0] }
 0x2dd   : > { %v8028_v33 = vmul.f32 %v2219_v60, %v7447_v6  ;;  %2905 = vmatpush.bf16.msra.mxu2 %v5530_v51 }
 0x2de   : > { %5715 = vmatmul.msk.bf16.gmra.mxu2 %vm979_vm0, %v6685_v4 }
 0x2e1   : > { %v2177_v31 = vpop.f32.mrf.mxu2 }
 0x2e2   : > { %v2676_v58 = vpop.f32.mrf.mxu3  ;;  %v2221_v43 = vpop.f32.mrf.mxu0  ;;  %v2178_v63 = vadd.f32 %v2177_v31, %v7811_v54  ;;  %v5613_v54 = vld [vmem:[%s9566_s4 + $0xe0] sm:$0xf]  ;;  %v6002_v31 = vld [vmem:[%s9566_s4 + $0xe8] sm:$0xf0] }
 0x2e3   : > { %v8039_v6 = vadd.f32 %v2676_v58, %v2627_v36  ;;  %v2222_v7 = vadd.f32 %v2221_v43, %v2173_v39  ;;  %v2630_v34 = vpop.f32.mrf.mxu1  ;;  %v5626_v36 = vor.u32 %v6005_v56, %v5625_v15  ;;  %v5517_v15 = vld [vmem:[%s9566_s4 + $0x20] sm:$0xf] }
 0x2e5   : > { %v8042_v60 = vmul.f32 %v2222_v7, %v7460_v23  ;;  %2776 = vmatmul.bf16.gmra.mxu0 %v6699_v13 }
 0x2e6   : > { %2825 = vmatmul.bf16.gmra.mxu1 %v6701_v14  ;;  %2954 = vmatpush.bf16.msra.mxu0 %v5626_v36 }
 0x2e7   : > { %5722 = vmatmul.msk.bf16.gmra.mxu3 %vm979_vm0, %v6656_v53 }
 0x2e9   : > { %v2179_v23 = vpop.f32.mrf.mxu2 }
 0x2ea   : > { %v2679_v2 = vpop.f32.mrf.mxu3  ;;  %v2223_v39 = vpop.f32.mrf.mxu0 }
 0x2eb   : > { %v8055_v51 = vadd.f32 %v2679_v2, %v2630_v34  ;;  %v2224_v58 = vadd.f32 %v2223_v39, %v2175_v27  ;;  %v2632_v43 = vpop.f32.mrf.mxu1  ;;  %v5518_v34 = vor.u32 %v5978_v22, %v5517_v15  ;;  %v2180_v15 = vadd.f32 %v2179_v23, %v7829_v32 }
 0x2ed   : > { %v8058_v7 = vmul.f32 %v2224_v58, %v7476_v59  ;;  %2906 = vmatpush.bf16.msra.mxu2 %v5518_v34  ;;  %v5505_v34 = vld [vmem:[%s9566_s4 + $0x8] sm:$0xf] }
 0x2ee   : > { %5716 = vmatmul.msk.bf16.gmra.mxu2 %vm979_vm0, %v6708_v17 }
 0x2f1   : > { %v2182_v56 = vpop.f32.mrf.mxu2 }
 0x2f2   : > { %v2681_v36 = vpop.f32.mrf.mxu3  ;;  %v2226_v27 = vpop.f32.mrf.mxu0 }
 0x2f3   : > { %v8069_v59 = vadd.f32 %v2681_v36, %v2632_v43  ;;  %v2227_v2 = vadd.f32 %v2226_v27, %v2178_v63  ;;  %v2635_v39 = vpop.f32.mrf.mxu1  ;;  %v5614_v43 = vor.u32 %v6002_v31, %v5613_v54  ;;  %v3157_v63 = vld [vmem:[%s9567_s5 + $0x70] sm:$0xff] }
 0x2f4   : > { %v5975_v36 = vld [vmem:[%s9566_s4 + $0x10] sm:$0xf0] }
 0x2f5   : > { %v8072_v58 = vmul.f32 %v2227_v2, %v7489_v52  ;;  %2781 = vmatmul.bf16.gmra.mxu0 %v6722_v25  ;;  %v3158_v52 = vld [vmem:[%s9567_s5 + $0x78] sm:$0xff]  ;;  %v5506_v54 = vor.u32 %v5975_v36, %v5505_v34 }
 0x2f6   : > { %2830 = vmatmul.bf16.gmra.mxu1 %v6724_v26  ;;  %3227 = vmatpush.msra.mxu3 %v3158_v52  ;;  %v3156_v52 = vld [vmem:[%s9567_s5 + $0x68] sm:$0xff] }
 0x2f7   : > { %9658 = vst [vmem:[#allocation27_spill] sm:$0xff] %v8072_v58  ;;  %5723 = vmatmul.msk.bf16.gmra.mxu3 %vm979_vm0, %v6685_v4  ;;  %2955 = vmatpush.bf16.msra.mxu0 %v5614_v43  ;;  %v3155_v58 = vld [vmem:[%s9567_s5 + $0x60] sm:$0xff]  ;;  %v2183_v43 = vadd.f32 %v2182_v56, %v7856_v20 }
 0x2f8   : > { %3228 = vmatpush.msra.mxu3 %v3157_v63  ;;  %2907 = vmatpush.bf16.msra.mxu2 %v5506_v54  ;;  %v3151_v56 = vld [vmem:[%s9567_s5 + $0x40] sm:$0xff]  ;;  %v5601_v54 = vld [vmem:[%s9566_s4 + $0xc8] sm:$0xf] }
 0x2f9   : > { %v2184_v22 = vpop.f32.mrf.mxu2 }
 0x2fa   : > { %v2684_v27 = vpop.f32.mrf.mxu3  ;;  %v2228_v2 = vpop.f32.mrf.mxu0  ;;  %3229 = vmatpush.msra.mxu3 %v3156_v52  ;;  %v9659_v52 = vld [vmem:[#allocation42_spill] sm:$0xff] }
 0x2fb   : > { %v8097_v31 = vadd.f32 %v2684_v27, %v2635_v39  ;;  %v2229_v32 = vadd.f32 %v2228_v2, %v2180_v15  ;;  %v2637_v23 = vpop.f32.mrf.mxu1  ;;  %v3154_v39 = vld [vmem:[%s9567_s5 + $0x58] sm:$0xff] }
 0x2fc   : > { %3230 = vmatpush.msra.mxu3 %v3155_v58  ;;  %v3152_v58 = vld [vmem:[%s9567_s5 + $0x48] sm:$0xff] }
 0x2fd   : > { %v8103_v3 = vmul.f32 %v2229_v32, %v7499_v10  ;;  %v3153_v10 = vld [vmem:[%s9567_s5 + $0x50] sm:$0xff]  ;;  %v3150_v32 = vld [vmem:[%s9567_s5 + $0x38] sm:$0xff] }
 0x2fe   : > { %5717 = vmatmul.msk.bf16.gmra.mxu2 %vm979_vm0, %v6761_v48  ;;  %3231 = vmatpush.msra.mxu3 %v3154_v39  ;;  %v2185_v39 = vadd.f32 %v2184_v22, %v9659_v52 }
 0x300   : > { %3232 = vmatpush.msra.mxu3 %v3153_v10  ;;  %v3149_v10 = vld [vmem:[%s9567_s5 + $0x30] sm:$0xff] }
 0x301   : > { %v2187_v15 = vpop.f32.mrf.mxu2 }
 0x302   : > { %v2686_v63 = vpop.f32.mrf.mxu3  ;;  %v2231_v34 = vpop.f32.mrf.mxu0  ;;  %3233 = vmatpush.msra.mxu3 %v3152_v58  ;;  %v2188_v52 = vadd.f32 %v2187_v15, %v7907_v28 }
 0x303   : > { %v8117_v36 = vadd.f32 %v2686_v63, %v2637_v23  ;;  %v2232_v27 = vadd.f32 %v2231_v34, %v2183_v43  ;;  %v2640_v2 = vpop.f32.mrf.mxu1 }
 0x304   : > { %3234 = vmatpush.msra.mxu3 %v3151_v56 }
 0x305   : > { %v8123_v20 = vmul.f32 %v2232_v27, %v7512_v1  ;;  %2786 = vmatmul.bf16.gmra.mxu0 %v6781_v0  ;;  %v5999_v1 = vld [vmem:[%s9566_s4 + $0xd0] sm:$0xf0] }
 0x306   : > { %2835 = vmatmul.bf16.gmra.mxu1 %v6792_v5  ;;  %v5602_v23 = vor.u32 %v5999_v1, %v5601_v54  ;;  %3235 = vmatpush.msra.mxu3 %v3150_v32  ;;  %v3148_v54 = vld [vmem:[%s9567_s5 + $0x28] sm:$0xff]  ;;  %v9660_v1 = vld [vmem:[#allocation36_spill] sm:$0xff] }
 0x307   : > { %5724 = vmatmul.msk.bf16.gmra.mxu3 %vm979_vm0, %v6708_v17  ;;  %v3147_v32 = vld [vmem:[%s9567_s5 + $0x20] sm:$0xff] }
 0x308   : > { %2956 = vmatpush.bf16.msra.mxu0 %v5602_v23  ;;  %3236 = vmatpush.msra.mxu3 %v3149_v10  ;;  %v3146_v23 = vld [vmem:[%s9567_s5 + $0x18] sm:$0xff]  ;;  %v6026_v10 = vld [vmem:[%s9566_s4 + $0x1a8] sm:$0xf0] }
 0x309   : > { %v2189_v43 = vpop.f32.mrf.mxu2 }
 0x30a   : > { %v2689_v63 = vpop.f32.mrf.mxu3  ;;  %v2233_v34 = vpop.f32.mrf.mxu0  ;;  %3237 = vmatpush.msra.mxu3 %v3148_v54 }
 0x30b   : > { %v8145_v27 = vadd.f32 %v2689_v63, %v2640_v2  ;;  %v2234_v58 = vadd.f32 %v2233_v34, %v2185_v39  ;;  %v2642_v56 = vpop.f32.mrf.mxu1  ;;  %v3174_v2 = vld [vmem:[%s9567_s5 + $0xf8] sm:$0xff]  ;;  %v5709_v39 = vld [vmem:[%s9566_s4 + $0x1a0] sm:$0xf] }
 0x30c   : > { %3238 = vmatpush.msra.mxu3 %v3147_v32  ;;  %3292 = vmatpush.msrb.mxu2 %v3174_v2  ;;  %v5710_v63 = vor.u32 %v6026_v10, %v5709_v39  ;;  %v3144_v2 = vld [vmem:[%s9567_s5 + $0x8] sm:$0xff]  ;;  %v6023_v39 = vld [vmem:[%s9566_s4 + $0x190] sm:$0xf0] }
 0x30d   : > { %v8151_v22 = vmul.f32 %v2234_v58, %v9660_v1  ;;  %v3145_v58 = vld [vmem:[%s9567_s5 + $0x10] sm:$0xff] }
 0x30e   : > { %5718 = vmatmul.msk.bf16.gmra.mxu2 %vm979_vm0, %v6823_v24  ;;  %3239 = vmatpush.msra.mxu3 %v3146_v23  ;;  %v5697_v23 = vld [vmem:[%s9566_s4 + $0x188] sm:$0xf] }
 0x30f   : > { %9661 = vst [vmem:[#allocation42_spill] sm:$0xff] %v8151_v22  ;;  %3004 = vmatpush.bf16.msra.mxu1 %v5710_v63  ;;  %v5698_v10 = vor.u32 %v6023_v39, %v5697_v23 }
 0x310   : > { %3240 = vmatpush.msra.mxu3 %v3145_v58  ;;  %v3173_v58 = vld [vmem:[%s9567_s5 + $0xf0] sm:$0xff] }
 0x311   : > { %v2192_v34 = vpop.f32.mrf.mxu2  ;;  %3293 = vmatpush.msrb.mxu2 %v3173_v58  ;;  %v3172_v58 = vld [vmem:[%s9567_s5 + $0xe8] sm:$0xff] }
 0x312   : > { %v2691_v54 = vpop.f32.mrf.mxu3  ;;  %v2236_v1 = vpop.f32.mrf.mxu0  ;;  %3241 = vmatpush.msra.mxu3 %v3144_v2  ;;  %v2193_v22 = vadd.f32 %v2192_v34, %v7935_v18 }
 0x313   : > { %v8174_v28 = vadd.f32 %v2691_v54, %v2642_v56  ;;  %v2237_v15 = vadd.f32 %v2236_v1, %v2188_v52  ;;  %v2645_v32 = vpop.f32.mrf.mxu1  ;;  %v3143_v56 = vld [vmem:[%s9567_s5] sm:$0xff]  ;;  %v9662_v52 = vld [vmem:[#allocation38_spill] sm:$0xff]  ;;  %3005 = vmatpush.bf16.msra.mxu1 %v5698_v10  ;;  %v3178_v54 = vld [vmem:[%s9567_s5 + $0x118] sm:$0xff]  ;;  %v2190_v1 = vadd.f32 %v2189_v43, %v7920_v35  ;;  %3294 = vmatpush.msrb.mxu2 %v3172_v58 }
 0x314   : > { %3242 = vmatpush.msra.mxu3 %v3143_v56  ;;  %3369 = vmatpush.msrb.mxu0 %v3178_v54 }
 0x315   : > { %v8189_v63 = vmul.f32 %v2237_v15, %v9662_v52  ;;  %2791 = vmatmul.bf16.gmra.mxu0 %v6852_v47  ;;  %v9664_v52 = vld [vmem:[#allocation39_spill] sm:$0xff] }
 0x316   : > { %2840 = vmatmul.bf16.gmra.mxu1 %v6863_v55 }
 0x317   : > { %9663 = vst [vmem:[#allocation36_spill] sm:$0xff] %v8189_v63  ;;  %5725 = vmatmul.msk.bf16.gmra.mxu3 %vm979_vm0, %v6761_v48 }
 0x319   : > { %v2194_v15 = vpop.f32.mrf.mxu2 }
 0x31a   : > { %v2694_v2 = vpop.f32.mrf.mxu3  ;;  %v2238_v23 = vpop.f32.mrf.mxu0 }
 0x31b   : > { %v8202_v39 = vadd.f32 %v2694_v2, %v2645_v32  ;;  %v2239_v56 = vadd.f32 %v2238_v23, %v2190_v1  ;;  %v2647_v10 = vpop.f32.mrf.mxu1  ;;  %v9665_v1 = vld [vmem:[#allocation40_spill] sm:$0xff] }
 0x31d   : > { %v8205_v63 = vmul.f32 %v2239_v56, %v9664_v52 }
 0x31e   : > { %2908 = vmatmul.bf16.vlgmr.msra.gmra.mxu2 %v6624_v37 }
 0x321   : > { %v2713_v35 = vpop.f32.mrf.mxu2 }
 0x322   : > { %v2696_v43 = vpop.f32.mrf.mxu3  ;;  %v2714_v32 = vadd.f32 %v2713_v35, %v7965_v57  ;;  %v2241_v54 = vpop.f32.mrf.mxu0  ;;  %v3171_v57 = vld [vmem:[%s9567_s5 + $0xe0] sm:$0xff] }
 0x323   : > { %v8220_v37 = vadd.f32 %v2696_v43, %v2647_v10  ;;  %v2242_v18 = vadd.f32 %v2241_v54, %v2193_v22  ;;  %v2650_v34 = vpop.f32.mrf.mxu1  ;;  %3295 = vmatpush.msrb.mxu2 %v3171_v57  ;;  %v2195_v22 = vadd.f32 %v2194_v15, %v7949_v21  ;;  %v3170_v21 = vld [vmem:[%s9567_s5 + $0xd8] sm:$0xff] }
 0x324   : > { %3047 = vst [vmem:[%s8217_s17] sm:$0xff] %v2714_v32  ;;  %v9666_v32 = vld [vmem:[#allocation41_spill] sm:$0xff] }
 0x325   : > { %v8224_v2 = vmul.f32 %v2242_v18, %v9665_v1  ;;  %2796 = vmatmul.bf16.gmra.mxu0 %v6882_v8  ;;  %3296 = vmatpush.msrb.mxu2 %v3170_v21 }
 0x326   : > { %2845 = vmatmul.bf16.gmra.mxu1 %v6884_v9 }
 0x327   : > { %5726 = vmatmul.msk.bf16.gmra.mxu3 %vm979_vm0, %v6823_v24 }
 0x329   : > { %v2715_v23 = vpop.f32.mrf.mxu2 }
 0x32a   : > { %v2699_v56 = vpop.f32.mrf.mxu3  ;;  %v2716_v10 = vadd.f32 %v2715_v23, %v7979_v45  ;;  %v2243_v52 = vpop.f32.mrf.mxu0 }
 0x32b   : > { %v8235_v58 = vadd.f32 %v2699_v56, %v2650_v34  ;;  %v2244_v35 = vadd.f32 %v2243_v52, %v2195_v22  ;;  %v2652_v43 = vpop.f32.mrf.mxu1  ;;  %v3169_v22 = vld [vmem:[%s9567_s5 + $0xd0] sm:$0xff] }
 0x32c   : > { %3050 = vst [vmem:[%s8217_s17 + $0x18] sm:$0xff] %v2716_v10  ;;  %3297 = vmatpush.msrb.mxu2 %v3169_v22 }
 0x32d   : > { %v8239_v54 = vmul.f32 %v2244_v35, %v9666_v32  ;;  %v3168_v32 = vld [vmem:[%s9567_s5 + $0xc8] sm:$0xff] }
 0x32e   : > { %2913 = vmatmul.bf16.gmra.mxu2 %v6647_v49  ;;  %v9667_v49 = vld [vmem:[#allocation28_spill] sm:$0xff] }
 0x32f   : > { %3298 = vmatpush.msrb.mxu2 %v3168_v32 }
 0x331   : > { %v2718_v15 = vpop.f32.mrf.mxu2 }
 0x332   : > { %v2701_v18 = vpop.f32.mrf.mxu3  ;;  %v2719_v45 = vadd.f32 %v2718_v15, %v7995_v42  ;;  %v2762_v1 = vpop.f32.mrf.mxu0  ;;  %v3177_v42 = vld [vmem:[%s9567_s5 + $0x110] sm:$0xff] }
 0x333   : > { %v8246_v34 = vadd.f32 %v2701_v18, %v2652_v43  ;;  %v2811_v57 = vpop.f32.mrf.mxu1  ;;  %3370 = vmatpush.msrb.mxu0 %v3177_v42  ;;  %v9668_v43 = vld [vmem:[#allocation29_spill] sm:$0xff] }
 0x334   : > { %3053 = vst [vmem:[%s8217_s17 + $0x30] sm:$0xff] %v2719_v45  ;;  %v2812_v23 = vadd.f32 %v2811_v57, %v2762_v1 }
 0x335   : > { %2957 = vmatmul.bf16.vlgmr.msra.gmra.mxu0 %v6626_v38 }
 0x336   : > { %5727 = vmatmul.msk.bf16.vlgmr.msra.gmra.mxu1 %vm979_vm0, %v6487_v29 }
 0x337   : > { %3243 = vmatmul.f32.vlgmr.msra.gmra.mxu3 %v9667_v49  ;;  %v3167_v49 = vld [vmem:[%s9567_s5 + $0xc0] sm:$0xff] }
 0x338   : > { %3299 = vmatpush.msrb.mxu2 %v3167_v49  ;;  %v3164_v49 = vld [vmem:[%s9567_s5 + $0xa8] sm:$0xff] }
 0x339   : > { %v2720_v56 = vpop.f32.mrf.mxu2 }
 0x33a   : > { %v2721_v10 = vadd.f32 %v2720_v56, %v8009_v19  ;;  %v2860_v38 = vpop.f32.mrf.mxu3  ;;  %v2764_v52 = vpop.f32.mrf.mxu0 }
 0x33b   : > { %v2861_v29 = vadd.f32 %v2860_v38, %v2812_v23  ;;  %v2813_v35 = vpop.f32.mrf.mxu1  ;;  %v3166_v38 = vld [vmem:[%s9567_s5 + $0xb8] sm:$0xff] }
 0x33c   : > { %3056 = vst [vmem:[%s8217_s17 + $0x48] sm:$0xff] %v2721_v10  ;;  %v2814_v21 = vadd.f32 %v2813_v35, %v2764_v52  ;;  %3300 = vmatpush.msrb.mxu2 %v3166_v38 }
 0x33d   : > { %3048 = vst [vmem:[%s8217_s17 + $0x8] sm:$0xff] %v2861_v29 }
 0x33e   : > { %2918 = vmatmul.bf16.gmra.mxu2 %v6670_v61  ;;  %v9669_v61 = vld [vmem:[#allocation30_spill] sm:$0xff] }
 0x33f   : > { %3246 = vmatmul.f32.gmra.mxu3 %v9668_v43 }
 0x341   : > { %v2723_v15 = vpop.f32.mrf.mxu2 }
 0x342   : > { %v2724_v19 = vadd.f32 %v2723_v15, %v8025_v11  ;;  %v2862_v18 = vpop.f32.mrf.mxu3  ;;  %v2767_v45 = vpop.f32.mrf.mxu0  ;;  %v3165_v15 = vld [vmem:[%s9567_s5 + $0xb0] sm:$0xff] }
 0x343   : > { %v2863_v1 = vadd.f32 %v2862_v18, %v2814_v21  ;;  %v2816_v57 = vpop.f32.mrf.mxu1  ;;  %3301 = vmatpush.msrb.mxu2 %v3165_v15 }
 0x344   : > { %3059 = vst [vmem:[%s8217_s17 + $0x60] sm:$0xff] %v2724_v19  ;;  %v2817_v11 = vadd.f32 %v2816_v57, %v2767_v45 }
 0x345   : > { %3051 = vst [vmem:[%s8217_s17 + $0x20] sm:$0xff] %v2863_v1  ;;  %2962 = vmatmul.bf16.gmra.mxu0 %v6649_v50  ;;  %3302 = vmatpush.msrb.mxu2 %v3164_v49 }
 0x346   : > { %5728 = vmatmul.msk.bf16.gmra.mxu1 %vm979_vm0, %v6586_v12  ;;  %v9670_v12 = vld [vmem:[#allocation31_spill] sm:$0xff] }
 0x347   : > { %3249 = vmatmul.f32.gmra.mxu3 %v9669_v61  ;;  %v9672_v61 = vld [vmem:[#allocation33_spill] sm:$0xff] }
 0x349   : > { %v2725_v22 = vpop.f32.mrf.mxu2 }
 0x34a   : > { %v2726_v42 = vadd.f32 %v2725_v22, %v8039_v6  ;;  %v2865_v23 = vpop.f32.mrf.mxu3  ;;  %v2769_v56 = vpop.f32.mrf.mxu0 }
 0x34b   : > { %v2866_v10 = vadd.f32 %v2865_v23, %v2817_v11  ;;  %v2818_v50 = vpop.f32.mrf.mxu1 }
 0x34c   : > { %3062 = vst [vmem:[%s8217_s17 + $0x78] sm:$0xff] %v2726_v42  ;;  %v2819_v52 = vadd.f32 %v2818_v50, %v2769_v56  ;;  %v3163_v50 = vld [vmem:[%s9567_s5 + $0xa0] sm:$0xff] }
 0x34d   : > { %3054 = vst [vmem:[%s8217_s17 + $0x38] sm:$0xff] %v2866_v10  ;;  %3303 = vmatpush.msrb.mxu2 %v3163_v50 }
 0x34e   : > { %2923 = vmatmul.bf16.gmra.mxu2 %v6699_v13  ;;  %v9671_v13 = vld [vmem:[#allocation32_spill] sm:$0xff] }
 0x34f   : > { %3252 = vmatmul.f32.gmra.mxu3 %v9670_v12 }
 0x351   : > { %v2728_v29 = vpop.f32.mrf.mxu2 }
 0x352   : > { %v2729_v6 = vadd.f32 %v2728_v29, %v8055_v51  ;;  %v2867_v35 = vpop.f32.mrf.mxu3  ;;  %v2772_v43 = vpop.f32.mrf.mxu0  ;;  %v3176_v51 = vld [vmem:[%s9567_s5 + $0x108] sm:$0xff] }
 0x353   : > { %v2868_v32 = vadd.f32 %v2867_v35, %v2819_v52  ;;  %v2821_v21 = vpop.f32.mrf.mxu1  ;;  %3371 = vmatpush.msrb.mxu0 %v3176_v51  ;;  %v3162_v35 = vld [vmem:[%s9567_s5 + $0x98] sm:$0xff] }
 0x354   : > { %3065 = vst [vmem:[%s8217_s17 + $0x90] sm:$0xff] %v2729_v6  ;;  %v2822_v19 = vadd.f32 %v2821_v21, %v2772_v43  ;;  %3304 = vmatpush.msrb.mxu2 %v3162_v35  ;;  %v3425_v35 = vld [vmem:[%s9569_s7 + $0x18] sm:$0xff] }
 0x355   : > { %3057 = vst [vmem:[%s8217_s17 + $0x50] sm:$0xff] %v2868_v32  ;;  %2967 = vmatmul.bf16.gmra.mxu0 %v6672_v62  ;;  %3490 = vmatpush.msrb.mxu1 %v3425_v35 }
 0x356   : > { %5729 = vmatmul.msk.bf16.gmra.mxu1 %vm979_vm0, %v6633_v41 }
 0x357   : > { %3255 = vmatmul.f32.gmra.mxu3 %v9671_v13 }
 0x359   : > { %v2730_v18 = vpop.f32.mrf.mxu2 }
 0x35a   : > { %v2731_v45 = vadd.f32 %v2730_v18, %v8069_v59  ;;  %v2870_v62 = vpop.f32.mrf.mxu3  ;;  %v2774_v1 = vpop.f32.mrf.mxu0 }
 0x35b   : > { %v2871_v41 = vadd.f32 %v2870_v62, %v2822_v19  ;;  %v2823_v57 = vpop.f32.mrf.mxu1  ;;  %v3161_v19 = vld [vmem:[%s9567_s5 + $0x90] sm:$0xff] }
 0x35c   : > { %3068 = vst [vmem:[%s8217_s17 + $0xa8] sm:$0xff] %v2731_v45  ;;  %v2824_v11 = vadd.f32 %v2823_v57, %v2774_v1  ;;  %3305 = vmatpush.msrb.mxu2 %v3161_v19  ;;  %v3160_v57 = vld [vmem:[%s9567_s5 + $0x88] sm:$0xff] }
 0x35d   : > { %3060 = vst [vmem:[%s8217_s17 + $0x68] sm:$0xff] %v2871_v41 }
 0x35e   : > { %2928 = vmatmul.bf16.gmra.mxu2 %v6722_v25  ;;  %v9673_v25 = vld [vmem:[#allocation34_spill] sm:$0xff] }
 0x35f   : > { %3258 = vmatmul.f32.gmra.mxu3 %v9672_v61  ;;  %3306 = vmatpush.msrb.mxu2 %v3160_v57  ;;  %v3159_v61 = vld [vmem:[%s9567_s5 + $0x80] sm:$0xff] }
 0x361   : > { %v2733_v22 = vpop.f32.mrf.mxu2  ;;  %3307 = vmatpush.msrb.mxu2 %v3159_v61 }
 0x362   : > { %v2734_v59 = vadd.f32 %v2733_v22, %v8097_v31  ;;  %v2872_v42 = vpop.f32.mrf.mxu3  ;;  %v2777_v23 = vpop.f32.mrf.mxu0 }
 0x363   : > { %v2873_v56 = vadd.f32 %v2872_v42, %v2824_v11  ;;  %v2826_v10 = vpop.f32.mrf.mxu1 }
 0x364   : > { %3071 = vst [vmem:[%s8217_s17 + $0xc0] sm:$0xff] %v2734_v59  ;;  %v2827_v31 = vadd.f32 %v2826_v10, %v2777_v23 }
 0x365   : > { %3063 = vst [vmem:[%s8217_s17 + $0x80] sm:$0xff] %v2873_v56  ;;  %2972 = vmatmul.bf16.gmra.mxu0 %v6701_v14 }
 0x366   : > { %5730 = vmatmul.msk.bf16.gmra.mxu1 %vm979_vm0, %v6656_v53  ;;  %v9674_v53 = vld [vmem:[#allocation35_spill] sm:$0xff] }
 0x367   : > { %3261 = vmatmul.f32.gmra.mxu3 %v9673_v25 }
 0x369   : > { %v2735_v12 = vpop.f32.mrf.mxu2 }
 0x36a   : > { %v2736_v38 = vadd.f32 %v2735_v12, %v8117_v36  ;;  %v2875_v52 = vpop.f32.mrf.mxu3  ;;  %v2779_v29 = vpop.f32.mrf.mxu0 }
 0x36b   : > { %v2876_v6 = vadd.f32 %v2875_v52, %v2827_v31  ;;  %v2828_v14 = vpop.f32.mrf.mxu1 }
 0x36c   : > { %3074 = vst [vmem:[%s8217_s17 + $0xd8] sm:$0xff] %v2736_v38  ;;  %v2829_v43 = vadd.f32 %v2828_v14, %v2779_v29 }
 0x36d   : > { %3066 = vst [vmem:[%s8217_s17 + $0x98] sm:$0xff] %v2876_v6 }
 0x36e   : > { %2933 = vmatmul.bf16.gmra.mxu2 %v6781_v0  ;;  %v9675_v0 = vld [vmem:[#allocation37_spill] sm:$0xff] }
 0x36f   : > { %3264 = vmatmul.f32.gmra.mxu3 %v9674_v53 }
 0x371   : > { %v2738_v32 = vpop.f32.mrf.mxu2 }
 0x372   : > { %v2739_v36 = vadd.f32 %v2738_v32, %v8145_v27  ;;  %v2877_v21 = vpop.f32.mrf.mxu3  ;;  %v2782_v13 = vpop.f32.mrf.mxu0  ;;  %v3175_v27 = vld [vmem:[%s9567_s5 + $0x100] sm:$0xff] }
 0x373   : > { %v2878_v15 = vadd.f32 %v2877_v21, %v2829_v43  ;;  %v2831_v51 = vpop.f32.mrf.mxu1  ;;  %3372 = vmatpush.msrb.mxu0 %v3175_v27 }
 0x374   : > { %3077 = vst [vmem:[%s8217_s17 + $0xf0] sm:$0xff] %v2739_v36  ;;  %v2832_v18 = vadd.f32 %v2831_v51, %v2782_v13  ;;  %v9681_v51 = vld [vmem:[#allocation12_spill] sm:$0xff] }
 0x375   : > { %3069 = vst [vmem:[%s8217_s17 + $0xb0] sm:$0xff] %v2878_v15  ;;  %2977 = vmatmul.bf16.gmra.mxu0 %v6724_v26  ;;  %v9680_v15 = vld [vmem:[#allocation15_spill] sm:$0xff] }
 0x376   : > { %5731 = vmatmul.msk.bf16.gmra.mxu1 %vm979_vm0, %v6685_v4 }
 0x377   : > { %3267 = vmatmul.f32.gmra.mxu3 %v9675_v0 }
 0x379   : > { %v2740_v45 = vpop.f32.mrf.mxu2 }
 0x37a   : > { %v2741_v26 = vadd.f32 %v2740_v45, %v8174_v28  ;;  %v2880_v62 = vpop.f32.mrf.mxu3  ;;  %v2784_v1 = vpop.f32.mrf.mxu0  ;;  %v9676_v28 = vld [vmem:[#allocation8_spill] sm:$0xff] }
 0x37b   : > { %v2881_v4 = vadd.f32 %v2880_v62, %v2832_v18  ;;  %v2833_v41 = vpop.f32.mrf.mxu1  ;;  %v9683_v62 = vld [vmem:[#allocation13_spill] sm:$0xff] }
 0x37c   : > { %3080 = vst [vmem:[%s8217_s17 + $0x108] sm:$0xff] %v2741_v26  ;;  %v2834_v49 = vadd.f32 %v2833_v41, %v2784_v1 }
 0x37d   : > { %3072 = vst [vmem:[%s8217_s17 + $0xc8] sm:$0xff] %v2881_v4 }
 0x37e   : > { %2938 = vmatmul.bf16.gmra.mxu2 %v6852_v47  ;;  %v9677_v47 = vld [vmem:[#allocation9_spill] sm:$0xff] }
 0x37f   : > { %3270 = vmatmul.f32.gmra.mxu3 %v9676_v28 }
 0x381   : > { %v2743_v11 = vpop.f32.mrf.mxu2 }
 0x382   : > { %v2744_v22 = vadd.f32 %v2743_v11, %v8202_v39  ;;  %v2882_v59 = vpop.f32.mrf.mxu3  ;;  %v2787_v42 = vpop.f32.mrf.mxu0  ;;  %v9685_v11 = vld [vmem:[#allocation14_spill] sm:$0xff] }
 0x383   : > { %v2883_v23 = vadd.f32 %v2882_v59, %v2834_v49  ;;  %v2836_v56 = vpop.f32.mrf.mxu1  ;;  %v9684_v49 = vld [vmem:[#allocation17_spill] sm:$0xff] }
 0x384   : > { %3083 = vst [vmem:[%s8217_s17 + $0x120] sm:$0xff] %v2744_v22  ;;  %v2837_v10 = vadd.f32 %v2836_v56, %v2787_v42 }
 0x385   : > { %3075 = vst [vmem:[%s8217_s17 + $0xe0] sm:$0xff] %v2883_v23  ;;  %2982 = vmatmul.bf16.gmra.mxu0 %v6792_v5  ;;  %v9678_v5 = vld [vmem:[#allocation10_spill] sm:$0xff] }
 0x386   : > { %5732 = vmatmul.msk.bf16.gmra.mxu1 %vm979_vm0, %v6708_v17 }
 0x387   : > { %3273 = vmatmul.f32.gmra.mxu3 %v9677_v47 }
 0x389   : > { %v2745_v25 = vpop.f32.mrf.mxu2 }
 0x38a   : > { %v2746_v50 = vadd.f32 %v2745_v25, %v8220_v37  ;;  %v2885_v39 = vpop.f32.mrf.mxu3  ;;  %v2789_v31 = vpop.f32.mrf.mxu0  ;;  %v3424_v25 = vld [vmem:[%s9569_s7 + $0x10] sm:$0xff] }
 0x38b   : > { %v2886_v12 = vadd.f32 %v2885_v39, %v2837_v10  ;;  %v2838_v38 = vpop.f32.mrf.mxu1  ;;  %v9686_v10 = vld [vmem:[#allocation18_spill] sm:$0xff]  ;;  %3491 = vmatpush.msrb.mxu1 %v3424_v25 }
 0x38c   : > { %3086 = vst [vmem:[%s8217_s17 + $0x138] sm:$0xff] %v2746_v50  ;;  %v2839_v52 = vadd.f32 %v2838_v38, %v2789_v31  ;;  %v3545_v50 = vld [vmem:[%s9570_s8 + $0x10] sm:$0xff] }
 0x38d   : > { %3078 = vst [vmem:[%s8217_s17 + $0xf8] sm:$0xff] %v2886_v12 }
 0x38e   : > { %2943 = vmatmul.bf16.gmra.mxu2 %v6882_v8  ;;  %v9679_v8 = vld [vmem:[#allocation11_spill] sm:$0xff] }
 0x38f   : > { %3276 = vmatmul.f32.gmra.mxu3 %v9678_v5  ;;  %v9687_v5 = vld [vmem:[#allocation19_spill] sm:$0xff] }
 0x391   : > { %v2748_v17 = vpop.f32.mrf.mxu2 }
 0x392   : > { %v2749_v29 = vadd.f32 %v2748_v17, %v8235_v58  ;;  %v2887_v6 = vpop.f32.mrf.mxu3  ;;  %v2792_v14 = vpop.f32.mrf.mxu0  ;;  %v3546_v58 = vld [vmem:[%s9570_s8 + $0x18] sm:$0xff] }
 0x393   : > { %v2888_v53 = vadd.f32 %v2887_v6, %v2839_v52  ;;  %v2841_v37 = vpop.f32.mrf.mxu1  ;;  %3563 = vmatpush.msrb.mxu3 %v3546_v58 }
 0x394   : > { %3089 = vst [vmem:[%s8217_s17 + $0x150] sm:$0xff] %v2749_v29  ;;  %v2842_v43 = vadd.f32 %v2841_v37, %v2792_v14 }
 0x395   : > { %3081 = vst [vmem:[%s8217_s17 + $0x110] sm:$0xff] %v2888_v53  ;;  %2987 = vmatmul.bf16.gmra.mxu0 %v6863_v55  ;;  %3564 = vmatpush.msrb.mxu3 %v3545_v50  ;;  %v9688_v53 = vld [vmem:[#allocation20_spill] sm:$0xff]  ;;  %v9696_v50 = vld [vmem:[#allocation43_spill] sm:$0xff] }
 0x396   : > { %5733 = vmatmul.msk.bf16.gmra.mxu1 %vm979_vm0, %v6761_v48 }
 0x397   : > { %3279 = vmatmul.f32.gmra.mxu3 %v9679_v8 }
 0x399   : > { %v2750_v32 = vpop.f32.mrf.mxu2 }
 0x39a   : > { %v2751_v55 = vadd.f32 %v2750_v32, %v8246_v34  ;;  %v2890_v36 = vpop.f32.mrf.mxu3  ;;  %v2794_v21 = vpop.f32.mrf.mxu0  ;;  %v9682_v34 = vld [vmem:[#allocation16_spill] sm:$0xff] }
 0x39b   : > { %v2891_v48 = vadd.f32 %v2890_v36, %v2842_v43  ;;  %v2843_v13 = vpop.f32.mrf.mxu1  ;;  %v9689_v43 = vld [vmem:[#allocation21_spill] sm:$0xff] }
 0x39c   : > { %3092 = vst [vmem:[%s8217_s17 + $0x168] sm:$0xff] %v2751_v55  ;;  %v2844_v0 = vadd.f32 %v2843_v13, %v2794_v21  ;;  %v3544_v13 = vld [vmem:[%s9570_s8 + $0x8] sm:$0xff] }
 0x39d   : > { %3084 = vst [vmem:[%s8217_s17 + $0x128] sm:$0xff] %v2891_v48  ;;  %v9690_v48 = vld [vmem:[#allocation22_spill] sm:$0xff]  ;;  %3565 = vmatpush.msrb.mxu3 %v3544_v13 }
 0x39e   : > { %3308 = vmatmul.f32.vlgmr.msrb.gmra.mxu2 %v9680_v15 }
 0x39f   : > { %3282 = vmatmul.f32.gmra.mxu3 %v9681_v51 }
 0x3a1   : > { %v2909_v19 = vpop.f32.mrf.mxu2 }
 0x3a2   : > { %v2892_v27 = vpop.f32.mrf.mxu3  ;;  %v2797_v18 = vpop.f32.mrf.mxu0 }
 0x3a3   : > { %v2893_v45 = vadd.f32 %v2892_v27, %v2844_v0  ;;  %v2846_v26 = vpop.f32.mrf.mxu1  ;;  %v9691_v27 = vld [vmem:[#allocation23_spill] sm:$0xff] }
 0x3a4   : > { %v2847_v1 = vadd.f32 %v2846_v26, %v2797_v18 }
 0x3a5   : > { %3087 = vst [vmem:[%s8217_s17 + $0x140] sm:$0xff] %v2893_v45  ;;  %2992 = vmatmul.bf16.gmra.mxu0 %v6884_v9 }
 0x3a6   : > { %3311 = vmatmul.f32.gmra.mxu2 %v9682_v34  ;;  %5734 = vmatmul.msk.bf16.gmra.mxu1 %vm979_vm0, %v6823_v24 }
 0x3a7   : > { %3285 = vmatmul.f32.gmra.mxu3 %v9683_v62 }
 0x3a9   : > { %v2911_v4 = vpop.f32.mrf.mxu2 }
 0x3aa   : > { %v2895_v41 = vpop.f32.mrf.mxu3  ;;  %v2799_v57 = vpop.f32.mrf.mxu0 }
 0x3ab   : > { %v2896_v61 = vadd.f32 %v2895_v41, %v2847_v1  ;;  %v2848_v28 = vpop.f32.mrf.mxu1  ;;  %v9692_v1 = vld [vmem:[#allocation24_spill] sm:$0xff] }
 0x3ac   : > { %v2849_v9 = vadd.f32 %v2848_v28, %v2799_v57  ;;  %v9693_v28 = vld [vmem:[#allocation25_spill] sm:$0xff] }
 0x3ad   : > { %3090 = vst [vmem:[%s8217_s17 + $0x158] sm:$0xff] %v2896_v61 }
 0x3ae   : > { %3314 = vmatmul.f32.gmra.mxu2 %v9684_v49 }
 0x3af   : > { %3288 = vmatmul.f32.gmra.mxu3 %v9685_v11 }
 0x3b1   : > { %v2914_v22 = vpop.f32.mrf.mxu2 }
 0x3b2   : > { %v2897_v59 = vpop.f32.mrf.mxu3  ;;  %v2958_v42 = vpop.f32.mrf.mxu0 }
 0x3b3   : > { %v2898_v24 = vadd.f32 %v2897_v59, %v2849_v9  ;;  %v2959_v23 = vadd.f32 %v2958_v42, %v2909_v19  ;;  %v3007_v56 = vpop.f32.mrf.mxu1  ;;  %v9694_v59 = vld [vmem:[#allocation27_spill] sm:$0xff]  ;;  %v9695_v42 = vld [vmem:[#allocation26_spill] sm:$0xff] }
 0x3b5   : > { %3093 = vst [vmem:[%s8217_s17 + $0x170] sm:$0xff] %v2898_v24  ;;  %v3008_v47 = vadd.f32 %v3007_v56, %v2959_v23  ;;  %5735 = vmatmul.msk.f32.vlgmr.msrb.gmra.mxu0 %vm979_vm0, %v7952_v44  ;;  %v3543_v24 = vld [vmem:[%s9570_s8] sm:$0xff] }
 0x3b6   : > { %3317 = vmatmul.f32.gmra.mxu2 %v9686_v10  ;;  %3566 = vmatpush.msrb.mxu3 %v3543_v24 }
 0x3b7   : > { %3049 = vst.msk [vmem:[%s8217_s17 + $0x10] sm:$0xff] %vm979_vm0, %v3008_v47 }
 0x3b9   : > { %v2916_v39 = vpop.f32.mrf.mxu2 }
 0x3ba   : > { %v2960_v31 = vpop.f32.mrf.mxu0 }
 0x3bb   : > { %v2961_v12 = vadd.f32 %v2960_v31, %v2911_v4  ;;  %v3009_v38 = vpop.f32.mrf.mxu1 }
 0x3bd   : > { %v3010_v44 = vadd.f32 %v3009_v38, %v2961_v12  ;;  %5736 = vmatmul.msk.f32.gmra.mxu0 %vm979_vm0, %v7968_v46 }
 0x3be   : > { %3320 = vmatmul.f32.gmra.mxu2 %v9687_v5  ;;  %v9697_v5 = vld [vmem:[#allocation44_spill] sm:$0xff] }
 0x3bf   : > { %3052 = vst.msk [vmem:[%s8217_s17 + $0x28] sm:$0xff] %vm979_vm0, %v3010_v44 }
 0x3c1   : > { %v2919_v52 = vpop.f32.mrf.mxu2 }
 0x3c2   : > { %v2963_v17 = vpop.f32.mrf.mxu0 }
 0x3c3   : > { %v2964_v29 = vadd.f32 %v2963_v17, %v2914_v22  ;;  %v3012_v6 = vpop.f32.mrf.mxu1 }
 0x3c5   : > { %v3013_v14 = vadd.f32 %v3012_v6, %v2964_v29  ;;  %5737 = vmatmul.msk.f32.gmra.mxu0 %vm979_vm0, %v7982_v40 }
 0x3c6   : > { %3323 = vmatmul.f32.gmra.mxu2 %v9688_v53  ;;  %v9699_v53 = vld [vmem:[#allocation45_spill] sm:$0xff] }
 0x3c7   : > { %3055 = vst.msk [vmem:[%s8217_s17 + $0x40] sm:$0xff] %vm979_vm0, %v3013_v14  ;;  %v9698_v14 = vld [vmem:[#allocation42_spill] sm:$0xff] }
 0x3c9   : > { %v2921_v37 = vpop.f32.mrf.mxu2 }
 0x3ca   : > { %v2965_v46 = vpop.f32.mrf.mxu0 }
 0x3cb   : > { %v2966_v8 = vadd.f32 %v2965_v46, %v2916_v39  ;;  %v3014_v35 = vpop.f32.mrf.mxu1 }
 0x3cd   : > { %v3015_v58 = vadd.f32 %v3014_v35, %v2966_v8  ;;  %5738 = vmatmul.msk.f32.gmra.mxu0 %vm979_vm0, %v7998_v16  ;;  %v3423_v16 = vld [vmem:[%s9569_s7 + $0x8] sm:$0xff] }
 0x3ce   : > { %3326 = vmatmul.f32.gmra.mxu2 %v9689_v43  ;;  %3492 = vmatpush.msrb.mxu1 %v3423_v16  ;;  %v9700_v43 = vld [vmem:[#allocation36_spill] sm:$0xff] }
 0x3cf   : > { %3058 = vst.msk [vmem:[%s8217_s17 + $0x58] sm:$0xff] %vm979_vm0, %v3015_v58 }
 0x3d1   : > { %v2924_v32 = vpop.f32.mrf.mxu2 }
 0x3d2   : > { %v2968_v55 = vpop.f32.mrf.mxu0 }
 0x3d3   : > { %v2969_v40 = vadd.f32 %v2968_v55, %v2919_v52  ;;  %v3017_v36 = vpop.f32.mrf.mxu1 }
 0x3d5   : > { %v3018_v21 = vadd.f32 %v3017_v36, %v2969_v40  ;;  %5739 = vmatmul.msk.f32.gmra.mxu0 %vm979_vm0, %v8012_v30 }
 0x3d6   : > { %3329 = vmatmul.f32.gmra.mxu2 %v9690_v48 }
 0x3d7   : > { %3061 = vst.msk [vmem:[%s8217_s17 + $0x70] sm:$0xff] %vm979_vm0, %v3018_v21 }
 0x3d9   : > { %v2926_v15 = vpop.f32.mrf.mxu2 }
 0x3da   : > { %v2970_v51 = vpop.f32.mrf.mxu0 }
 0x3db   : > { %v2971_v0 = vadd.f32 %v2970_v51, %v2921_v37  ;;  %v3019_v19 = vpop.f32.mrf.mxu1 }
 0x3dd   : > { %v3020_v30 = vadd.f32 %v3019_v19, %v2971_v0  ;;  %5740 = vmatmul.msk.f32.gmra.mxu0 %vm979_vm0, %v8028_v33 }
 0x3de   : > { %3332 = vmatmul.f32.gmra.mxu2 %v9691_v27 }
 0x3df   : > { %3064 = vst.msk [vmem:[%s8217_s17 + $0x88] sm:$0xff] %vm979_vm0, %v3020_v30 }
 0x3e1   : > { %v2929_v18 = vpop.f32.mrf.mxu2 }
 0x3e2   : > { %v2973_v45 = vpop.f32.mrf.mxu0 }
 0x3e3   : > { %v2974_v26 = vadd.f32 %v2973_v45, %v2924_v32  ;;  %v3022_v34 = vpop.f32.mrf.mxu1  ;;  %v9701_v32 = vld [vmem:[#allocation46_spill] sm:$0xff] }
 0x3e5   : > { %v3023_v62 = vadd.f32 %v3022_v34, %v2974_v26  ;;  %5741 = vmatmul.msk.f32.gmra.mxu0 %vm979_vm0, %v8042_v60 }
 0x3e6   : > { %3335 = vmatmul.f32.gmra.mxu2 %v9692_v1 }
 0x3e7   : > { %3067 = vst.msk [vmem:[%s8217_s17 + $0xa0] sm:$0xff] %vm979_vm0, %v3023_v62 }
 0x3e9   : > { %v2931_v4 = vpop.f32.mrf.mxu2 }
 0x3ea   : > { %v2975_v33 = vpop.f32.mrf.mxu0 }
 0x3eb   : > { %v2976_v41 = vadd.f32 %v2975_v33, %v2926_v15  ;;  %v3024_v57 = vpop.f32.mrf.mxu1 }
 0x3ed   : > { %v3025_v61 = vadd.f32 %v3024_v57, %v2976_v41  ;;  %5742 = vmatmul.msk.f32.gmra.mxu0 %vm979_vm0, %v8058_v7  ;;  %v3422_v7 = vld [vmem:[%s9569_s7] sm:$0xff] }
 0x3ee   : > { %3338 = vmatmul.f32.gmra.mxu2 %v9693_v28  ;;  %3493 = vmatpush.msrb.mxu1 %v3422_v7 }
 0x3ef   : > { %3070 = vst.msk [vmem:[%s8217_s17 + $0xb8] sm:$0xff] %vm979_vm0, %v3025_v61 }
 0x3f1   : > { %v2934_v49 = vpop.f32.mrf.mxu2 }
 0x3f2   : > { %v2978_v11 = vpop.f32.mrf.mxu0 }
 0x3f3   : > { %v2979_v60 = vadd.f32 %v2978_v11, %v2929_v18  ;;  %v3027_v9 = vpop.f32.mrf.mxu1 }
 0x3f5   : > { %v3028_v22 = vadd.f32 %v3027_v9, %v2979_v60  ;;  %5743 = vmatmul.msk.f32.gmra.mxu0 %vm979_vm0, %v9694_v59 }
 0x3f6   : > { %3341 = vmatmul.f32.gmra.mxu2 %v9695_v42 }
 0x3f7   : > { %3073 = vst.msk [vmem:[%s8217_s17 + $0xd0] sm:$0xff] %vm979_vm0, %v3028_v22 }
 0x3f9   : > { %v2936_v23 = vpop.f32.mrf.mxu2 }
 0x3fa   : > { %v2980_v56 = vpop.f32.mrf.mxu0 }
 0x3fb   : > { %v2981_v47 = vadd.f32 %v2980_v56, %v2931_v4  ;;  %v3029_v10 = vpop.f32.mrf.mxu1 }
 0x3fd   : > { %v3030_v25 = vadd.f32 %v3029_v10, %v2981_v47  ;;  %5744 = vmatmul.msk.f32.gmra.mxu0 %vm979_vm0, %v8103_v3 }
 0x3fe   : > { %3344 = vmatmul.f32.gmra.mxu2 %v9696_v50 }
 0x3ff   : > { %3076 = vst.msk [vmem:[%s8217_s17 + $0xe8] sm:$0xff] %vm979_vm0, %v3030_v25 }
 0x401   : > { %v2939_v39 = vpop.f32.mrf.mxu2 }
 0x402   : > { %v2983_v31 = vpop.f32.mrf.mxu0 }
 0x403   : > { %v2984_v12 = vadd.f32 %v2983_v31, %v2934_v49  ;;  %v3032_v38 = vpop.f32.mrf.mxu1 }
 0x405   : > { %v3033_v44 = vadd.f32 %v3032_v38, %v2984_v12  ;;  %5745 = vmatmul.msk.f32.gmra.mxu0 %vm979_vm0, %v8123_v20  ;;  %v3244_v20 = vpop.f32.mrf.mxu3 }
 0x406   : > { %3347 = vmatmul.f32.gmra.mxu2 %v9697_v5 }
 0x407   : > { %3079 = vst.msk [vmem:[%s8217_s17 + $0x100] sm:$0xff] %vm979_vm0, %v3033_v44 }
 0x409   : > { %v2941_v52 = vpop.f32.mrf.mxu2 }
 0x40a   : > { %v2985_v3 = vpop.f32.mrf.mxu0 }
 0x40b   : > { %v2986_v17 = vadd.f32 %v2985_v3, %v2936_v23  ;;  %v3034_v29 = vpop.f32.mrf.mxu1 }
 0x40d   : > { %v3035_v6 = vadd.f32 %v3034_v29, %v2986_v17  ;;  %5746 = vmatmul.msk.f32.gmra.mxu0 %vm979_vm0, %v9698_v14  ;;  %v3247_v48 = vpop.f32.mrf.mxu3 }
 0x40e   : > { %3350 = vmatmul.f32.gmra.mxu2 %v9699_v53 }
 0x40f   : > { %3082 = vst.msk [vmem:[%s8217_s17 + $0x118] sm:$0xff] %vm979_vm0, %v3035_v6 }
 0x411   : > { %v2944_v37 = vpop.f32.mrf.mxu2 }
 0x412   : > { %v2988_v46 = vpop.f32.mrf.mxu0 }
 0x413   : > { %v2989_v8 = vadd.f32 %v2988_v46, %v2939_v39  ;;  %v3037_v35 = vpop.f32.mrf.mxu1 }
 0x415   : > { %v3038_v58 = vadd.f32 %v3037_v35, %v2989_v8  ;;  %5747 = vmatmul.msk.f32.gmra.mxu0 %vm979_vm0, %v9700_v43  ;;  %v3250_v30 = vpop.f32.mrf.mxu3 }
 0x416   : > { %3353 = vmatmul.f32.gmra.mxu2 %v9701_v32 }
 0x417   : > { %3085 = vst.msk [vmem:[%s8217_s17 + $0x130] sm:$0xff] %vm979_vm0, %v3038_v58 }
 0x419   : > { %v2946_v55 = vpop.f32.mrf.mxu2 }
 0x41a   : > { %v2990_v40 = vpop.f32.mrf.mxu0 }
 0x41b   : > { %v2991_v36 = vadd.f32 %v2990_v40, %v2941_v52  ;;  %v3039_v21 = vpop.f32.mrf.mxu1 }
 0x41d   : > { %v3040_v16 = vadd.f32 %v3039_v21, %v2991_v36  ;;  %5748 = vmatmul.msk.f32.gmra.mxu0 %vm979_vm0, %v8205_v63  ;;  %v3253_v63 = vpop.f32.mrf.mxu3 }
 0x41f   : > { %3088 = vst.msk [vmem:[%s8217_s17 + $0x148] sm:$0xff] %vm979_vm0, %v3040_v16 }
 0x421   : > { %v3309_v13 = vpop.f32.mrf.mxu2 }
 0x422   : > { %v2993_v15 = vpop.f32.mrf.mxu0  ;;  %v3310_v62 = vadd.f32 %v3309_v13, %v3244_v20 }
 0x423   : > { %v2994_v51 = vadd.f32 %v2993_v15, %v2944_v37  ;;  %v3042_v0 = vpop.f32.mrf.mxu1 }
 0x425   : > { %v3043_v19 = vadd.f32 %v3042_v0, %v2994_v51  ;;  %5749 = vmatmul.msk.f32.gmra.mxu0 %vm979_vm0, %v8224_v2  ;;  %v3256_v57 = vpop.f32.mrf.mxu3 }
 0x427   : > { %3091 = vst.msk [vmem:[%s8217_s17 + $0x160] sm:$0xff] %vm979_vm0, %v3043_v19 }
 0x429   : > { %v3312_v27 = vpop.f32.mrf.mxu2 }
 0x42a   : > { %v2995_v18 = vpop.f32.mrf.mxu0  ;;  %v3313_v2 = vadd.f32 %v3312_v27, %v3247_v48 }
 0x42b   : > { %v2996_v45 = vadd.f32 %v2995_v18, %v2946_v55  ;;  %v3044_v26 = vpop.f32.mrf.mxu1 }
 0x42d   : > { %v3045_v34 = vadd.f32 %v3044_v26, %v2996_v45  ;;  %5750 = vmatmul.msk.f32.gmra.mxu0 %vm979_vm0, %v8239_v54  ;;  %v3259_v9 = vpop.f32.mrf.mxu3 }
 0x42f   : > { %3094 = vst.msk [vmem:[%s8217_s17 + $0x178] sm:$0xff] %vm979_vm0, %v3045_v34 }
 0x431   : > { %v3315_v1 = vpop.f32.mrf.mxu2 }
 0x432   : > { %v3374_v4 = vpop.f32.mrf.mxu0  ;;  %v3316_v54 = vadd.f32 %v3315_v1, %v3250_v30 }
 0x433   : > { %v3375_v33 = vadd.f32 %v3374_v4, %v3310_v62 }
 0x435   : > { %5751 = vmatmul.msk.f32.vlgmr.msrb.gmra.mxu1 %vm979_vm0, %v3375_v33  ;;  %5767 = vmatmul.msk.f32.vlgmr.msrb.gmra.mxu3 %vm979_vm0, %v3375_v33  ;;  %v3262_v24 = vpop.f32.mrf.mxu3 }
 0x439   : > { %v3318_v41 = vpop.f32.mrf.mxu2 }
 0x43a   : > { %v3377_v61 = vpop.f32.mrf.mxu0  ;;  %v3319_v22 = vadd.f32 %v3318_v41, %v3253_v63 }
 0x43b   : > { %v3378_v28 = vadd.f32 %v3377_v61, %v3313_v2 }
 0x43d   : > { %5752 = vmatmul.msk.f32.gmra.mxu1 %vm979_vm0, %v3378_v28  ;;  %5768 = vmatmul.msk.f32.gmra.mxu3 %vm979_vm0, %v3378_v28  ;;  %v3265_v25 = vpop.f32.mrf.mxu3 }
 0x441   : > { %v3321_v49 = vpop.f32.mrf.mxu2 }
 0x442   : > { %v3380_v11 = vpop.f32.mrf.mxu0  ;;  %v3322_v23 = vadd.f32 %v3321_v49, %v3256_v57  ;;  %v8518_v49 = vld [vmem:[%s9571_s9] ss:$0 sm:$0xff] }
 0x443   : > { %v3381_v60 = vadd.f32 %v3380_v11, %v3316_v54 }
 0x445   : > { %5753 = vmatmul.msk.f32.gmra.mxu1 %vm979_vm0, %v3381_v60  ;;  %5769 = vmatmul.msk.f32.gmra.mxu3 %vm979_vm0, %v3381_v60  ;;  %v3268_v5 = vpop.f32.mrf.mxu3 }
 0x449   : > { %v3324_v59 = vpop.f32.mrf.mxu2 }
 0x44a   : > { %v3383_v42 = vpop.f32.mrf.mxu0  ;;  %v3325_v50 = vadd.f32 %v3324_v59, %v3259_v9 }
 0x44b   : > { %v3384_v7 = vadd.f32 %v3383_v42, %v3319_v22  ;;  %v8528_v22 = vld [vmem:[%s9572_s10] ss:$0 sm:$0xff] }
 0x44d   : > { %5754 = vmatmul.msk.f32.gmra.mxu1 %vm979_vm0, %v3384_v7  ;;  %5770 = vmatmul.msk.f32.gmra.mxu3 %vm979_vm0, %v3384_v7  ;;  %v3271_v53 = vpop.f32.mrf.mxu3 }
 0x451   : > { %v3327_v56 = vpop.f32.mrf.mxu2 }
 0x452   : > { %v3386_v47 = vpop.f32.mrf.mxu0  ;;  %v3328_v38 = vadd.f32 %v3327_v56, %v3262_v24 }
 0x453   : > { %v3387_v10 = vadd.f32 %v3386_v47, %v3322_v23 }
 0x455   : > { %5755 = vmatmul.msk.f32.gmra.mxu1 %vm979_vm0, %v3387_v10  ;;  %5771 = vmatmul.msk.f32.gmra.mxu3 %vm979_vm0, %v3387_v10  ;;  %v3274_v35 = vpop.f32.mrf.mxu3 }
 0x459   : > { %v3330_v39 = vpop.f32.mrf.mxu2 }
 0x45a   : > { %v3389_v31 = vpop.f32.mrf.mxu0  ;;  %v3331_v17 = vadd.f32 %v3330_v39, %v3265_v25 }
 0x45b   : > { %v3390_v12 = vadd.f32 %v3389_v31, %v3325_v50 }
 0x45d   : > { %5756 = vmatmul.msk.f32.gmra.mxu1 %vm979_vm0, %v3390_v12  ;;  %5772 = vmatmul.msk.f32.gmra.mxu3 %vm979_vm0, %v3390_v12  ;;  %v3277_v40 = vpop.f32.mrf.mxu3 }
 0x461   : > { %v3333_v44 = vpop.f32.mrf.mxu2 }
 0x462   : > { %v3392_v52 = vpop.f32.mrf.mxu0  ;;  %v3334_v37 = vadd.f32 %v3333_v44, %v3268_v5 }
 0x463   : > { %v3393_v3 = vadd.f32 %v3392_v52, %v3328_v38 }
 0x465   : > { %5757 = vmatmul.msk.f32.gmra.mxu1 %vm979_vm0, %v3393_v3  ;;  %5773 = vmatmul.msk.f32.gmra.mxu3 %vm979_vm0, %v3393_v3  ;;  %v3280_v15 = vpop.f32.mrf.mxu3 }
 0x469   : > { %v3336_v29 = vpop.f32.mrf.mxu2 }
 0x46a   : > { %v3395_v6 = vpop.f32.mrf.mxu0  ;;  %v3337_v58 = vadd.f32 %v3336_v29, %v3271_v53 }
 0x46b   : > { %v3396_v14 = vadd.f32 %v3395_v6, %v3331_v17 }
 0x46d   : > { %5758 = vmatmul.msk.f32.gmra.mxu1 %vm979_vm0, %v3396_v14  ;;  %5774 = vmatmul.msk.f32.gmra.mxu3 %vm979_vm0, %v3396_v14  ;;  %v3283_v45 = vpop.f32.mrf.mxu3 }
 0x471   : > { %v3339_v8 = vpop.f32.mrf.mxu2 }
 0x472   : > { %v3398_v20 = vpop.f32.mrf.mxu0  ;;  %v3340_v36 = vadd.f32 %v3339_v8, %v3274_v35 }
 0x473   : > { %v3399_v46 = vadd.f32 %v3398_v20, %v3334_v37 }
 0x475   : > { %5759 = vmatmul.msk.f32.gmra.mxu1 %vm979_vm0, %v3399_v46  ;;  %5775 = vmatmul.msk.f32.gmra.mxu3 %vm979_vm0, %v3399_v46  ;;  %v3286_v1 = vpop.f32.mrf.mxu3 }
 0x479   : > { %v3342_v55 = vpop.f32.mrf.mxu2 }
 0x47a   : > { %v3401_v43 = vpop.f32.mrf.mxu0  ;;  %v3343_v13 = vadd.f32 %v3342_v55, %v3277_v40 }
 0x47b   : > { %v3402_v32 = vadd.f32 %v3401_v43, %v3337_v58 }
 0x47d   : > { %5760 = vmatmul.msk.f32.gmra.mxu1 %vm979_vm0, %v3402_v32  ;;  %5776 = vmatmul.msk.f32.gmra.mxu3 %vm979_vm0, %v3402_v32  ;;  %v3289_v57 = vpop.f32.mrf.mxu3 }
 0x481   : > { %v3345_v16 = vpop.f32.mrf.mxu2 }
 0x482   : > { %v3404_v21 = vpop.f32.mrf.mxu0  ;;  %v3346_v19 = vadd.f32 %v3345_v16, %v3280_v15 }
 0x483   : > { %v3405_v48 = vadd.f32 %v3404_v21, %v3340_v36 }
 0x485   : > { %5761 = vmatmul.msk.f32.gmra.mxu1 %vm979_vm0, %v3405_v48  ;;  %5777 = vmatmul.msk.f32.gmra.mxu3 %vm979_vm0, %v3405_v48 }
 0x489   : > { %v3348_v30 = vpop.f32.mrf.mxu2 }
 0x48a   : > { %v3407_v51 = vpop.f32.mrf.mxu0  ;;  %v3349_v26 = vadd.f32 %v3348_v30, %v3283_v45 }
 0x48b   : > { %v3408_v0 = vadd.f32 %v3407_v51, %v3343_v13 }
 0x48d   : > { %5762 = vmatmul.msk.f32.gmra.mxu1 %vm979_vm0, %v3408_v0  ;;  %5778 = vmatmul.msk.f32.gmra.mxu3 %vm979_vm0, %v3408_v0 }
 0x491   : > { %v3351_v62 = vpop.f32.mrf.mxu2 }
 0x492   : > { %v3410_v27 = vpop.f32.mrf.mxu0  ;;  %v3352_v4 = vadd.f32 %v3351_v62, %v3286_v1 }
 0x493   : > { %v3411_v18 = vadd.f32 %v3410_v27, %v3346_v19 }
 0x495   : > { %5763 = vmatmul.msk.f32.gmra.mxu1 %vm979_vm0, %v3411_v18  ;;  %5779 = vmatmul.msk.f32.gmra.mxu3 %vm979_vm0, %v3411_v18 }
 0x499   : > { %v3354_v41 = vpop.f32.mrf.mxu2 }
 0x49a   : > { %v3413_v34 = vpop.f32.mrf.mxu0  ;;  %v3355_v61 = vadd.f32 %v3354_v41, %v3289_v57  ;;  %v4399_v57 = vld [vmem:[#allocation4] sm:$0xff] }
 0x49b   : > { %v3414_v63 = vadd.f32 %v3413_v34, %v3349_v26  ;;  %v4402_v26 = vld [vmem:[#allocation4 + $0x18] sm:$0xff]  ;;  %v4401_v34 = vld [vmem:[#allocation4 + $0x10] sm:$0xff] }
 0x49c   : > { %4467 = vmatpush.msra.mxu3 %v4402_v26 }
 0x49d   : > { %5764 = vmatmul.msk.f32.gmra.mxu1 %vm979_vm0, %v3414_v63  ;;  %5780 = vmatmul.msk.f32.gmra.mxu3 %vm979_vm0, %v3414_v63 }
 0x49e   : > { %4468 = vmatpush.msra.mxu3 %v4401_v34 }
 0x4a2   : > { %v3416_v33 = vpop.f32.mrf.mxu0 }
 0x4a3   : > { %v3417_v2 = vadd.f32 %v3416_v33, %v3352_v4  ;;  %v4400_v4 = vld [vmem:[#allocation4 + $0x8] sm:$0xff] }
 0x4a4   : > { %4469 = vmatpush.msra.mxu3 %v4400_v4 }
 0x4a5   : > { %5765 = vmatmul.msk.f32.gmra.mxu1 %vm979_vm0, %v3417_v2  ;;  %5781 = vmatmul.msk.f32.gmra.mxu3 %vm979_vm0, %v3417_v2 }
 0x4a6   : > { %4470 = vmatpush.msra.mxu3 %v4399_v57 }
 0x4aa   : > { %v3419_v28 = vpop.f32.mrf.mxu0 }
 0x4ab   : > { %v3420_v54 = vadd.f32 %v3419_v28, %v3355_v61  ;;  %v4383_v61 = vld [vmem:[%s8614_s28] sm:$0xff] }
 0x4ad   : > { %5766 = vmatmul.msk.f32.gmra.mxu1 %vm979_vm0, %v3420_v54  ;;  %5782 = vmatmul.msk.f32.gmra.mxu3 %vm979_vm0, %v3420_v54 }
 0x4b2   : > { %v3495_v11 = vpop.f32.mrf.mxu1 }
 0x4b3   : > { %v8521_v60 = vadd.f32 %v8518_v49, %v3495_v11 }
 0x4b5   : > { %v3616_v9 = vsel %vm979_vm0, %v8521_v60, -inf  ;;  %5831 = vmatmul.msk.f32.vlgmr.msra.gmra.mxu3 %vm979_vm0, %v4383_v61  ;;  %v4392_v61 = vld [vmem:[%s8614_s28 + $0x48] sm:$0xff] }
 0x4b6   : > { %3617 = vmax.xlane.f32.xlu0 %v3616_v9 }
 0x4b8   : > { %v3568_v59 = vpop.f32.mrf.mxu3 }
 0x4b9   : > { %v8531_v42 = vadd.f32 %v8528_v22, %v3568_v59 }
 0x4ba   : > { %v3498_v7 = vpop.f32.mrf.mxu1 }
 0x4bb   : > { %v8534_v24 = vadd.f32 %v8518_v49, %v3498_v7  ;;  %v3664_v56 = vsel %vm979_vm0, %v8531_v42, -inf  ;;  %v4384_v7 = vld [vmem:[%s8614_s28 + $0x8] sm:$0xff] }
 0x4bd   : > { %v3619_v23 = vsel %vm979_vm0, %v8534_v24, -inf  ;;  %5832 = vmatmul.msk.f32.gmra.mxu3 %vm979_vm0, %v4384_v7 }
 0x4be   : > { %3620 = vmax.xlane.f32.xlu1 %v3619_v23  ;;  %3665 = vmax.xlane.f32.xlu0 %v3664_v56 }
 0x4c0   : > { %v3571_v47 = vpop.f32.mrf.mxu3 }
 0x4c1   : > { %v8541_v10 = vadd.f32 %v8528_v22, %v3571_v47 }
 0x4c2   : > { %v3501_v25 = vpop.f32.mrf.mxu1 }
 0x4c3   : > { %v8544_v50 = vadd.f32 %v8518_v49, %v3501_v25  ;;  %v3667_v31 = vsel %vm979_vm0, %v8541_v10, -inf }
 0x4c5   : > { %v3622_v39 = vsel %vm979_vm0, %v8544_v50, -inf }
 0x4c6   : > { %3623 = vmax.xlane.f32.xlu2 %v3622_v39  ;;  %3668 = vmax.xlane.f32.xlu1 %v3667_v31 }
 0x4c8   : > { %v3574_v12 = vpop.f32.mrf.mxu3 }
 0x4c9   : > { %v8551_v38 = vadd.f32 %v8528_v22, %v3574_v12  ;;  %v4385_v12 = vld [vmem:[%s8614_s28 + $0x10] sm:$0xff] }
 0x4ca   : > { %v3504_v44 = vpop.f32.mrf.mxu1  ;;  %5833 = vmatmul.msk.f32.gmra.mxu3 %vm979_vm0, %v4385_v12 }
 0x4cb   : > { %v8554_v5 = vadd.f32 %v8518_v49, %v3504_v44  ;;  %v3670_v52 = vsel %vm979_vm0, %v8551_v38, -inf }
 0x4cd   : > { %v3625_v3 = vsel %vm979_vm0, %v8554_v5, -inf }
 0x4ce   : > { %3671 = vmax.xlane.f32.xlu2 %v3670_v52  ;;  %3626 = vmax.xlane.f32.xlu0 %v3625_v3 }
 0x4d0   : > { %v3577_v17 = vpop.f32.mrf.mxu3 }
 0x4d1   : > { %v8561_v29 = vadd.f32 %v8528_v22, %v3577_v17  ;;  %v4386_v17 = vld [vmem:[%s8614_s28 + $0x18] sm:$0xff] }
 0x4d2   : > { %v3507_v6 = vpop.f32.mrf.mxu1  ;;  %5834 = vmatmul.msk.f32.gmra.mxu3 %vm979_vm0, %v4386_v17 }
 0x4d3   : > { %v8564_v14 = vadd.f32 %v8518_v49, %v3507_v6  ;;  %v3673_v53 = vsel %vm979_vm0, %v8561_v29, -inf  ;;  %v4387_v6 = vld [vmem:[%s8614_s28 + $0x20] sm:$0xff] }
 0x4d4   : > { %3674 = vmax.xlane.f32.xlu1 %v3673_v53  ;;  %v4388_v53 = vld [vmem:[%s8614_s28 + $0x28] sm:$0xff] }
 0x4d5   : > { %v3628_v37 = vsel %vm979_vm0, %v8564_v14, -inf }
 0x4d6   : > { %3629 = vmax.xlane.f32.xlu2 %v3628_v37 }
 0x4d8   : > { %v3580_v20 = vpop.f32.mrf.mxu3 }
 0x4d9   : > { %v8571_v46 = vadd.f32 %v8528_v22, %v3580_v20  ;;  %v4389_v20 = vld [vmem:[%s8614_s28 + $0x30] sm:$0xff] }
 0x4da   : > { %v3510_v8 = vpop.f32.mrf.mxu1  ;;  %5835 = vmatmul.msk.f32.gmra.mxu3 %vm979_vm0, %v4387_v6 }
 0x4db   : > { %v8574_v35 = vadd.f32 %v8518_v49, %v3510_v8  ;;  %v3676_v58 = vsel %vm979_vm0, %v8571_v46, -inf }
 0x4dc   : > { %3677 = vmax.xlane.f32.xlu0 %v3676_v58 }
 0x4dd   : > { %v3631_v43 = vsel %vm979_vm0, %v8574_v35, -inf }
 0x4de   : > { %3632 = vmax.xlane.f32.xlu1 %v3631_v43 }
 0x4e0   : > { %v3583_v32 = vpop.f32.mrf.mxu3 }
 0x4e1   : > { %v8581_v55 = vadd.f32 %v8528_v22, %v3583_v32 }
 0x4e2   : > { %v3513_v40 = vpop.f32.mrf.mxu1  ;;  %5836 = vmatmul.msk.f32.gmra.mxu3 %vm979_vm0, %v4388_v53 }
 0x4e3   : > { %v8584_v36 = vadd.f32 %v8518_v49, %v3513_v40  ;;  %v3679_v21 = vsel %vm979_vm0, %v8581_v55, -inf }
 0x4e4   : > { %3680 = vmax.xlane.f32.xlu2 %v3679_v21  ;;  %v4390_v21 = vld [vmem:[%s8614_s28 + $0x38] sm:$0xff] }
 0x4e5   : > { %v3634_v48 = vsel %vm979_vm0, %v8584_v36, -inf }
 0x4e6   : > { %3635 = vmax.xlane.f32.xlu0 %v3634_v48 }
 0x4e8   : > { %v3586_v16 = vpop.f32.mrf.mxu3 }
 0x4e9   : > { %v8591_v13 = vadd.f32 %v8528_v22, %v3586_v16 }
 0x4ea   : > { %v3516_v15 = vpop.f32.mrf.mxu1  ;;  %5837 = vmatmul.msk.f32.gmra.mxu3 %vm979_vm0, %v4389_v20  ;;  %v4393_v20 = vld [vmem:[%s8614_s28 + $0x50] sm:$0xff] }
 0x4eb   : > { %v3682_v51 = vsel %vm979_vm0, %v8591_v13, -inf  ;;  %v8596_v0 = vadd.f32 %v8518_v49, %v3516_v15 }
 0x4ec   : > { %3683 = vmax.xlane.f32.xlu1 %v3682_v51 }
 0x4ed   : > { %v3637_v45 = vsel %vm979_vm0, %v8596_v0, -inf }
 0x4f0   : > { %v3589_v19 = vpop.f32.mrf.mxu3 }
 0x4f1   : > { %v8599_v30 = vadd.f32 %v8528_v22, %v3589_v19 }
 0x4f2   : > { %v3519_v27 = vpop.f32.mrf.mxu1  ;;  %5838 = vmatmul.msk.f32.gmra.mxu3 %vm979_vm0, %v4390_v21 }
 0x4f3   : > { %v3685_v18 = vsel %vm979_vm0, %v8599_v30, -inf  ;;  %v8607_v63 = vadd.f32 %v8518_v49, %v3519_v27 }
 0x4f4   : > { %3686 = vmax.xlane.f32.xlu2 %v3685_v18  ;;  %3638 = vmax.xlane.f32.xlu1 %v3637_v45  ;;  %v4391_v45 = vld [vmem:[%s8614_s28 + $0x40] sm:$0xff] }
 0x4f5   : > { %v3640_v2 = vsel %vm979_vm0, %v8607_v63, -inf }
 0x4f8   : > { %v3592_v62 = vpop.f32.mrf.mxu3 }
 0x4f9   : > { %v8617_v1 = vadd.f32 %v8528_v22, %v3592_v62 }
 0x4fa   : > { %v3522_v33 = vpop.f32.mrf.mxu1  ;;  %5839 = vmatmul.msk.f32.gmra.mxu3 %vm979_vm0, %v4391_v45 }
 0x4fb   : > { %v3688_v41 = vsel %vm979_vm0, %v8617_v1, -inf  ;;  %v8626_v28 = vadd.f32 %v8518_v49, %v3522_v33 }
 0x4fc   : > { %3641 = vmax.xlane.f32.xlu2 %v3640_v2  ;;  %3689 = vmax.xlane.f32.xlu0 %v3688_v41 }
 0x4fd   : > { %v3643_v59 = vsel %vm979_vm0, %v8626_v28, -inf }
 0x500   : > { %v3595_v54 = vpop.f32.mrf.mxu3 }
 0x501   : > { %v8629_v11 = vadd.f32 %v8528_v22, %v3595_v54 }
 0x502   : > { %v3525_v23 = vpop.f32.mrf.mxu1  ;;  %5840 = vmatmul.msk.f32.gmra.mxu3 %vm979_vm0, %v4392_v61 }
 0x503   : > { %v3691_v9 = vsel %vm979_vm0, %v8629_v11, -inf  ;;  %v8638_v56 = vadd.f32 %v8518_v49, %v3525_v23 }
 0x504   : > { %3692 = vmax.xlane.f32.xlu1 %v3691_v9  ;;  %3644 = vmax.xlane.f32.xlu0 %v3643_v59 }
 0x505   : > { %v3646_v31 = vsel %vm979_vm0, %v8638_v56, -inf }
 0x508   : > { %v3598_v47 = vpop.f32.mrf.mxu3 }
 0x509   : > { %v8641_v25 = vadd.f32 %v8528_v22, %v3598_v47 }
 0x50a   : > { %v3528_v62 = vpop.f32.mrf.mxu1  ;;  %5841 = vmatmul.msk.f32.gmra.mxu3 %vm979_vm0, %v4393_v20 }
 0x50b   : > { %v3694_v39 = vsel %vm979_vm0, %v8641_v25, -inf  ;;  %v8679_v2 = vadd.f32 %v8518_v49, %v3528_v62 }
 0x50c   : > { %3695 = vmax.xlane.f32.xlu2 %v3694_v39  ;;  %3647 = vmax.xlane.f32.xlu1 %v3646_v31 }
 0x510   : > { %v3601_v44 = vpop.f32.mrf.mxu3 }
 0x511   : > { %v8650_v52 = vadd.f32 %v8528_v22, %v3601_v44 }
 0x512   : > { %v3531_v12 = vpop.f32.mrf.mxu1 }
 0x513   : > { %v3697_v3 = vsel %vm979_vm0, %v8650_v52, -inf  ;;  %v8698_v17 = vadd.f32 %v8518_v49, %v3531_v12 }
 0x514   : > { %3698 = vmax.xlane.f32.xlu0 %v3697_v3 }
 0x518   : > { %v3604_v6 = vpop.f32.mrf.mxu3 }
 0x51a   : > { %v3534_v12 = vpop.f32.mrf.mxu1 }
 0x520   : > { %v3607_v45 = vpop.f32.mrf.mxu3 }
 0x529   : > { %v3618_v37 = vpop.xlane.xlu0 %3617 }
 0x531   : > { %v3621_v8 = vpop.xlane.xlu1 %3620  ;;  %v3666_v58 = vpop.xlane.xlu0 %3665 }
 0x532   : > { %v3712_v43 = vmax.f32 %v3618_v37, %v3666_v58 }
 0x534   : > { %v3728_v32 = vsub.f32 %v8521_v60, %v3712_v43  ;;  %v3776_v40 = vsub.f32 %v8531_v42, %v3712_v43 }
 0x536   : > { %v3744_v48 = vmul.f32 1.442695, %v3728_v32  ;;  %v3792_v16 = vmul.f32 1.442695, %v3776_v40  ;;  %v3652_v40 = vsel %vm979_vm0, %v8698_v17, -inf }
 0x538   : > { %6064 = vpow2.f32 %v3744_v48 }
 0x539   : > { %6066 = vpow2.f32 %v3792_v16  ;;  %v3624_v15 = vpop.xlane.xlu2 %3623  ;;  %v3669_v51 = vpop.xlane.xlu1 %3668 }
 0x53a   : > { %v3713_v19 = vmax.f32 %v3621_v8, %v3669_v51 }
 0x53c   : > { %v3729_v27 = vsub.f32 %v8534_v24, %v3713_v19  ;;  %v3777_v18 = vsub.f32 %v8541_v10, %v3713_v19 }
 0x53e   : > { %v8669_v26 = vpop.eup %6064  ;;  %v3746_v60 = vmul.f32 1.442695, %v3729_v27  ;;  %v3794_v42 = vmul.f32 1.442695, %v3777_v18 }
 0x53f   : > { %v8672_v34 = vpop.eup %6066  ;;  %v3824_v4 = vsel %vm979_vm0, %v8669_v26, 0.0 }
 0x540   : > { %6068 = vpow2.f32 %v3746_v60  ;;  %v3872_v24 = vsel %vm979_vm0, %v8672_v34, 0.0  ;;  %3825 = vadd.xlane.f32.xlu2 %v3824_v4 }
 0x541   : > { %6070 = vpow2.f32 %v3794_v42  ;;  %3873 = vadd.xlane.f32.xlu0 %v3872_v24  ;;  %v3672_v10 = vpop.xlane.xlu2 %3671  ;;  %v3627_v23 = vpop.xlane.xlu0 %3626 }
 0x542   : > { %v3714_v33 = vmax.f32 %v3624_v15, %v3672_v10  ;;  %v8715_v15 = vadd.f32 %v8528_v22, %v3604_v6 }
 0x544   : > { %v3730_v41 = vsub.f32 %v8544_v50, %v3714_v33  ;;  %v3778_v57 = vsub.f32 %v8551_v38, %v3714_v33  ;;  %v3649_v50 = vsel %vm979_vm0, %v8679_v2, -inf }
 0x546   : > { %v8684_v54 = vpop.eup %6068  ;;  %v3748_v9 = vmul.f32 1.442695, %v3730_v41  ;;  %v3796_v59 = vmul.f32 1.442695, %v3778_v57 }
 0x547   : > { %v8687_v7 = vpop.eup %6070  ;;  %v3675_v47 = vpop.xlane.xlu1 %3674  ;;  %v3827_v39 = vsel %vm979_vm0, %v8684_v54, 0.0 }
 0x548   : > { %6072 = vpow2.f32 %v3748_v9  ;;  %v3715_v38 = vmax.f32 %v3627_v23, %v3675_v47  ;;  %v3875_v31 = vsel %vm979_vm0, %v8687_v7, 0.0  ;;  %3650 = vmax.xlane.f32.xlu2 %v3649_v50  ;;  %v8734_v9 = vadd.f32 %v8528_v22, %v3607_v45  ;;  %v3537_v45 = vpop.f32.mrf.mxu1 }
 0x549   : > { %6074 = vpow2.f32 %v3796_v59  ;;  %3876 = vadd.xlane.f32.xlu1 %v3875_v31  ;;  %3828 = vadd.xlane.f32.xlu0 %v3827_v39  ;;  %v3630_v43 = vpop.xlane.xlu2 %3629  ;;  %v3610_v39 = vpop.f32.mrf.mxu3 }
 0x54a   : > { %v3731_v44 = vsub.f32 %v8554_v5, %v3715_v38  ;;  %v3779_v3 = vsub.f32 %v8561_v29, %v3715_v38  ;;  %v3703_v50 = vsel %vm979_vm0, %v8734_v9, -inf }
 0x54c   : > { %v3750_v53 = vmul.f32 1.442695, %v3731_v44  ;;  %v3798_v37 = vmul.f32 1.442695, %v3779_v3  ;;  %v8745_v44 = vadd.f32 %v8528_v22, %v3610_v39 }
 0x54e   : > { %v8701_v8 = vpop.eup %6072  ;;  %6076 = vpow2.f32 %v3798_v37 }
 0x54f   : > { %v8704_v58 = vpop.eup %6074  ;;  %v3678_v32 = vpop.xlane.xlu0 %3677  ;;  %v3830_v5 = vsel %vm979_vm0, %v8701_v8, 0.0  ;;  %6078 = vpow2.f32 %v3750_v53 }
 0x550   : > { %v3716_v29 = vmax.f32 %v3630_v43, %v3678_v32  ;;  %v3878_v21 = vsel %vm979_vm0, %v8704_v58, 0.0 }
 0x551   : > { %3831 = vadd.xlane.f32.xlu1 %v3830_v5  ;;  %3653 = vmax.xlane.f32.xlu0 %v3652_v40  ;;  %v3633_v60 = vpop.xlane.xlu1 %3632 }
 0x552   : > { %v3732_v48 = vsub.f32 %v8564_v14, %v3716_v29  ;;  %v3780_v16 = vsub.f32 %v8571_v46, %v3716_v29  ;;  %3879 = vadd.xlane.f32.xlu2 %v3878_v21  ;;  %v3700_v14 = vsel %vm979_vm0, %v8715_v15, -inf  ;;  %v8760_v21 = vadd.f32 %v8518_v49, %v3534_v12 }
 0x554   : > { %v3752_v51 = vmul.f32 1.442695, %v3732_v48  ;;  %v3800_v19 = vmul.f32 1.442695, %v3780_v16  ;;  %v8717_v27 = vpop.eup %6076 }
 0x555   : > { %v8719_v18 = vpop.eup %6078  ;;  %v3881_v46 = vsel %vm979_vm0, %v8717_v27, 0.0 }
 0x556   : > { %6080 = vpow2.f32 %v3752_v51  ;;  %v3833_v4 = vsel %vm979_vm0, %v8719_v18, 0.0 }
 0x557   : > { %6082 = vpow2.f32 %v3800_v19  ;;  %v3681_v42 = vpop.xlane.xlu2 %3680 }
 0x558   : > { %v3717_v62 = vmax.f32 %v3633_v60, %v3681_v42 }
 0x559   : > { %3701 = vmax.xlane.f32.xlu1 %v3700_v14  ;;  %3882 = vadd.xlane.f32.xlu0 %v3881_v46  ;;  %v3636_v59 = vpop.xlane.xlu0 %3635 }
 0x55a   : > { %v3733_v24 = vsub.f32 %v8574_v35, %v3717_v62  ;;  %v3781_v10 = vsub.f32 %v8581_v55, %v3717_v62  ;;  %3834 = vadd.xlane.f32.xlu2 %v3833_v4 }
 0x55c   : > { %v8729_v33 = vpop.eup %6080  ;;  %v3754_v41 = vmul.f32 1.442695, %v3733_v24  ;;  %v3802_v57 = vmul.f32 1.442695, %v3781_v10  ;;  %v3993_v24 = vld [vmem:[#allocation2 + $0x48] sm:$0xff]  ;;  %v3994_v10 = vld [vmem:[#allocation2 + $0x50] sm:$0xff] }
 0x55d   : > { %v8731_v61 = vpop.eup %6082  ;;  %v3836_v55 = vsel %vm979_vm0, %v8729_v33, 0.0  ;;  %4056 = vmatpush.msra.mxu2 %v3993_v24  ;;  %4121 = vmatpush.msra.mxu0 %v3994_v10 }
 0x55e   : > { %6084 = vpow2.f32 %v3754_v41  ;;  %v3884_v35 = vsel %vm979_vm0, %v8731_v61, 0.0  ;;  %v3995_v41 = vld [vmem:[#allocation2 + $0x58] sm:$0xff] }
 0x55f   : > { %v3684_v23 = vpop.xlane.xlu1 %3683  ;;  %6086 = vpow2.f32 %v3802_v57  ;;  %4186 = vmatpush.msra.mxu1 %v3995_v41 }
 0x560   : > { %v3718_v47 = vmax.f32 %v3636_v59, %v3684_v23 }
 0x561   : > { %3885 = vadd.xlane.f32.xlu1 %v3884_v35  ;;  %3837 = vadd.xlane.f32.xlu0 %v3836_v55  ;;  %v8779_v35 = vadd.f32 %v8518_v49, %v3537_v45 }
 0x562   : > { %v3734_v38 = vsub.f32 %v8584_v36, %v3718_v47  ;;  %v3782_v31 = vsub.f32 %v8591_v13, %v3718_v47  ;;  %3704 = vmax.xlane.f32.xlu2 %v3703_v50  ;;  %v3706_v13 = vsel %vm979_vm0, %v8745_v44, -inf }
 0x563   : > { %v3658_v12 = vsel %vm979_vm0, %v8779_v35, -inf }
 0x564   : > { %v3756_v3 = vmul.f32 1.442695, %v3734_v38  ;;  %v3804_v6 = vmul.f32 1.442695, %v3782_v31  ;;  %v8747_v53 = vpop.eup %6084  ;;  %v3540_v38 = vpop.f32.mrf.mxu1 }
 0x565   : > { %v8749_v37 = vpop.eup %6086  ;;  %v3839_v36 = vsel %vm979_vm0, %v8747_v53, 0.0  ;;  %v3613_v31 = vpop.f32.mrf.mxu3 }
 0x566   : > { %6088 = vpow2.f32 %v3804_v6  ;;  %v3887_v5 = vsel %vm979_vm0, %v8749_v37, 0.0 }
 0x567   : > { %v3687_v20 = vpop.xlane.xlu2 %3686  ;;  %v3639_v43 = vpop.xlane.xlu1 %3638  ;;  %6090 = vpow2.f32 %v3756_v3 }
 0x568   : > { %v3719_v32 = vmax.f32 %v3639_v43, %v3687_v20  ;;  %v8790_v20 = vadd.f32 %v8518_v49, %v3540_v38 }
 0x569   : > { %3840 = vadd.xlane.f32.xlu1 %v3839_v36  ;;  %3707 = vmax.xlane.f32.xlu0 %v3706_v13 }
 0x56a   : > { %v3735_v29 = vsub.f32 %v8596_v0, %v3719_v32  ;;  %v3783_v40 = vsub.f32 %v8599_v30, %v3719_v32  ;;  %3888 = vadd.xlane.f32.xlu2 %v3887_v5  ;;  %v3655_v0 = vsel %vm979_vm0, %v8760_v21, -inf }
 0x56c   : > { %v3758_v48 = vmul.f32 1.442695, %v3735_v29  ;;  %v3806_v16 = vmul.f32 1.442695, %v3783_v40  ;;  %v8762_v51 = vpop.eup %6088 }
 0x56d   : > { %v8764_v19 = vpop.eup %6090  ;;  %v3890_v30 = vsel %vm979_vm0, %v8762_v51, 0.0 }
 0x56e   : > { %6092 = vpow2.f32 %v3758_v48  ;;  %v3842_v14 = vsel %vm979_vm0, %v8764_v19, 0.0  ;;  %v4472_v48 = vpop.f32.mrf.mxu3 }
 0x56f   : > { %6094 = vpow2.f32 %v3806_v16  ;;  %v3642_v60 = vpop.xlane.xlu2 %3641  ;;  %v3690_v42 = vpop.xlane.xlu0 %3689 }
 0x570   : > { %v3720_v62 = vmax.f32 %v3642_v60, %v3690_v42  ;;  %v4394_v60 = vld [vmem:[%s8614_s28 + $0x58] sm:$0xff]  ;;  %v8807_v42 = vadd.f32 %v8528_v22, %v3613_v31  ;;  %v4395_v31 = vld [vmem:[%s8614_s28 + $0x60] sm:$0xff] }
 0x571   : > { %3656 = vmax.xlane.f32.xlu1 %v3655_v0  ;;  %3891 = vadd.xlane.f32.xlu0 %v3890_v30  ;;  %v8812_v30 = vld [vmem:[%s9574_s12] ss:$0 sm:$0xff] }
 0x572   : > { %v3736_v46 = vsub.f32 %v8607_v63, %v3720_v62  ;;  %v3784_v4 = vsub.f32 %v8617_v1, %v3720_v62  ;;  %3843 = vadd.xlane.f32.xlu2 %v3842_v14  ;;  %5842 = vmatmul.msk.f32.gmra.mxu3 %vm979_vm0, %v4394_v60  ;;  %v3986_v60 = vld [vmem:[#allocation2 + $0x10] sm:$0xff] }
 0x574   : > { %v8774_v57 = vpop.eup %6092  ;;  %v3760_v59 = vmul.f32 1.442695, %v3736_v46  ;;  %v3808_v23 = vmul.f32 1.442695, %v3784_v4 }
 0x575   : > { %v8776_v47 = vpop.eup %6094  ;;  %v3845_v50 = vsel %vm979_vm0, %v8774_v57, 0.0 }
 0x576   : > { %6096 = vpow2.f32 %v3760_v59  ;;  %v3893_v39 = vsel %vm979_vm0, %v8776_v47, 0.0  ;;  %v4475_v24 = vpop.f32.mrf.mxu3 }
 0x577   : > { %v3693_v63 = vpop.xlane.xlu1 %3692  ;;  %v3645_v55 = vpop.xlane.xlu0 %3644  ;;  %6098 = vpow2.f32 %v3808_v23  ;;  %v8833_v23 = vadd.f32 %v8812_v30, %v4475_v24 }
 0x578   : > { %v3721_v1 = vmax.f32 %v3645_v55, %v3693_v63  ;;  %v3990_v55 = vld [vmem:[#allocation2 + $0x30] sm:$0xff] }
 0x579   : > { %3894 = vadd.xlane.f32.xlu1 %v3893_v39  ;;  %3846 = vadd.xlane.f32.xlu0 %v3845_v50  ;;  %v5848_v50 = vmul.f32 -1.442695, %v8833_v23 }
 0x57a   : > { %v3737_v3 = vsub.f32 %v8626_v28, %v3721_v1  ;;  %v3785_v6 = vsub.f32 %v8629_v11, %v3721_v1  ;;  %3659 = vmax.xlane.f32.xlu2 %v3658_v12  ;;  %v3661_v11 = vsel %vm979_vm0, %v8790_v20, -inf  ;;  %4057 = vmatpush.msra.mxu2 %v3990_v55 }
 0x57b   : > { %5843 = vmatmul.msk.f32.gmra.mxu3 %vm979_vm0, %v4395_v31 }
 0x57c   : > { %v3762_v43 = vmul.f32 1.442695, %v3737_v3  ;;  %v3810_v32 = vmul.f32 1.442695, %v3785_v6  ;;  %v8792_v36 = vpop.eup %6096 }
 0x57d   : > { %v8794_v13 = vpop.eup %6098  ;;  %v3848_v28 = vsel %vm979_vm0, %v8792_v36, 0.0 }
 0x57e   : > { %6100 = vpow2.f32 %v3810_v32  ;;  %v3896_v49 = vsel %vm979_vm0, %v8794_v13, 0.0  ;;  %v4478_v39 = vpop.f32.mrf.mxu3  ;;  %v3992_v32 = vld [vmem:[#allocation2 + $0x40] sm:$0xff] }
 0x57f   : > { %v3696_v5 = vpop.xlane.xlu2 %3695  ;;  %v3648_v29 = vpop.xlane.xlu1 %3647  ;;  %6102 = vpow2.f32 %v3762_v43  ;;  %v8845_v3 = vadd.f32 %v8812_v30, %v4478_v39  ;;  %v3991_v43 = vld [vmem:[#allocation2 + $0x38] sm:$0xff]  ;;  %4187 = vmatpush.msra.mxu1 %v3992_v32 }
 0x580   : > { %v3722_v40 = vmax.f32 %v3648_v29, %v3696_v5  ;;  %4122 = vmatpush.msra.mxu0 %v3991_v43  ;;  %v4396_v43 = vld [vmem:[%s8614_s28 + $0x68] sm:$0xff] }
 0x581   : > { %3849 = vadd.xlane.f32.xlu1 %v3848_v28  ;;  %3662 = vmax.xlane.f32.xlu0 %v3661_v11  ;;  %v5849_v29 = vmul.f32 -1.442695, %v8845_v3  ;;  %v3988_v28 = vld [vmem:[#allocation2 + $0x20] sm:$0xff]  ;;  %v3989_v11 = vld [vmem:[#allocation2 + $0x28] sm:$0xff] }
 0x582   : > { %v3738_v16 = vsub.f32 %v8638_v56, %v3722_v40  ;;  %v3786_v45 = vsub.f32 %v8641_v25, %v3722_v40  ;;  %3897 = vadd.xlane.f32.xlu2 %v3896_v49  ;;  %v3709_v56 = vsel %vm979_vm0, %v8807_v42, -inf  ;;  %v8823_v25 = vadd.f32 %v8812_v30, %v4472_v48  ;;  %v3987_v40 = vld [vmem:[#allocation2 + $0x18] sm:$0xff]  ;;  %4123 = vmatpush.msra.mxu0 %v3988_v28  ;;  %v3984_v48 = vld [vmem:[#allocation2] sm:$0xff] }
 0x583   : > { %4058 = vmatpush.msra.mxu2 %v3987_v40  ;;  %4188 = vmatpush.msra.mxu1 %v3989_v11 }
 0x584   : > { %v3764_v62 = vmul.f32 1.442695, %v3738_v16  ;;  %v3812_v0 = vmul.f32 1.442695, %v3786_v45  ;;  %v8814_v14 = vpop.eup %6100  ;;  %v5847_v10 = vmul.f32 -1.442695, %v8823_v25  ;;  %5844 = vmatmul.msk.f32.gmra.mxu3 %vm979_vm0, %v4396_v43 }
 0x585   : > { %v8816_v46 = vpop.eup %6102  ;;  %v3899_v22 = vsel %vm979_vm0, %v8814_v14, 0.0  ;;  %v3985_v16 = vld [vmem:[#allocation2 + $0x8] sm:$0xff]  ;;  %4059 = vmatpush.msra.mxu2 %v3984_v48  ;;  %4189 = vmatpush.msra.mxu1 %v3986_v60 }
 0x586   : > { %6104 = vpow2.f32 %v3764_v62  ;;  %v3851_v4 = vsel %vm979_vm0, %v8816_v46, 0.0  ;;  %v4481_v6 = vpop.f32.mrf.mxu3  ;;  %4124 = vmatpush.msra.mxu0 %v3985_v16 }
 0x587   : > { %6106 = vpow2.f32 %v3812_v0  ;;  %v8850_v49 = vadd.f32 %v8812_v30, %v4481_v6 }
 0x588   : > { %6108 = vpow2.f32 %v5847_v10 }
 0x589   : > { %3710 = vmax.xlane.f32.xlu1 %v3709_v56  ;;  %3900 = vadd.xlane.f32.xlu0 %v3899_v22  ;;  %6110 = vpow2.f32 %v5848_v50  ;;  %v5850_v56 = vmul.f32 -1.442695, %v8850_v49  ;;  %v3699_v50 = vpop.xlane.xlu0 %3698 }
 0x58a   : > { %3852 = vadd.xlane.f32.xlu2 %v3851_v4 }
 0x58c   : > { %v8828_v41 = vpop.eup %6104 }
 0x58d   : > { %v8830_v59 = vpop.eup %6106  ;;  %v3854_v63 = vsel %vm979_vm0, %v8828_v41, 0.0 }
 0x58e   : > { %9702 = vst [vmem:[#allocation38_spill] sm:$0xff] %v8830_v59  ;;  %v3902_v1 = vsel %vm979_vm0, %v8830_v59, 0.0  ;;  %v6109_v38 = vpop.eup %6108  ;;  %v4484_v62 = vpop.f32.mrf.mxu3 }
 0x58f   : > { %v8842_v12 = vadd.f32 1.0, %v6109_v38  ;;  %v6111_v5 = vpop.eup %6110  ;;  %v8858_v24 = vadd.f32 %v8812_v30, %v4484_v62 }
 0x590   : > { %v8852_v45 = vadd.f32 1.0, %v6111_v5 }
 0x591   : > { %3855 = vadd.xlane.f32.xlu1 %v3854_v63  ;;  %6112 = vrcp.f32 %v8842_v12  ;;  %v5851_v39 = vmul.f32 -1.442695, %v8858_v24  ;;  %vm4589_vm1 = vweird.f32 %v8842_v12  ;;  %v4593_v48 = vand.u32 2147483647, %v8842_v12 }
 0x592   : > { %3903 = vadd.xlane.f32.xlu2 %v3902_v1  ;;  %6114 = vpow2.f32 %v5849_v29  ;;  %v4595_v29 = vand.u32 2147483648, %v8842_v12  ;;  %vm4604_vm5 = vweird.f32 %v8852_v45 }
 0x593   : > { %6116 = vrcp.f32 %v8852_v45  ;;  %vm4594_vm4 = vcmp.eq.f32.partialorder %v4593_v48, 8.507059e+37 }
 0x594   : > { %6118 = vpow2.f32 %v5850_v56 }
 0x596   : > { %v4487_v10 = vpop.f32.mrf.mxu3 }
 0x597   : > { %v6113_v0 = vpop.eup %6112  ;;  %v8874_v5 = vadd.f32 %v8812_v30, %v4487_v10  ;;  %v4596_v10 = vor.u32 1.1754944e-38, %v4595_v29  ;;  %v4397_v29 = vld [vmem:[%s8614_s28 + $0x70] sm:$0xff] }
 0x598   : > { %v4585_v22 = vmul.f32 %v6113_v0, %v8842_v12  ;;  %v6115_v4 = vpop.eup %6114  ;;  %vm4590_vm2 = vweird.f32 %v6113_v0  ;;  %5845 = vmatmul.msk.f32.gmra.mxu3 %vm979_vm0, %v4397_v29 }
 0x599   : > { %v8860_v63 = vpop.eup %6116  ;;  %v8862_v1 = vadd.f32 1.0, %v6115_v4  ;;  %vm8878_vm3 = vmor %vm4589_vm1, %vm4590_vm2 }
 0x59a   : > { %v4586_v55 = vsub.f32 1.0, %v4585_v22  ;;  %v6119_v38 = vpop.eup %6118  ;;  %v4600_v31 = vmul.f32 %v8860_v63, %v8852_v45  ;;  %v5852_v22 = vmul.f32 -1.442695, %v8874_v5  ;;  %vm4605_vm6 = vweird.f32 %v8860_v63 }
 0x59b   : > { %6120 = vrcp.f32 %v8862_v1  ;;  %v8871_v32 = vadd.f32 1.0, %v6119_v38  ;;  %vm8908_vm7 = vmor %vm4604_vm5, %vm4605_vm6  ;;  %vm4619_vm9 = vweird.f32 %v8862_v1 }
 0x59c   : > { %v4587_v6 = vmul.f32 %v6113_v0, %v4586_v55  ;;  %6122 = vpow2.f32 %v5851_v39  ;;  %v4601_v40 = vsub.f32 1.0, %v4600_v31  ;;  %v4608_v31 = vand.u32 2147483647, %v8852_v45 }
 0x59d   : > { %6124 = vrcp.f32 %v8871_v32  ;;  %vm4634_vm13 = vweird.f32 %v8871_v32 }
 0x59e   : > { %v4490_v28 = vpop.f32.mrf.mxu3  ;;  %v4588_v11 = vadd.f32 %v6113_v0, %v4587_v6  ;;  %v4602_v55 = vmul.f32 %v8860_v63, %v4601_v40  ;;  %v4610_v6 = vand.u32 2147483648, %v8852_v45  ;;  %vm8912_vm8 = vcmp.eq.f32.partialorder %v4608_v31, 8.507059e+37 }
 0x59f   : > { %v8888_v12 = vadd.f32 %v8812_v30, %v4490_v28 }
 0x5a0   : > { %v4592_v38 = vsel %vm8878_vm3, %v6113_v0, %v4588_v11  ;;  %v4603_v28 = vadd.f32 %v8860_v63, %v4602_v55 }
 0x5a1   : > { %v8882_v62 = vpop.eup %6120  ;;  %v4597_v0 = vsel %vm4594_vm4, %v4596_v10, %v4592_v38  ;;  %v5853_v11 = vmul.f32 -1.442695, %v8888_v12 }
 0x5a2   : > { %v6123_v4 = vpop.eup %6122  ;;  %v4615_v43 = vmul.f32 %v8882_v62, %v8862_v1  ;;  %v4824_v55 = vmul.f32 %v4597_v0, %v8823_v25  ;;  %v4607_v31 = vsel %vm8908_vm7, %v8860_v63, %v4603_v28  ;;  %v4623_v28 = vand.u32 2147483647, %v8862_v1 }
 0x5a3   : > { %v8899_v40 = vadd.f32 1.0, %v6123_v4  ;;  %v8904_v16 = vpop.eup %6124  ;;  %vm4620_vm10 = vweird.f32 %v8882_v62 }
 0x5a4   : > { %v4616_v4 = vsub.f32 1.0, %v4615_v43  ;;  %vm8958_vm11 = vmor %vm4619_vm9, %vm4620_vm10  ;;  %vm8962_vm12 = vcmp.eq.f32.partialorder %v4623_v28, 8.507059e+37  ;;  %vm4635_vm14 = vweird.f32 %v8904_v16 }
 0x5a5   : > { %vm9002_vm15 = vmor %vm4634_vm13, %vm4635_vm14  ;;  %vm4649_vm2 = vweird.f32 %v8899_v40 }
 0x5a6   : > { %v4493_v48 = vpop.f32.mrf.mxu3  ;;  %v4617_v63 = vmul.f32 %v8882_v62, %v4616_v4 }
 0x5b3   : > { %v3826_v60 = vpop.xlane.xlu2 %3825 }
 0x5b4   : > { %v3874_v56 = vpop.xlane.xlu0 %3873 }
 0x5b5   : > { %v3920_v39 = vadd.f32 %v3874_v56, %v3826_v60 }
 0x5b7   : > { %6126 = vrcp.f32 %v3920_v39 }
 0x5b8   : > { %6128 = vpow2.f32 %v5852_v22  ;;  %v4611_v22 = vor.u32 1.1754944e-38, %v4610_v6  ;;  %v4630_v6 = vmul.f32 %v8904_v16, %v8871_v32 }
 0x5b9   : > { %6130 = vrcp.f32 %v8899_v40 }
 0x5ba   : > { %6132 = vpow2.f32 %v5853_v11  ;;  %v4612_v60 = vsel %vm8912_vm8, %v4611_v22, %v4607_v31  ;;  %v4631_v4 = vsub.f32 1.0, %v4630_v6 }
 0x5bb   : > { %v3651_v10 = vpop.xlane.xlu2 %3650  ;;  %v4825_v22 = vmul.f32 %v4612_v60, %v8833_v23 }
 0x5bc   : > { %v3877_v39 = vpop.xlane.xlu1 %3876  ;;  %v3723_v38 = vmax.f32 %v3651_v10, %v3699_v50  ;;  %v3829_v29 = vpop.xlane.xlu0 %3828 }
 0x5bd   : > { %v6127_v45 = vpop.eup %6126  ;;  %v3921_v43 = vadd.f32 %v3877_v39, %v3829_v29  ;;  %v4618_v29 = vadd.f32 %v8882_v62, %v4617_v63 }
 0x5be   : > { %v6129_v59 = vpop.eup %6128  ;;  %v3952_v25 = vmul.f32 %v6127_v45, %v8669_v26  ;;  %v3968_v0 = vmul.f32 %v6127_v45, %v8672_v34  ;;  %v3739_v50 = vsub.f32 %v8679_v2, %v3723_v38  ;;  %v3787_v10 = vsub.f32 %v8650_v52, %v3723_v38 }
 0x5bf   : > { %6134 = vrcp.f32 %v3921_v43  ;;  %v8938_v26 = vadd.f32 %v8812_v30, %v4493_v48  ;;  %v4625_v34 = vand.u32 2147483648, %v8862_v1  ;;  %v8947_v39 = vadd.f32 1.0, %v6129_v59  ;;  %v4496_v48 = vpop.f32.mrf.mxu3  ;;  %v8949_v38 = vpop.eup %6130 }
 0x5c0   : > { %v4840_v2 = vmul.f32 %v4824_v55, %v3952_v25  ;;  %v3766_v11 = vmul.f32 1.442695, %v3739_v50  ;;  %v3814_v52 = vmul.f32 1.442695, %v3787_v10  ;;  %5783 = vmatmul.msk.f32.vlgmr.msra.gmra.mxu2 %vm979_vm0, %v3968_v0  ;;  %5799 = vmatmul.msk.f32.vlgmr.msra.gmra.mxu0 %vm979_vm0, %v3968_v0  ;;  %v6133_v55 = vpop.eup %6132  ;;  %v4645_v23 = vmul.f32 %v8949_v38, %v8899_v40 }
 0x5c1   : > { %5815 = vmatmul.msk.f32.vlgmr.msra.gmra.mxu1 %vm979_vm0, %v3968_v0  ;;  %v5854_v56 = vmul.f32 -1.442695, %v8938_v26  ;;  %v4626_v31 = vor.u32 1.1754944e-38, %v4625_v34  ;;  %v4632_v0 = vmul.f32 %v8904_v16, %v4631_v4  ;;  %v8974_v28 = vadd.f32 %v8812_v30, %v4496_v48 }
 0x5c2   : > { %4856 = vst.msk [vmem:[%s8933_s22] sm:$0xff] %vm979_vm0, %v4840_v2  ;;  %6136 = vpow2.f32 %v3766_v11  ;;  %v4622_v34 = vsel %vm8958_vm11, %v8882_v62, %v4618_v29  ;;  %v4638_v2 = vand.u32 2147483647, %v8871_v32  ;;  %v4398_v11 = vld [vmem:[%s8614_s28 + $0x78] sm:$0xff]  ;;  %vm4650_vm3 = vweird.f32 %v8949_v38 }
 0x5c3   : > { %6138 = vpow2.f32 %v3814_v52  ;;  %v4633_v4 = vadd.f32 %v8904_v16, %v4632_v0  ;;  %5846 = vmatmul.msk.f32.gmra.mxu3 %vm979_vm0, %v4398_v11  ;;  %vm9048_vm4 = vmor %vm4649_vm2, %vm4650_vm3  ;;  %vm4664_vm6 = vweird.f32 %v8947_v39 }
 0x5c4   : > { %v3832_v6 = vpop.xlane.xlu1 %3831  ;;  %v3654_v43 = vpop.xlane.xlu0 %3653  ;;  %6140 = vrcp.f32 %v8947_v39  ;;  %vm9013_vm1 = vcmp.eq.f32.partialorder %v4638_v2, 8.507059e+37 }
 0x5c5   : > { %v6135_v25 = vpop.eup %6134  ;;  %v3880_v1 = vpop.xlane.xlu2 %3879  ;;  %6142 = vpow2.f32 %v5854_v56  ;;  %v4627_v56 = vsel %vm8962_vm12, %v4626_v31, %v4622_v34 }
 0x5c6   : > { %v3953_v50 = vmul.f32 %v6135_v25, %v8684_v54  ;;  %v3922_v10 = vadd.f32 %v3880_v1, %v3832_v6  ;;  %v3969_v63 = vmul.f32 %v6135_v25, %v8687_v7  ;;  %v4640_v54 = vand.u32 2147483648, %v8871_v32 }
 0x5c7   : > { %v8987_v7 = vadd.f32 1.0, %v6133_v55  ;;  %v4499_v29 = vpop.f32.mrf.mxu3  ;;  %v5855_v6 = vmul.f32 -1.442695, %v8974_v28  ;;  %v4826_v1 = vmul.f32 %v4627_v56, %v8845_v3 }
 0x5c8   : > { %v8982_v52 = vpop.eup %6136  ;;  %v4841_v60 = vmul.f32 %v4825_v22, %v3953_v50  ;;  %6144 = vrcp.f32 %v3922_v10  ;;  %5784 = vmatmul.msk.f32.gmra.mxu2 %vm979_vm0, %v3969_v63  ;;  %5800 = vmatmul.msk.f32.gmra.mxu0 %vm979_vm0, %v3969_v63  ;;  %v4646_v22 = vsub.f32 1.0, %v4645_v23  ;;  %v4641_v32 = vor.u32 1.1754944e-38, %v4640_v54 }
 0x5c9   : > { %v8989_v62 = vpop.eup %6138  ;;  %5816 = vmatmul.msk.f32.gmra.mxu1 %vm979_vm0, %v3969_v63  ;;  %v3857_v48 = vsel %vm979_vm0, %v8982_v52, 0.0  ;;  %6146 = vrcp.f32 %v8987_v7  ;;  %v4637_v50 = vsel %vm9002_vm15, %v8904_v16, %v4633_v4  ;;  %v4655_v10 = vand.u32 2147483648, %v8899_v40 }
 0x5ca   : > { %4857 = vst.msk [vmem:[%s8933_s22 + $0x8] sm:$0xff] %vm979_vm0, %v4841_v60  ;;  %v3905_v45 = vsel %vm979_vm0, %v8989_v62, 0.0  ;;  %3858 = vadd.xlane.f32.xlu0 %v3857_v48  ;;  %v9011_v25 = vpop.eup %6140  ;;  %v4647_v11 = vmul.f32 %v8949_v38, %v4646_v22  ;;  %6148 = vpow2.f32 %v5855_v6  ;;  %v9035_v4 = vadd.f32 %v8812_v30, %v4499_v29 }
 0x5cb   : > { %3906 = vadd.xlane.f32.xlu1 %v3905_v45  ;;  %v6143_v23 = vpop.eup %6142  ;;  %v4660_v54 = vmul.f32 %v9011_v25, %v8947_v39  ;;  %vm4665_vm7 = vweird.f32 %v9011_v25  ;;  %vm4679_vm10 = vweird.f32 %v8987_v7 }
 0x5cc   : > { %v3702_v31 = vpop.xlane.xlu1 %3701  ;;  %v3883_v0 = vpop.xlane.xlu0 %3882  ;;  %vm9098_vm8 = vmor %vm4664_vm6, %vm4665_vm7 }
 0x5cd   : > { %v3724_v63 = vmax.f32 %v3654_v43, %v3702_v31  ;;  %v3835_v34 = vpop.xlane.xlu2 %3834  ;;  %v4642_v43 = vsel %vm9013_vm1, %v4641_v32, %v4637_v50  ;;  %v4661_v59 = vsub.f32 1.0, %v4660_v54  ;;  %v5856_v50 = vmul.f32 -1.442695, %v9035_v4 }
 0x5ce   : > { %v6145_v2 = vpop.eup %6144  ;;  %v3923_v60 = vadd.f32 %v3883_v0, %v3835_v34  ;;  %v4827_v31 = vmul.f32 %v4642_v43, %v8850_v49  ;;  %v4656_v0 = vor.u32 1.1754944e-38, %v4655_v10 }
 0x5cf   : > { %v3954_v48 = vmul.f32 %v6145_v2, %v8701_v8  ;;  %v3740_v3 = vsub.f32 %v8698_v17, %v3724_v63  ;;  %v3788_v56 = vsub.f32 %v8715_v15, %v3724_v63  ;;  %v3970_v16 = vmul.f32 %v6145_v2, %v8704_v58  ;;  %v9041_v8 = vpop.eup %6146  ;;  %v4502_v6 = vpop.f32.mrf.mxu3 }
 0x5d0   : > { %6150 = vrcp.f32 %v3923_v60  ;;  %v9039_v17 = vadd.f32 1.0, %v6143_v23  ;;  %v4648_v58 = vadd.f32 %v8949_v38, %v4647_v11  ;;  %v4653_v15 = vand.u32 2147483647, %v8899_v40  ;;  %v6149_v32 = vpop.eup %6148 }
 0x5d1   : > { %v4842_v55 = vmul.f32 %v4826_v1, %v3954_v48  ;;  %v3768_v22 = vmul.f32 1.442695, %v3740_v3  ;;  %v3816_v45 = vmul.f32 1.442695, %v3788_v56  ;;  %5785 = vmatmul.msk.f32.gmra.mxu2 %vm979_vm0, %v3970_v16  ;;  %5801 = vmatmul.msk.f32.gmra.mxu0 %vm979_vm0, %v3970_v16  ;;  %v4675_v40 = vmul.f32 %v9041_v8, %v8987_v7 }
 0x5d2   : > { %5817 = vmatmul.msk.f32.gmra.mxu1 %vm979_vm0, %v3970_v16  ;;  %v9062_v2 = vadd.f32 %v8812_v30, %v4502_v6  ;;  %v4652_v49 = vsel %vm9048_vm4, %v8949_v38, %v4648_v58  ;;  %vm4654_vm5 = vcmp.eq.f32.partialorder %v4653_v15, 8.507059e+37  ;;  %v4662_v10 = vmul.f32 %v9011_v25, %v4661_v59 }
 0x5d3   : > { %4858 = vst.msk [vmem:[%s8933_s22 + $0x10] sm:$0xff] %vm979_vm0, %v4842_v55  ;;  %6152 = vpow2.f32 %v3768_v22  ;;  %v4670_v48 = vand.u32 2147483648, %v8947_v39  ;;  %v9073_v3 = vadd.f32 1.0, %v6149_v32  ;;  %v4657_v38 = vsel %vm4654_vm5, %v4656_v0, %v4652_v49 }
 0x5d4   : > { %6154 = vpow2.f32 %v3816_v45  ;;  %v3886_v23 = vpop.xlane.xlu1 %3885  ;;  %v3838_v1 = vpop.xlane.xlu0 %3837  ;;  %v4676_v43 = vsub.f32 1.0, %v4675_v40  ;;  %v4663_v45 = vadd.f32 %v9011_v25, %v4662_v10  ;;  %v4668_v58 = vand.u32 2147483647, %v8947_v39 }
 0x5d5   : > { %v9058_v63 = vpop.xlane.xlu2 %3704  ;;  %v3924_v34 = vadd.f32 %v3886_v23, %v3838_v1  ;;  %6156 = vrcp.f32 %v9039_v17  ;;  %v4828_v6 = vmul.f32 %v4657_v38, %v8858_v24  ;;  %v4671_v0 = vor.u32 1.1754944e-38, %v4670_v48 }
 0x5d6   : > { %v6151_v11 = vpop.eup %6150  ;;  %v4677_v23 = vmul.f32 %v9041_v8, %v4676_v43  ;;  %vm4669_vm9 = vcmp.eq.f32.partialorder %v4668_v58, 8.507059e+37  ;;  %vm4680_vm11 = vweird.f32 %v9041_v8  ;;  %v4683_v49 = vand.u32 2147483647, %v8987_v7 }
 0x5d7   : > { %v3955_v54 = vmul.f32 %v6151_v11, %v8719_v18  ;;  %6158 = vrcp.f32 %v3924_v34  ;;  %v3971_v60 = vmul.f32 %v6151_v11, %v8717_v27  ;;  %v5857_v18 = vmul.f32 -1.442695, %v9062_v2  ;;  %vm9124_vm12 = vmor %vm4679_vm10, %vm4680_vm11 }
 0x5d8   : > { %6160 = vpow2.f32 %v5856_v50  ;;  %v4667_v11 = vsel %vm9098_vm8, %v9011_v25, %v4663_v45  ;;  %vm9131_vm13 = vcmp.eq.f32.partialorder %v4683_v49, 8.507059e+37  ;;  %vm4694_vm14 = vweird.f32 %v9039_v17 }
 0x5d9   : > { %v9075_v56 = vpop.eup %6152  ;;  %v4843_v16 = vmul.f32 %v4827_v31, %v3955_v54  ;;  %5786 = vmatmul.msk.f32.gmra.mxu2 %vm979_vm0, %v3971_v60  ;;  %5802 = vmatmul.msk.f32.gmra.mxu0 %vm979_vm0, %v3971_v60  ;;  %6162 = vrcp.f32 %v9073_v3  ;;  %v4678_v54 = vadd.f32 %v9041_v8, %v4677_v23  ;;  %vm4709_vm3 = vweird.f32 %v9073_v3 }
 0x5da   : > { %v9080_v27 = vpop.eup %6154  ;;  %5818 = vmatmul.msk.f32.gmra.mxu1 %vm979_vm0, %v3971_v60  ;;  %v3860_v55 = vsel %vm979_vm0, %v9075_v56, 0.0  ;;  %6164 = vpow2.f32 %v5857_v18  ;;  %v4672_v60 = vsel %vm4669_vm9, %v4671_v0, %v4667_v11 }
 0x5db   : > { %v9085_v22 = vpop.eup %6156  ;;  %4859 = vst.msk [vmem:[%s8933_s22 + $0x18] sm:$0xff] %vm979_vm0, %v4843_v16  ;;  %3861 = vadd.xlane.f32.xlu2 %v3860_v55  ;;  %v3908_v15 = vsel %vm979_vm0, %v9080_v27, 0.0  ;;  %v4829_v45 = vmul.f32 %v4672_v60, %v8874_v5  ;;  %v4682_v58 = vsel %vm9124_vm12, %v9041_v8, %v4678_v54 }
 0x5dc   : > { %3909 = vadd.xlane.f32.xlu0 %v3908_v15  ;;  %v3841_v59 = vpop.xlane.xlu1 %3840  ;;  %v9102_v32 = vpop.xlane.xlu0 %3707  ;;  %v4690_v39 = vmul.f32 %v9085_v22, %v9039_v17  ;;  %vm4695_vm15 = vweird.f32 %v9085_v22 }
 0x5dd   : > { %v6159_v31 = vpop.eup %6158  ;;  %v3889_v1 = vpop.xlane.xlu2 %3888  ;;  %vm9165_vm1 = vmor %vm4694_vm14, %vm4695_vm15 }
 0x5de   : > { %v6161_v24 = vpop.eup %6160  ;;  %v3956_v50 = vmul.f32 %v6159_v31, %v8729_v33  ;;  %v3925_v40 = vadd.f32 %v3889_v1, %v3841_v59  ;;  %v3972_v34 = vmul.f32 %v6159_v31, %v8731_v61  ;;  %v4685_v33 = vand.u32 2147483648, %v8987_v7 }
 0x5df   : > { %v9120_v61 = vadd.f32 1.0, %v6161_v24  ;;  %v9122_v25 = vpop.eup %6162  ;;  %v4691_v7 = vsub.f32 1.0, %v4690_v39  ;;  %v4700_v24 = vand.u32 2147483648, %v9039_v17 }
 0x5e0   : > { %v4844_v10 = vmul.f32 %v4828_v6, %v3956_v50  ;;  %6166 = vrcp.f32 %v3925_v40  ;;  %v6165_v38 = vpop.eup %6164  ;;  %v4686_v43 = vor.u32 1.1754944e-38, %v4685_v33  ;;  %v4705_v31 = vmul.f32 %v9122_v25, %v9073_v3 }
 0x5e1   : > { %5787 = vmatmul.msk.f32.gmra.mxu2 %vm979_vm0, %v3972_v34  ;;  %5803 = vmatmul.msk.f32.gmra.mxu0 %vm979_vm0, %v3972_v34  ;;  %6168 = vrcp.f32 %v9120_v61  ;;  %v4692_v59 = vmul.f32 %v9085_v22, %v4691_v7  ;;  %v9144_v23 = vadd.f32 1.0, %v6165_v38  ;;  %v4701_v54 = vor.u32 1.1754944e-38, %v4700_v24 }
 0x5e2   : > { %4860 = vst.msk [vmem:[%s8933_s22 + $0x20] sm:$0xff] %vm979_vm0, %v4844_v10  ;;  %5819 = vmatmul.msk.f32.gmra.mxu1 %vm979_vm0, %v3972_v34  ;;  %v4706_v11 = vsub.f32 1.0, %v4705_v31  ;;  %vm4710_vm4 = vweird.f32 %v9122_v25  ;;  %vm4724_vm7 = vweird.f32 %v9120_v61 }
 0x5e3   : > { %vm9208_vm5 = vmor %vm4709_vm3, %vm4710_vm4  ;;  %vm4739_vm11 = vweird.f32 %v9144_v23 }
 0x5e4   : > { %v3657_v18 = vpop.xlane.xlu1 %3656  ;;  %v3892_v55 = vpop.xlane.xlu0 %3891 }
 0x5e5   : > { %v3725_v15 = vmax.f32 %v3657_v18, %v9058_v63  ;;  %v3844_v6 = vpop.xlane.xlu2 %3843 }
 0x5e6   : > { %v6167_v29 = vpop.eup %6166  ;;  %v3926_v0 = vadd.f32 %v3892_v55, %v3844_v6 }
 0x5e7   : > { %v3957_v5 = vmul.f32 %v6167_v29, %v8747_v53  ;;  %v3741_v1 = vsub.f32 %v8760_v21, %v3725_v15  ;;  %v3789_v8 = vsub.f32 %v8734_v9, %v3725_v15  ;;  %v3973_v63 = vmul.f32 %v6167_v29, %v8749_v37  ;;  %v9161_v21 = vpop.eup %6168 }
 0x5e8   : > { %6170 = vrcp.f32 %v3926_v0  ;;  %v4687_v9 = vsel %vm9131_vm13, %v4686_v43, %v4682_v58  ;;  %v4693_v53 = vadd.f32 %v9085_v22, %v4692_v59  ;;  %v4698_v37 = vand.u32 2147483647, %v9039_v17 }
 0x5e9   : > { %v4845_v50 = vmul.f32 %v4829_v45, %v3957_v5  ;;  %v3770_v39 = vmul.f32 1.442695, %v3741_v1  ;;  %v3818_v40 = vmul.f32 1.442695, %v3789_v8  ;;  %5788 = vmatmul.msk.f32.gmra.mxu2 %vm979_vm0, %v3973_v63  ;;  %5804 = vmatmul.msk.f32.gmra.mxu0 %vm979_vm0, %v3973_v63  ;;  %6172 = vrcp.f32 %v9144_v23 }
 0x5ea   : > { %5820 = vmatmul.msk.f32.gmra.mxu1 %vm979_vm0, %v3973_v63  ;;  %v4830_v10 = vmul.f32 %v4687_v9, %v8888_v12  ;;  %v4697_v17 = vsel %vm9165_vm1, %v9085_v22, %v4693_v53  ;;  %vm4699_vm2 = vcmp.eq.f32.partialorder %v4698_v37, 8.507059e+37  ;;  %v4720_v38 = vmul.f32 %v9161_v21, %v9120_v61 }
 0x5eb   : > { %4861 = vst.msk [vmem:[%s8933_s22 + $0x28] sm:$0xff] %vm979_vm0, %v4845_v50  ;;  %6174 = vpow2.f32 %v3770_v39  ;;  %v4707_v43 = vmul.f32 %v9122_v25, %v4706_v11  ;;  %v4702_v15 = vsel %vm4699_vm2, %v4701_v54, %v4697_v17  ;;  %vm4725_vm8 = vweird.f32 %v9161_v21 }
 0x5ec   : > { %6176 = vpow2.f32 %v3818_v40  ;;  %v3895_v49 = vpop.xlane.xlu1 %3894  ;;  %v3847_v33 = vpop.xlane.xlu0 %3846  ;;  %v4721_v29 = vsub.f32 1.0, %v4720_v38  ;;  %v4831_v5 = vmul.f32 %v4702_v15, %v8938_v26  ;;  %v4728_v11 = vand.u32 2147483647, %v9120_v61  ;;  %vm9233_vm9 = vmor %vm4724_vm7, %vm4725_vm8 }
 0x5ed   : > { %v3660_v60 = vpop.xlane.xlu2 %3659  ;;  %v3927_v48 = vadd.f32 %v3895_v49, %v3847_v33 }
 0x5ee   : > { %v6171_v7 = vpop.eup %6170  ;;  %v3726_v16 = vmax.f32 %v3660_v60, %v9102_v32  ;;  %v4715_v32 = vand.u32 2147483648, %v9073_v3  ;;  %v4722_v26 = vmul.f32 %v9161_v21, %v4721_v29  ;;  %vm9243_vm10 = vcmp.eq.f32.partialorder %v4728_v11, 8.507059e+37 }
 0x5ef   : > { %v3958_v18 = vmul.f32 %v6171_v7, %v8764_v19  ;;  %6178 = vrcp.f32 %v3927_v48  ;;  %v9180_v12 = vpop.eup %6172  ;;  %v3974_v22 = vmul.f32 %v6171_v7, %v8762_v51  ;;  %v4708_v51 = vadd.f32 %v9122_v25, %v4707_v43 }
 0x5f0   : > { %v3742_v55 = vsub.f32 %v8779_v35, %v3726_v16  ;;  %v3790_v45 = vsub.f32 %v8745_v44, %v3726_v16  ;;  %v4713_v35 = vand.u32 2147483647, %v9073_v3  ;;  %v4716_v50 = vor.u32 1.1754944e-38, %v4715_v32 }
 0x5f1   : > { %v9186_v58 = vpop.eup %6174  ;;  %v4846_v19 = vmul.f32 %v4830_v10, %v3958_v18  ;;  %5789 = vmatmul.msk.f32.gmra.mxu2 %vm979_vm0, %v3974_v22  ;;  %5805 = vmatmul.msk.f32.gmra.mxu0 %vm979_vm0, %v3974_v22  ;;  %v4735_v39 = vmul.f32 %v9180_v12, %v9144_v23  ;;  %v4712_v37 = vsel %vm9208_vm5, %v9122_v25, %v4708_v51  ;;  %vm4740_vm12 = vweird.f32 %v9180_v12 }
 0x5f2   : > { %v9190_v6 = vpop.eup %6176  ;;  %v3772_v59 = vmul.f32 1.442695, %v3742_v55  ;;  %v3820_v31 = vmul.f32 1.442695, %v3790_v45  ;;  %v3863_v44 = vsel %vm979_vm0, %v9186_v58, 0.0  ;;  %5821 = vmatmul.msk.f32.gmra.mxu1 %vm979_vm0, %v3974_v22  ;;  %vm4714_vm6 = vcmp.eq.f32.partialorder %v4713_v35, 8.507059e+37  ;;  %vm9269_vm13 = vmor %vm4739_vm11, %vm4740_vm12 }
 0x5f3   : > { %4862 = vst.msk [vmem:[%s8933_s22 + $0x30] sm:$0xff] %vm979_vm0, %v4846_v19  ;;  %v3911_v0 = vsel %vm979_vm0, %v9190_v6, 0.0  ;;  %3864 = vadd.xlane.f32.xlu1 %v3863_v44  ;;  %v4717_v33 = vsel %vm4714_vm6, %v4716_v50, %v4712_v37  ;;  %v4736_v10 = vsub.f32 1.0, %v4735_v39 }
 0x5f4   : > { %6180 = vpow2.f32 %v3772_v59  ;;  %3912 = vadd.xlane.f32.xlu2 %v3911_v0  ;;  %v3850_v8 = vpop.xlane.xlu1 %3849  ;;  %v3663_v63 = vpop.xlane.xlu0 %3662  ;;  %v4832_v17 = vmul.f32 %v4717_v33, %v8974_v28 }
 0x5f5   : > { %v6179_v24 = vpop.eup %6178  ;;  %6182 = vpow2.f32 %v3820_v31  ;;  %v3898_v40 = vpop.xlane.xlu2 %3897  ;;  %v4737_v22 = vmul.f32 %v9180_v12, %v4736_v10 }
 0x5f6   : > { %v3959_v3 = vmul.f32 %v6179_v24, %v8774_v57  ;;  %v3928_v9 = vadd.f32 %v3898_v40, %v3850_v8  ;;  %v3975_v53 = vmul.f32 %v6179_v24, %v8776_v47  ;;  %v4723_v57 = vadd.f32 %v9161_v21, %v4722_v26  ;;  %v4505_v37 = vpop.f32.mrf.mxu3 }
 0x5f7   : > { %v4730_v47 = vand.u32 2147483648, %v9120_v61  ;;  %v4506_v11 = vadd.f32 %v8812_v30, %v4505_v37 }
 0x5f8   : > { %v4847_v34 = vmul.f32 %v4831_v5, %v3959_v3  ;;  %6184 = vrcp.f32 %v3928_v9  ;;  %v4727_v55 = vsel %vm9233_vm9, %v9161_v21, %v4723_v57  ;;  %v9735_v9 = vld [vmem:[#allocation38_spill] sm:$0xff] }
 0x5f9   : > { %5790 = vmatmul.msk.f32.gmra.mxu2 %vm979_vm0, %v3975_v53  ;;  %5806 = vmatmul.msk.f32.gmra.mxu0 %vm979_vm0, %v3975_v53  ;;  %v4731_v45 = vor.u32 1.1754944e-38, %v4730_v47  ;;  %v5858_v33 = vmul.f32 -1.442695, %v4506_v11 }
 0x5fa   : > { %v9223_v49 = vpop.eup %6180  ;;  %4863 = vst.msk [vmem:[%s8933_s22 + $0x38] sm:$0xff] %vm979_vm0, %v4847_v34  ;;  %5822 = vmatmul.msk.f32.gmra.mxu1 %vm979_vm0, %v3975_v53 }
 0x5fb   : > { %v9231_v25 = vpop.eup %6182  ;;  %v3866_v60 = vsel %vm979_vm0, %v9223_v49, 0.0  ;;  %v4732_v44 = vsel %vm9243_vm10, %v4731_v45, %v4727_v55 }
 0x5fc   : > { %v3914_v61 = vsel %vm979_vm0, %v9231_v25, 0.0  ;;  %3867 = vadd.xlane.f32.xlu0 %v3866_v60  ;;  %v3711_v48 = vpop.xlane.xlu1 %3710  ;;  %v3901_v7 = vpop.xlane.xlu0 %3900  ;;  %v4833_v35 = vmul.f32 %v4732_v44, %v9035_v4 }
 0x5fd   : > { %3915 = vadd.xlane.f32.xlu1 %v3914_v61  ;;  %v3853_v16 = vpop.xlane.xlu2 %3852  ;;  %v3727_v43 = vmax.f32 %v3663_v63, %v3711_v48 }
 0x5fe   : > { %v6185_v18 = vpop.eup %6184  ;;  %v3929_v15 = vadd.f32 %v3901_v7, %v3853_v16  ;;  %v4508_v57 = vpop.f32.mrf.mxu3  ;;  %v9311_v16 = vld [vmem:[%s9574_s12] ss:$0 sm:$0xff] }
 0x5ff   : > { %v3960_v32 = vmul.f32 %v6185_v18, %v8792_v36  ;;  %v3743_v28 = vsub.f32 %v8790_v20, %v3727_v43  ;;  %v3791_v19 = vsub.f32 %v8807_v42, %v3727_v43  ;;  %v3976_v29 = vmul.f32 %v6185_v18, %v8794_v13 }
 0x600   : > { %6186 = vrcp.f32 %v3929_v15  ;;  %v4745_v36 = vand.u32 2147483648, %v9144_v23  ;;  %v4738_v20 = vadd.f32 %v9180_v12, %v4737_v22  ;;  %v4743_v13 = vand.u32 2147483647, %v9144_v23  ;;  %v4240_v15 = vld [vmem:[%s8217_s17 + $0x8] sm:$0xff] }
 0x601   : > { %v4848_v59 = vmul.f32 %v4832_v17, %v3960_v32  ;;  %v3774_v21 = vmul.f32 1.442695, %v3743_v28  ;;  %v3822_v31 = vmul.f32 1.442695, %v3791_v19  ;;  %5791 = vmatmul.msk.f32.gmra.mxu2 %vm979_vm0, %v3976_v29  ;;  %5807 = vmatmul.msk.f32.gmra.mxu0 %vm979_vm0, %v3976_v29 }
 0x602   : > { %5823 = vmatmul.msk.f32.gmra.mxu1 %vm979_vm0, %v3976_v29  ;;  %v4746_v1 = vor.u32 1.1754944e-38, %v4745_v36  ;;  %v4742_v63 = vsel %vm9269_vm13, %v9180_v12, %v4738_v20  ;;  %vm4744_vm14 = vcmp.eq.f32.partialorder %v4743_v13, 8.507059e+37 }
 0x603   : > { %4864 = vst.msk [vmem:[%s8933_s22 + $0x40] sm:$0xff] %vm979_vm0, %v4848_v59  ;;  %6188 = vpow2.f32 %v3774_v21  ;;  %v4241_v59 = vld [vmem:[%s8217_s17 + $0x10] sm:$0xff] }
 0x604   : > { %6190 = vpow2.f32 %v3822_v31  ;;  %v3856_v51 = vpop.xlane.xlu1 %3855  ;;  %v4747_v4 = vsel %vm4744_vm14, %v4746_v1, %v4742_v63 }
 0x605   : > { %v3904_v0 = vpop.xlane.xlu2 %3903 }
 0x606   : > { %v6187_v5 = vpop.eup %6186  ;;  %v3930_v8 = vadd.f32 %v3904_v0, %v3856_v51 }
 0x607   : > { %v3961_v23 = vmul.f32 %v6187_v5, %v8816_v46  ;;  %v3977_v24 = vmul.f32 %v6187_v5, %v8814_v14  ;;  %v4834_v46 = vmul.f32 %v4747_v4, %v9062_v2  ;;  %v4511_v17 = vpop.f32.mrf.mxu3  ;;  %v4239_v5 = vld [vmem:[%s8217_s17] sm:$0xff] }
 0x608   : > { %6192 = vrcp.f32 %v3930_v8  ;;  %v9314_v43 = vadd.f32 %v9311_v16, %v4511_v17 }
 0x609   : > { %v9279_v50 = vpop.eup %6188  ;;  %v4849_v39 = vmul.f32 %v4833_v35, %v3961_v23  ;;  %5792 = vmatmul.msk.f32.gmra.mxu2 %vm979_vm0, %v3977_v24  ;;  %5808 = vmatmul.msk.f32.gmra.mxu0 %vm979_vm0, %v3977_v24  ;;  %6194 = vpow2.f32 %v5858_v33 }
 0x60a   : > { %v9281_v40 = vpop.eup %6190  ;;  %v3869_v12 = vsel %vm979_vm0, %v9279_v50, 0.0  ;;  %5824 = vmatmul.msk.f32.gmra.mxu1 %vm979_vm0, %v3977_v24  ;;  %v5860_v20 = vmul.f32 -1.442695, %v9314_v43  ;;  %v4243_v24 = vld [vmem:[%s8217_s17 + $0x20] sm:$0xff] }
 0x60b   : > { %4865 = vst.msk [vmem:[%s8933_s22 + $0x48] sm:$0xff] %vm979_vm0, %v4849_v39  ;;  %v3917_v14 = vsel %vm979_vm0, %v9281_v40, 0.0  ;;  %3870 = vadd.xlane.f32.xlu2 %v3869_v12 }
 0x60c   : > { %3918 = vadd.xlane.f32.xlu0 %v3917_v14  ;;  %v4244_v14 = vld [vmem:[%s8217_s17 + $0x28] sm:$0xff] }
 0x60e   : > { %v6193_v26 = vpop.eup %6192 }
 0x60f   : > { %v3962_v3 = vmul.f32 %v6193_v26, %v8828_v41  ;;  %v3978_v53 = vmul.f32 %v6193_v26, %v9735_v9  ;;  %v6195_v2 = vpop.eup %6194  ;;  %v9302_v41 = vadd.f32 %v8812_v30, %v4508_v57 }
 0x610   : > { %v4579_v47 = vadd.f32 1.0, %v6195_v2 }
 0x611   : > { %v4850_v34 = vmul.f32 %v4834_v46, %v3962_v3  ;;  %5793 = vmatmul.msk.f32.gmra.mxu2 %vm979_vm0, %v3978_v53  ;;  %5809 = vmatmul.msk.f32.gmra.mxu0 %vm979_vm0, %v3978_v53  ;;  %v5859_v10 = vmul.f32 -1.442695, %v9302_v41 }
 0x612   : > { %5825 = vmatmul.msk.f32.gmra.mxu1 %vm979_vm0, %v3978_v53  ;;  %6196 = vrcp.f32 %v4579_v47  ;;  %vm4754_vm15 = vweird.f32 %v4579_v47  ;;  %v4760_v30 = vand.u32 2147483648, %v4579_v47  ;;  %v4758_v55 = vand.u32 2147483647, %v4579_v47 }
 0x613   : > { %4866 = vst.msk [vmem:[%s8933_s22 + $0x50] sm:$0xff] %vm979_vm0, %v4850_v34  ;;  %6198 = vpow2.f32 %v5859_v10 }
 0x614   : > { %v4761_v31 = vor.u32 1.1754944e-38, %v4760_v30  ;;  %vm4759_vm3 = vcmp.eq.f32.partialorder %v4758_v55, 8.507059e+37 }
 0x618   : > { %v6197_v54 = vpop.eup %6196 }
 0x619   : > { %v4750_v60 = vmul.f32 %v6197_v54, %v4579_v47  ;;  %v6199_v61 = vpop.eup %6198  ;;  %vm4755_vm1 = vweird.f32 %v6197_v54 }
 0x61a   : > { %v9305_v7 = vadd.f32 1.0, %v6199_v61  ;;  %vm9316_vm2 = vmor %vm4754_vm15, %vm4755_vm1 }
 0x61b   : > { %v4751_v48 = vsub.f32 1.0, %v4750_v60  ;;  %v4514_v51 = vpop.f32.mrf.mxu3 }
 0x61c   : > { %6200 = vrcp.f32 %v9305_v7  ;;  %v9334_v8 = vadd.f32 %v9311_v16, %v4514_v51  ;;  %vm4769_vm4 = vweird.f32 %v9305_v7  ;;  %v4775_v33 = vand.u32 2147483648, %v9305_v7 }
 0x61d   : > { %v4752_v38 = vmul.f32 %v6197_v54, %v4751_v48  ;;  %v4773_v10 = vand.u32 2147483647, %v9305_v7  ;;  %v4246_v48 = vld [vmem:[%s8217_s17 + $0x38] sm:$0xff] }
 0x61e   : > { %v5861_v53 = vmul.f32 -1.442695, %v9334_v8  ;;  %v4776_v45 = vor.u32 1.1754944e-38, %v4775_v33  ;;  %v4251_v33 = vld [vmem:[%s8217_s17 + $0x60] sm:$0xff] }
 0x61f   : > { %v4753_v18 = vadd.f32 %v6197_v54, %v4752_v38  ;;  %vm4774_vm7 = vcmp.eq.f32.partialorder %v4773_v10, 8.507059e+37 }
 0x621   : > { %v4757_v13 = vsel %vm9316_vm2, %v6197_v54, %v4753_v18  ;;  %v4247_v18 = vld [vmem:[%s8217_s17 + $0x40] sm:$0xff] }
 0x622   : > { %v9321_v28 = vpop.eup %6200  ;;  %v4762_v35 = vsel %vm4759_vm3, %v4761_v31, %v4757_v13 }
 0x623   : > { %v4765_v42 = vmul.f32 %v9321_v28, %v9305_v7  ;;  %v4835_v39 = vmul.f32 %v4762_v35, %v4506_v11  ;;  %vm4770_vm5 = vweird.f32 %v9321_v28  ;;  %v4250_v35 = vld [vmem:[%s8217_s17 + $0x58] sm:$0xff] }
 0x624   : > { %vm9359_vm6 = vmor %vm4769_vm4, %vm4770_vm5 }
 0x625   : > { %v4766_v63 = vsub.f32 1.0, %v4765_v42 }
 0x627   : > { %v4767_v34 = vmul.f32 %v9321_v28, %v4766_v63 }
 0x629   : > { %v4768_v47 = vadd.f32 %v9321_v28, %v4767_v34 }
 0x62b   : > { %v4772_v7 = vsel %vm9359_vm6, %v9321_v28, %v4768_v47 }
 0x63d   : > { %v4126_v22 = vpop.f32.mrf.mxu0  ;;  %v3859_v32 = vpop.xlane.xlu0 %3858 }
 0x63e   : > { %v4288_v19 = vmul.f32 %v4240_v15, %v4126_v22  ;;  %v4191_v29 = vpop.f32.mrf.mxu1  ;;  %v3907_v21 = vpop.xlane.xlu1 %3906 }
 0x63f   : > { %v4289_v44 = vmul.f32 %v4241_v59, %v4191_v29  ;;  %v3931_v36 = vadd.f32 %v3907_v21, %v3859_v32  ;;  %v4777_v29 = vsel %vm4774_vm7, %v4776_v45, %v4772_v7  ;;  %v4245_v21 = vld [vmem:[%s8217_s17 + $0x30] sm:$0xff] }
 0x640   : > { %4336 = vst [vmem:[%s8217_s17 + $0x8] sm:$0xff] %v4288_v19  ;;  %v4836_v42 = vmul.f32 %v4777_v29, %v9302_v41 }
 0x641   : > { %4337 = vst.msk [vmem:[%s8217_s17 + $0x10] sm:$0xff] %vm979_vm0, %v4289_v44  ;;  %6202 = vrcp.f32 %v3931_v36 }
 0x642   : > { %6204 = vpow2.f32 %v5860_v20  ;;  %v4249_v20 = vld [vmem:[%s8217_s17 + $0x50] sm:$0xff] }
 0x643   : > { %v4061_v0 = vpop.f32.mrf.mxu2  ;;  %6206 = vpow2.f32 %v5861_v53 }
 0x644   : > { %v4287_v1 = vmul.f32 %v4239_v5, %v4061_v0 }
 0x645   : > { %v4129_v23 = vpop.f32.mrf.mxu0 }
 0x646   : > { %4335 = vst [vmem:[%s8217_s17] sm:$0xff] %v4287_v1  ;;  %v4291_v4 = vmul.f32 %v4243_v24, %v4129_v23  ;;  %v4194_v12 = vpop.f32.mrf.mxu1  ;;  %v4517_v54 = vpop.f32.mrf.mxu3  ;;  %v4248_v24 = vld [vmem:[%s8217_s17 + $0x48] sm:$0xff] }
 0x647   : > { %v6203_v46 = vpop.eup %6202  ;;  %v4292_v26 = vmul.f32 %v4244_v14, %v4194_v12  ;;  %v9374_v19 = vadd.f32 %v9311_v16, %v4517_v54  ;;  %v4252_v12 = vld [vmem:[%s8217_s17 + $0x68] sm:$0xff] }
 0x648   : > { %v3963_v3 = vmul.f32 %v6203_v46, %v8982_v52  ;;  %4339 = vst [vmem:[%s8217_s17 + $0x20] sm:$0xff] %v4291_v4  ;;  %v3979_v9 = vmul.f32 %v6203_v46, %v8989_v62  ;;  %v6205_v37 = vpop.eup %6204  ;;  %v4242_v62 = vld [vmem:[%s8217_s17 + $0x18] sm:$0xff] }
 0x649   : > { %4340 = vst.msk [vmem:[%s8217_s17 + $0x28] sm:$0xff] %vm979_vm0, %v4292_v26  ;;  %v9355_v57 = vadd.f32 1.0, %v6205_v37  ;;  %v6207_v32 = vpop.eup %6206  ;;  %v5862_v13 = vmul.f32 -1.442695, %v9374_v19 }
 0x64a   : > { %v4851_v11 = vmul.f32 %v4835_v39, %v3963_v3  ;;  %5794 = vmatmul.msk.f32.gmra.mxu2 %vm979_vm0, %v3979_v9  ;;  %5810 = vmatmul.msk.f32.gmra.mxu0 %vm979_vm0, %v3979_v9  ;;  %v9377_v44 = vadd.f32 1.0, %v6207_v32  ;;  %v4253_v3 = vld [vmem:[%s8217_s17 + $0x70] sm:$0xff] }
 0x64b   : > { %5826 = vmatmul.msk.f32.gmra.mxu1 %vm979_vm0, %v3979_v9  ;;  %v4064_v52 = vpop.f32.mrf.mxu2  ;;  %6208 = vrcp.f32 %v9355_v57  ;;  %vm4784_vm8 = vweird.f32 %v9355_v57  ;;  %v4788_v47 = vand.u32 2147483647, %v9355_v57 }
 0x64c   : > { %4867 = vst.msk [vmem:[%s8933_s22 + $0x58] sm:$0xff] %vm979_vm0, %v4851_v11  ;;  %v4290_v2 = vmul.f32 %v4242_v62, %v4064_v52  ;;  %v4790_v52 = vand.u32 2147483648, %v9355_v57  ;;  %vm4799_vm12 = vweird.f32 %v9377_v44  ;;  %v4805_v29 = vand.u32 2147483648, %v9377_v44 }
 0x64d   : > { %vm4789_vm11 = vcmp.eq.f32.partialorder %v4788_v47, 8.507059e+37 }
 0x64e   : > { %4338 = vst [vmem:[%s8217_s17 + $0x18] sm:$0xff] %v4290_v2  ;;  %v4132_v61 = vpop.f32.mrf.mxu0  ;;  %v3862_v17 = vpop.xlane.xlu2 %3861 }
 0x64f   : > { %v4294_v38 = vmul.f32 %v4246_v48, %v4132_v61  ;;  %v4197_v30 = vpop.f32.mrf.mxu1  ;;  %v3910_v55 = vpop.xlane.xlu0 %3909  ;;  %v4255_v48 = vld [vmem:[%s8217_s17 + $0x80] sm:$0xff] }
 0x650   : > { %v4295_v22 = vmul.f32 %v4247_v18, %v4197_v30  ;;  %v3932_v15 = vadd.f32 %v3910_v55, %v3862_v17  ;;  %v4256_v18 = vld [vmem:[%s8217_s17 + $0x88] sm:$0xff] }
 0x651   : > { %4342 = vst [vmem:[%s8217_s17 + $0x38] sm:$0xff] %v4294_v38  ;;  %v9379_v36 = vpop.eup %6208 }
 0x652   : > { %4343 = vst.msk [vmem:[%s8217_s17 + $0x40] sm:$0xff] %vm979_vm0, %v4295_v22  ;;  %6210 = vrcp.f32 %v3932_v15  ;;  %v4780_v63 = vmul.f32 %v9379_v36, %v9355_v57  ;;  %vm4785_vm9 = vweird.f32 %v9379_v36  ;;  %v4791_v57 = vor.u32 1.1754944e-38, %v4790_v52 }
 0x653   : > { %6212 = vrcp.f32 %v9377_v44  ;;  %vm9419_vm10 = vmor %vm4784_vm8, %vm4785_vm9 }
 0x654   : > { %v4067_v59 = vpop.f32.mrf.mxu2  ;;  %6214 = vpow2.f32 %v5862_v13  ;;  %v4781_v39 = vsub.f32 1.0, %v4780_v63 }
 0x655   : > { %v4293_v31 = vmul.f32 %v4245_v21, %v4067_v59  ;;  %v4254_v21 = vld [vmem:[%s8217_s17 + $0x78] sm:$0xff] }
 0x656   : > { %v4135_v28 = vpop.f32.mrf.mxu0  ;;  %v4782_v37 = vmul.f32 %v9379_v36, %v4781_v39 }
 0x657   : > { %4341 = vst [vmem:[%s8217_s17 + $0x30] sm:$0xff] %v4293_v31  ;;  %v4297_v51 = vmul.f32 %v4249_v20, %v4135_v28  ;;  %v4200_v16 = vpop.f32.mrf.mxu1  ;;  %v4803_v20 = vand.u32 2147483647, %v9377_v44 }
 0x658   : > { %v6211_v0 = vpop.eup %6210  ;;  %v4298_v5 = vmul.f32 %v4250_v35, %v4200_v16  ;;  %v4783_v2 = vadd.f32 %v9379_v36, %v4782_v37  ;;  %v4258_v16 = vld [vmem:[%s8217_s17 + $0x98] sm:$0xff] }
 0x659   : > { %v3964_v1 = vmul.f32 %v6211_v0, %v9075_v56  ;;  %4345 = vst [vmem:[%s8217_s17 + $0x50] sm:$0xff] %v4297_v51  ;;  %v3980_v41 = vmul.f32 %v6211_v0, %v9080_v27  ;;  %v9401_v14 = vpop.eup %6212  ;;  %vm4804_vm15 = vcmp.eq.f32.partialorder %v4803_v20, 8.507059e+37  ;;  %v4267_v20 = vld [vmem:[%s8217_s17 + $0xe0] sm:$0xff] }
 0x65a   : > { %4346 = vst.msk [vmem:[%s8217_s17 + $0x58] sm:$0xff] %vm979_vm0, %v4298_v5  ;;  %v6215_v9 = vpop.eup %6214  ;;  %v4795_v34 = vmul.f32 %v9401_v14, %v9377_v44  ;;  %v4787_v15 = vsel %vm9419_vm10, %v9379_v36, %v4783_v2  ;;  %vm4800_vm13 = vweird.f32 %v9401_v14  ;;  %v4806_v5 = vor.u32 1.1754944e-38, %v4805_v29  ;;  %v4259_v44 = vld [vmem:[%s8217_s17 + $0xa0] sm:$0xff] }
 0x65b   : > { %v4852_v23 = vmul.f32 %v4836_v42, %v3964_v1  ;;  %5795 = vmatmul.msk.f32.gmra.mxu2 %vm979_vm0, %v3980_v41  ;;  %5811 = vmatmul.msk.f32.gmra.mxu0 %vm979_vm0, %v3980_v41  ;;  %v9413_v11 = vadd.f32 1.0, %v6215_v9  ;;  %v4792_v32 = vsel %vm4789_vm11, %v4791_v57, %v4787_v15  ;;  %vm9443_vm14 = vmor %vm4799_vm12, %vm4800_vm13 }
 0x65c   : > { %5827 = vmatmul.msk.f32.gmra.mxu1 %vm979_vm0, %v3980_v41  ;;  %v4070_v56 = vpop.f32.mrf.mxu2  ;;  %v4796_v60 = vsub.f32 1.0, %v4795_v34  ;;  %v4837_v13 = vmul.f32 %v4792_v32, %v9314_v43  ;;  %v4262_v34 = vld [vmem:[%s8217_s17 + $0xb8] sm:$0xff] }
 0x65d   : > { %4868 = vst.msk [vmem:[%s8933_s22 + $0x60] sm:$0xff] %vm979_vm0, %v4852_v23  ;;  %v4296_v4 = vmul.f32 %v4248_v24, %v4070_v56  ;;  %6216 = vrcp.f32 %v9413_v11  ;;  %vm4814_vm1 = vweird.f32 %v9413_v11 }
 0x65e   : > { %v4138_v27 = vpop.f32.mrf.mxu0  ;;  %v4797_v7 = vmul.f32 %v9401_v14, %v4796_v60  ;;  %v4260_v60 = vld [vmem:[%s8217_s17 + $0xa8] sm:$0xff] }
 0x65f   : > { %4344 = vst [vmem:[%s8217_s17 + $0x48] sm:$0xff] %v4296_v4  ;;  %v4300_v46 = vmul.f32 %v4252_v12, %v4138_v27  ;;  %v4203_v26 = vpop.f32.mrf.mxu1 }
 0x660   : > { %v4301_v53 = vmul.f32 %v4253_v3, %v4203_v26  ;;  %v4798_v28 = vadd.f32 %v9401_v14, %v4797_v7  ;;  %v4261_v3 = vld [vmem:[%s8217_s17 + $0xb0] sm:$0xff] }
 0x661   : > { %4348 = vst [vmem:[%s8217_s17 + $0x68] sm:$0xff] %v4300_v46 }
 0x662   : > { %4349 = vst.msk [vmem:[%s8217_s17 + $0x70] sm:$0xff] %vm979_vm0, %v4301_v53  ;;  %v4802_v4 = vsel %vm9443_vm14, %v9401_v14, %v4798_v28  ;;  %v4257_v14 = vld [vmem:[%s8217_s17 + $0x90] sm:$0xff] }
 0x663   : > { %v9438_v31 = vpop.eup %6216 }
 0x664   : > { %v4073_v62 = vpop.f32.mrf.mxu2  ;;  %v4810_v1 = vmul.f32 %v9438_v31, %v9413_v11  ;;  %vm4815_vm2 = vweird.f32 %v9438_v31 }
 0x665   : > { %v4299_v10 = vmul.f32 %v4251_v33, %v4073_v62  ;;  %vm9485_vm3 = vmor %vm4814_vm1, %vm4815_vm2 }
 0x666   : > { %v4141_v61 = vpop.f32.mrf.mxu0  ;;  %v3865_v17 = vpop.xlane.xlu1 %3864 }
 0x667   : > { %4347 = vst [vmem:[%s8217_s17 + $0x60] sm:$0xff] %v4299_v10  ;;  %v4303_v38 = vmul.f32 %v4255_v48, %v4141_v61  ;;  %v4206_v30 = vpop.f32.mrf.mxu1  ;;  %v3913_v55 = vpop.xlane.xlu2 %3912 }
 0x668   : > { %v4304_v45 = vmul.f32 %v4256_v18, %v4206_v30  ;;  %v3933_v22 = vadd.f32 %v3913_v55, %v3865_v17  ;;  %v4264_v30 = vld [vmem:[%s8217_s17 + $0xc8] sm:$0xff] }
 0x669   : > { %4351 = vst [vmem:[%s8217_s17 + $0x80] sm:$0xff] %v4303_v38 }
 0x66a   : > { %4352 = vst.msk [vmem:[%s8217_s17 + $0x88] sm:$0xff] %vm979_vm0, %v4304_v45  ;;  %6218 = vrcp.f32 %v3933_v22  ;;  %v4265_v45 = vld [vmem:[%s8217_s17 + $0xd0] sm:$0xff] }
 0x66c   : > { %v4076_v59 = vpop.f32.mrf.mxu2 }
 0x66d   : > { %v4302_v36 = vmul.f32 %v4254_v21, %v4076_v59  ;;  %v4263_v59 = vld [vmem:[%s8217_s17 + $0xc0] sm:$0xff] }
 0x66e   : > { %v4144_v51 = vpop.f32.mrf.mxu0 }
 0x66f   : > { %4350 = vst [vmem:[%s8217_s17 + $0x78] sm:$0xff] %v4302_v36  ;;  %v3868_v35 = vpop.xlane.xlu0 %3867  ;;  %v4306_v63 = vmul.f32 %v4258_v16, %v4144_v51  ;;  %v4209_v41 = vpop.f32.mrf.mxu1  ;;  %v4268_v51 = vld [vmem:[%s8217_s17 + $0xe8] sm:$0xff] }
 0x670   : > { %v6219_v0 = vpop.eup %6218  ;;  %v3916_v43 = vpop.xlane.xlu1 %3915  ;;  %v4307_v56 = vmul.f32 %v4259_v44, %v4209_v41 }
 0x671   : > { %v3965_v23 = vmul.f32 %v6219_v0, %v9186_v58  ;;  %v3934_v24 = vadd.f32 %v3916_v43, %v3868_v35  ;;  %v3981_v39 = vmul.f32 %v6219_v0, %v9190_v6  ;;  %4354 = vst [vmem:[%s8217_s17 + $0x98] sm:$0xff] %v4306_v63  ;;  %v4807_v58 = vsel %vm4804_vm15, %v4806_v5, %v4802_v4  ;;  %v4270_v63 = vld [vmem:[%s8217_s17 + $0xf8] sm:$0xff]  ;;  %v4271_v43 = vld [vmem:[%s8217_s17 + $0x100] sm:$0xff] }
 0x672   : > { %4355 = vst.msk [vmem:[%s8217_s17 + $0xa0] sm:$0xff] %vm979_vm0, %v4307_v56  ;;  %v4811_v6 = vsub.f32 1.0, %v4810_v1  ;;  %v4838_v9 = vmul.f32 %v4807_v58, %v9334_v8  ;;  %v4820_v8 = vand.u32 2147483648, %v9413_v11 }
 0x673   : > { %v4853_v27 = vmul.f32 %v4837_v13, %v3965_v23  ;;  %6220 = vrcp.f32 %v3934_v24  ;;  %5796 = vmatmul.msk.f32.gmra.mxu2 %vm979_vm0, %v3981_v39  ;;  %5812 = vmatmul.msk.f32.gmra.mxu0 %vm979_vm0, %v3981_v39  ;;  %v4269_v24 = vld [vmem:[%s8217_s17 + $0xf0] sm:$0xff] }
 0x674   : > { %5828 = vmatmul.msk.f32.gmra.mxu1 %vm979_vm0, %v3981_v39  ;;  %v4079_v12 = vpop.f32.mrf.mxu2  ;;  %v4812_v62 = vmul.f32 %v9438_v31, %v4811_v6  ;;  %v4821_v55 = vor.u32 1.1754944e-38, %v4820_v8 }
 0x675   : > { %4869 = vst.msk [vmem:[%s8933_s22 + $0x68] sm:$0xff] %vm979_vm0, %v4853_v27  ;;  %v4305_v46 = vmul.f32 %v4257_v14, %v4079_v12  ;;  %v4273_v27 = vld [vmem:[%s8217_s17 + $0x110] sm:$0xff]  ;;  %v4274_v12 = vld [vmem:[%s8217_s17 + $0x118] sm:$0xff] }
 0x676   : > { %v4147_v26 = vpop.f32.mrf.mxu0 }
 0x677   : > { %4353 = vst [vmem:[%s8217_s17 + $0x90] sm:$0xff] %v4305_v46  ;;  %v4309_v53 = vmul.f32 %v4261_v3, %v4147_v26  ;;  %v4212_v37 = vpop.f32.mrf.mxu1  ;;  %v4272_v26 = vld [vmem:[%s8217_s17 + $0x108] sm:$0xff] }
 0x678   : > { %v4310_v33 = vmul.f32 %v4262_v34, %v4212_v37 }
 0x679   : > { %v6221_v52 = vpop.eup %6220  ;;  %4357 = vst [vmem:[%s8217_s17 + $0xb0] sm:$0xff] %v4309_v53  ;;  %v4276_v53 = vld [vmem:[%s8217_s17 + $0x128] sm:$0xff] }
 0x67a   : > { %v3966_v2 = vmul.f32 %v6221_v52, %v9223_v49  ;;  %v3982_v47 = vmul.f32 %v6221_v52, %v9231_v25  ;;  %4358 = vst.msk [vmem:[%s8217_s17 + $0xb8] sm:$0xff] %vm979_vm0, %v4310_v33  ;;  %v4813_v49 = vadd.f32 %v9438_v31, %v4812_v62  ;;  %v4818_v25 = vand.u32 2147483647, %v9413_v11  ;;  %v4277_v52 = vld [vmem:[%s8217_s17 + $0x130] sm:$0xff] }
 0x67c   : > { %v4854_v10 = vmul.f32 %v4838_v9, %v3966_v2  ;;  %5797 = vmatmul.msk.f32.gmra.mxu2 %vm979_vm0, %v3982_v47  ;;  %5813 = vmatmul.msk.f32.gmra.mxu0 %vm979_vm0, %v3982_v47  ;;  %v4082_v54 = vpop.f32.mrf.mxu2  ;;  %v4817_v15 = vsel %vm9485_vm3, %v9438_v31, %v4813_v49  ;;  %vm4819_vm4 = vcmp.eq.f32.partialorder %v4818_v25, 8.507059e+37  ;;  %v4275_v2 = vld [vmem:[%s8217_s17 + $0x120] sm:$0xff] }
 0x67d   : > { %5829 = vmatmul.msk.f32.gmra.mxu1 %vm979_vm0, %v3982_v47  ;;  %v4308_v48 = vmul.f32 %v4260_v60, %v4082_v54  ;;  %v4822_v32 = vsel %vm4819_vm4, %v4821_v55, %v4817_v15  ;;  %v4280_v54 = vld [vmem:[%s8217_s17 + $0x148] sm:$0xff] }
 0x67e   : > { %4870 = vst.msk [vmem:[%s8933_s22 + $0x70] sm:$0xff] %vm979_vm0, %v4854_v10  ;;  %v3871_v17 = vpop.xlane.xlu2 %3870  ;;  %v4150_v38 = vpop.f32.mrf.mxu0  ;;  %v4839_v36 = vmul.f32 %v4822_v32, %v9374_v19  ;;  %v4266_v19 = vld [vmem:[%s8217_s17 + $0xd8] sm:$0xff]  ;;  %v4279_v10 = vld [vmem:[%s8217_s17 + $0x140] sm:$0xff]  ;;  %v4285_v32 = vld [vmem:[%s8217_s17 + $0x170] sm:$0xff] }
 0x67f   : > { %v3919_v18 = vpop.xlane.xlu0 %3918  ;;  %4356 = vst [vmem:[%s8217_s17 + $0xa8] sm:$0xff] %v4308_v48  ;;  %v4312_v11 = vmul.f32 %v4264_v30, %v4150_v38  ;;  %v4215_v57 = vpop.f32.mrf.mxu1  ;;  %v4278_v48 = vld [vmem:[%s8217_s17 + $0x138] sm:$0xff] }
 0x680   : > { %v3935_v22 = vadd.f32 %v3919_v18, %v3871_v17  ;;  %v4313_v7 = vmul.f32 %v4265_v45, %v4215_v57  ;;  %v4282_v30 = vld [vmem:[%s8217_s17 + $0x158] sm:$0xff] }
 0x681   : > { %4360 = vst [vmem:[%s8217_s17 + $0xc8] sm:$0xff] %v4312_v11  ;;  %v4283_v11 = vld [vmem:[%s8217_s17 + $0x160] sm:$0xff] }
 0x682   : > { %6222 = vrcp.f32 %v3935_v22  ;;  %4361 = vst.msk [vmem:[%s8217_s17 + $0xd0] sm:$0xff] %vm979_vm0, %v4313_v7  ;;  %v4281_v22 = vld [vmem:[%s8217_s17 + $0x150] sm:$0xff] }
 0x684   : > { %v4085_v29 = vpop.f32.mrf.mxu2 }
 0x685   : > { %v4311_v21 = vmul.f32 %v4263_v59, %v4085_v29 }
 0x686   : > { %v4153_v28 = vpop.f32.mrf.mxu0 }
 0x687   : > { %4359 = vst [vmem:[%s8217_s17 + $0xc0] sm:$0xff] %v4311_v21  ;;  %v4315_v31 = vmul.f32 %v4267_v20, %v4153_v28  ;;  %v4218_v42 = vpop.f32.mrf.mxu1  ;;  %v4286_v21 = vld [vmem:[%s8217_s17 + $0x178] sm:$0xff]  ;;  %v4284_v20 = vld [vmem:[%s8217_s17 + $0x168] sm:$0xff] }
 0x688   : > { %v6223_v13 = vpop.eup %6222  ;;  %v4316_v35 = vmul.f32 %v4268_v51, %v4218_v42 }
 0x689   : > { %v3967_v16 = vmul.f32 %v6223_v13, %v9279_v50  ;;  %v3983_v0 = vmul.f32 %v6223_v13, %v9281_v40  ;;  %4363 = vst [vmem:[%s8217_s17 + $0xe0] sm:$0xff] %v4315_v31 }
 0x68a   : > { %4364 = vst.msk [vmem:[%s8217_s17 + $0xe8] sm:$0xff] %vm979_vm0, %v4316_v35 }
 0x68b   : > { %v4855_v5 = vmul.f32 %v4839_v36, %v3967_v16  ;;  %5798 = vmatmul.msk.f32.gmra.mxu2 %vm979_vm0, %v3983_v0  ;;  %5814 = vmatmul.msk.f32.gmra.mxu0 %vm979_vm0, %v3983_v0 }
 0x68c   : > { %5830 = vmatmul.msk.f32.gmra.mxu1 %vm979_vm0, %v3983_v0  ;;  %v4088_v50 = vpop.f32.mrf.mxu2 }
 0x68d   : > { %4871 = vst.msk [vmem:[%s8933_s22 + $0x78] sm:$0xff] %vm979_vm0, %v4855_v5  ;;  %v4314_v40 = vmul.f32 %v4266_v19, %v4088_v50 }
 0x68e   : > { %v4156_v1 = vpop.f32.mrf.mxu0 }
 0x68f   : > { %4362 = vst [vmem:[%s8217_s17 + $0xd8] sm:$0xff] %v4314_v40  ;;  %v4318_v41 = vmul.f32 %v4270_v63, %v4156_v1  ;;  %v4221_v44 = vpop.f32.mrf.mxu1 }
 0x690   : > { %v4319_v23 = vmul.f32 %v4271_v43, %v4221_v44 }
 0x691   : > { %4366 = vst [vmem:[%s8217_s17 + $0xf8] sm:$0xff] %v4318_v41 }
 0x692   : > { %4367 = vst.msk [vmem:[%s8217_s17 + $0x100] sm:$0xff] %vm979_vm0, %v4319_v23 }
 0x694   : > { %v4091_v56 = vpop.f32.mrf.mxu2 }
 0x695   : > { %v4317_v39 = vmul.f32 %v4269_v24, %v4091_v56 }
 0x697   : > { %4365 = vst [vmem:[%s8217_s17 + $0xf0] sm:$0xff] %v4317_v39 }
 0x6c7   : > { %v4159_v4 = vpop.f32.mrf.mxu0 }
 0x6c8   : > { %v4321_v58 = vmul.f32 %v4273_v27, %v4159_v4  ;;  %v4224_v6 = vpop.f32.mrf.mxu1 }
 0x6c9   : > { %v4322_v14 = vmul.f32 %v4274_v12, %v4224_v6 }
 0x6ca   : > { %4369 = vst [vmem:[%s8217_s17 + $0x110] sm:$0xff] %v4321_v58 }
 0x6cb   : > { %4370 = vst.msk [vmem:[%s8217_s17 + $0x118] sm:$0xff] %vm979_vm0, %v4322_v14 }
 0x6cd   : > { %v4094_v46 = vpop.f32.mrf.mxu2 }
 0x6ce   : > { %v4320_v3 = vmul.f32 %v4272_v26, %v4094_v46 }
 0x6d0   : > { %4368 = vst [vmem:[%s8217_s17 + $0x108] sm:$0xff] %v4320_v3 }
 0x6d8   : > { %v4162_v9 = vpop.f32.mrf.mxu0 }
 0x6d9   : > { %v4324_v37 = vmul.f32 %v4276_v53, %v4162_v9  ;;  %v4227_v34 = vpop.f32.mrf.mxu1 }
 0x6da   : > { %v4325_v62 = vmul.f32 %v4277_v52, %v4227_v34 }
 0x6db   : > { %4372 = vst [vmem:[%s8217_s17 + $0x128] sm:$0xff] %v4324_v37 }
 0x6dc   : > { %4373 = vst.msk [vmem:[%s8217_s17 + $0x130] sm:$0xff] %vm979_vm0, %v4325_v62 }
 0x6de   : > { %v4097_v33 = vpop.f32.mrf.mxu2 }
 0x6df   : > { %v4323_v47 = vmul.f32 %v4275_v2, %v4097_v33 }
 0x6e1   : > { %4371 = vst [vmem:[%s8217_s17 + $0x120] sm:$0xff] %v4323_v47 }
 0x6f0   : > { %v4165_v8 = vpop.f32.mrf.mxu0 }
 0x6f1   : > { %v4327_v49 = vmul.f32 %v4279_v10, %v4165_v8  ;;  %v4230_v25 = vpop.f32.mrf.mxu1 }
 0x6f2   : > { %v4328_v60 = vmul.f32 %v4280_v54, %v4230_v25 }
 0x6f3   : > { %4375 = vst [vmem:[%s8217_s17 + $0x140] sm:$0xff] %v4327_v49 }
 0x6f4   : > { %4376 = vst.msk [vmem:[%s8217_s17 + $0x148] sm:$0xff] %vm979_vm0, %v4328_v60 }
 0x6f6   : > { %v4100_v61 = vpop.f32.mrf.mxu2 }
 0x6f7   : > { %v4326_v17 = vmul.f32 %v4278_v48, %v4100_v61 }
 0x6f9   : > { %4374 = vst [vmem:[%s8217_s17 + $0x138] sm:$0xff] %v4326_v17  ;;  %v4168_v38 = vpop.f32.mrf.mxu0 }
 0x6fa   : > { %v4330_v18 = vmul.f32 %v4282_v30, %v4168_v38  ;;  %v4233_v55 = vpop.f32.mrf.mxu1 }
 0x6fb   : > { %v4331_v57 = vmul.f32 %v4283_v11, %v4233_v55 }
 0x6fc   : > { %4378 = vst [vmem:[%s8217_s17 + $0x158] sm:$0xff] %v4330_v18 }
 0x6fd   : > { %4379 = vst.msk [vmem:[%s8217_s17 + $0x160] sm:$0xff] %vm979_vm0, %v4331_v57 }
 0x6ff   : > { %v4103_v45 = vpop.f32.mrf.mxu2 }
 0x700   : > { %v4329_v15 = vmul.f32 %v4281_v22, %v4103_v45 }
 0x702   : > { %4377 = vst [vmem:[%s8217_s17 + $0x150] sm:$0xff] %v4329_v15 }
 0x708   : > { %v4171_v7 = vpop.f32.mrf.mxu0 }
 0x709   : > { %v4333_v29 = vmul.f32 %v4285_v32, %v4171_v7  ;;  %v4236_v59 = vpop.f32.mrf.mxu1 }
 0x70a   : > { %v4334_v36 = vmul.f32 %v4286_v21, %v4236_v59 }
 0x70b   : > { %4381 = vst [vmem:[%s8217_s17 + $0x170] sm:$0xff] %v4333_v29 }
 0x70c   : > { %4382 = vst.msk [vmem:[%s8217_s17 + $0x178] sm:$0xff] %vm979_vm0, %v4334_v36 }
 0x70e   : > { %v4106_v28 = vpop.f32.mrf.mxu2 }
 0x70f   : > { %v4332_v13 = vmul.f32 %v4284_v20, %v4106_v28 }
 0x711   : > { %4380 = vst [vmem:[%s8217_s17 + $0x168] sm:$0xff] %v4332_v13 }
 0x712 PF: > { %s27_s29 = sadd.s32 1, %s6299_s29  }
 0x713   : > { %p24_p7 = scmp.ge.s32.totalorder %s27_s29, 4  }
 0x715   :  { %26 = sbr.rel (!%p24_p7) target bundleno = 2 (0x2), region = 126 }
 0x71a   :  { %4913 = vsyncpa [#allocation3], 1 }
 0x71b   :  { %4915 = vsyncpa [#allocation3 + $0x1], 1 }
 0x71c   :  { %4916 = vsyncpa [#allocation5], 1 }

</bundles_post_ra>
